<compile_context>
chip_gen: v6e
topology: v6e:2x2x1
jax: 0.10.0
libtpu: 0.0.40
codegen_flags: <defaults>
</compile_context>

<pallas_src>
import math
from functools import partial

import jax
import jax.numpy as jnp
from jax.experimental import pallas as pl
from jax.experimental.pallas import tpu as pltpu


def _pair(v):
    return tuple(v) if isinstance(v, (tuple, list)) else (v, v)


@partial(jax.jit, static_argnames=("padding", "stride", "dilation", "compute_dtype"))
def conv2d_pallas(x, weight, bias=None, padding=(0, 0), stride=(1, 1),
                  dilation=(1, 1), compute_dtype=jnp.bfloat16):
    """Dense conv2d (cross-correlation), PyTorch NCHW / OIHW semantics."""
    N, Cin, H, W = x.shape
    Cout, Cin_w, KH, KW = weight.shape
    assert Cin == Cin_w
    ph, pw = _pair(padding)
    sh, sw = _pair(stride)
    dh, dw = _pair(dilation)

    OH = (H + 2 * ph - dh * (KH - 1) - 1) // sh + 1
    OW = (W + 2 * pw - dw * (KW - 1) - 1) // sw + 1
    HP, WP = H + 2 * ph, W + 2 * pw
    OHW = OH * OW

    # Lane-dense output channel count (multiple of 128).
    Cpad = pl.cdiv(Cout, 128) * 128

    if bias is None:
        bias = jnp.zeros((Cout,), jnp.float32)

    # Host-side glue (one pass each over x / weight, no K-fold duplication):
    #   x: NCHW -> padded NHWC (bf16);  weight: OIHW -> (KH*KW, Cin, Cpad) (bf16).
    xp = jnp.transpose(x, (0, 2, 3, 1))
    xp = jnp.pad(xp, ((0, 0), (ph, ph), (pw, pw), (0, 0)))
    xp = xp.astype(compute_dtype)

    w_t = jnp.transpose(weight, (2, 3, 1, 0)).reshape(KH * KW, Cin, Cout)
    w_t = jnp.pad(w_t, ((0, 0), (0, 0), (0, Cpad - Cout))).astype(compute_dtype)
    b_t = jnp.pad(bias.astype(jnp.float32), (0, Cpad - Cout)).reshape(1, Cpad)

    unit_stride = (sh == 1 and sw == 1)

    def kernel(x_ref, w_ref, b_ref, o_ref, acc_ref):
        # x_ref: (1, HP, WP, Cin)    w_ref: (KH*KW, Cin, Cpad)
        # b_ref: (1, Cpad)           o_ref: (1, OHW, Cpad)   acc_ref: (OHW, Cpad) f32
        acc_ref[...] = jnp.zeros_like(acc_ref)
        for ki in range(KH):
            for kj in range(KW):
                h0, w0 = ki * dh, kj * dw
                if unit_stride:
                    win = x_ref[0, h0:h0 + OH, w0:w0 + OW, :]
                else:
                    win = x_ref[0, pl.ds(h0, OH, sh), pl.ds(w0, OW, sw), :]
                win2 = win.reshape(OHW, Cin)          # Cin stays on the lane axis
                acc_ref[...] += jnp.dot(win2, w_ref[ki * KW + kj],
                                        preferred_element_type=jnp.float32)
        o_ref[0] = (acc_ref[...] + b_ref[...]).astype(o_ref.dtype)

    flops = 2 * N * OHW * KH * KW * Cin * Cout
    bytes_accessed = (xp.size * xp.dtype.itemsize
                      + w_t.size * w_t.dtype.itemsize
                      + b_t.size * 4
                      + N * OHW * Cpad * 4)

    out = pl.pallas_call(
        kernel,
        out_shape=jax.ShapeDtypeStruct((N, OHW, Cpad), x.dtype),
        grid_spec=pltpu.PrefetchScalarGridSpec(
            num_scalar_prefetch=0,
            grid=(N,),
            in_specs=[
                pl.BlockSpec((1, HP, WP, Cin), lambda n: (n, 0, 0, 0)),   # image n
                pl.BlockSpec((KH * KW, Cin, Cpad), lambda n: (0, 0, 0)),  # weights (resident)
                pl.BlockSpec((1, Cpad), lambda n: (0, 0)),                # bias (resident)
            ],
            out_specs=pl.BlockSpec((1, OHW, Cpad), lambda n: (n, 0, 0)),
            scratch_shapes=[pltpu.VMEM((OHW, Cpad), jnp.float32)],
        ),
        compiler_params=pltpu.CompilerParams(
            dimension_semantics=("parallel",),
            vmem_limit_bytes=32 * 1024 * 1024,
        ),
        cost_estimate=pl.CostEstimate(flops=flops, transcendentals=0,
                                      bytes_accessed=bytes_accessed),
    )(xp, w_t, b_t)

    out = out[:, :, :Cout].reshape(N, OH, OW, Cout)
    return jnp.transpose(out, (0, 3, 1, 2))   # NHWC -> NCHW (module semantics)


if __name__ == "__main__":
    key = jax.random.PRNGKey(0)

    # Module config: Conv2d(in_feature=4, out_feature=8, kernel_size=3,
    #                       padding=1, stride=1, dilation=1, bias=True)
    in_feature, out_feature = 4, 8
    kernel_size = (3, 3)
    padding, stride, dilation = (1, 1), (1, 1), (1, 1)

    # Deterministic init mirroring reset_parameters(): weight ~ U(-stdv, stdv),
    # stdv = 1/sqrt(in_feature*KH*KW); bias = 0.
    n = in_feature * kernel_size[0] * kernel_size[1]
    stdv = 1.0 / math.sqrt(n)
    kw_key, kx_key = jax.random.split(key)
    weight = jax.random.uniform(
        kw_key, (out_feature, in_feature) + kernel_size,
        minval=-stdv, maxval=stdv, dtype=jnp.float32)
    bias = jnp.zeros((out_feature,), jnp.float32)

    x = jax.random.normal(kx_key, (2, in_feature, 16, 16), dtype=jnp.float32)

    out = conv2d_pallas(x, weight, bias, padding=padding, stride=stride,
                        dilation=dilation)
    out = jax.block_until_ready(out)

    # Tight check: reference on the same bf16-rounded inputs (kernel feeds the
    # MXU bf16 and accumulates in f32).
    xb = x.astype(jnp.bfloat16).astype(jnp.float32)
    wb = weight.astype(jnp.bfloat16).astype(jnp.float32)
    ref = jax.lax.conv_general_dilated(
        xb, wb, window_strides=stride,
        padding=[(padding[0], padding[0]), (padding[1], padding[1])],
        rhs_dilation=dilation,
        dimension_numbers=("NCHW", "OIHW", "NCHW"),
        precision=jax.lax.Precision.HIGHEST)
    ref = ref + bias.reshape(1, -1, 1, 1)
    assert out.shape == ref.shape, (out.shape, ref.shape)
    assert jnp.allclose(out, ref, atol=1e-3, rtol=1e-3), \
        float(jnp.max(jnp.abs(out - ref)))

    # Loose sanity check against the full-f32 reference (bf16 input rounding).
    ref_f32 = jax.lax.conv_general_dilated(
        x, weight, window_strides=stride,
        padding=[(padding[0], padding[0]), (padding[1], padding[1])],
        rhs_dilation=dilation,
        dimension_numbers=("NCHW", "OIHW", "NCHW")) + bias.reshape(1, -1, 1, 1)
    assert jnp.allclose(out, ref_f32, atol=5e-2, rtol=5e-2)

    print("KERNEL_OK")
</pallas_src>

<mosaic_0001>
module attributes {stable_mosaic.version = 11 : i64} {
  func.func @kernel(%arg0: i32, %arg1: memref<1x18x18x4xbf16, #tpu.memory_space<vmem>>, %arg2: memref<9x4x128xbf16, #tpu.memory_space<vmem>>, %arg3: memref<1x128xf32, #tpu.memory_space<vmem>>, %arg4: memref<1x256x128xf32, #tpu.memory_space<vmem>>, %arg5: memref<256x128xf32, #tpu.memory_space<vmem>>) attributes {dimension_semantics = [#tpu.dimension_semantics<parallel>], iteration_bounds = array<i64: 2>, scalar_prefetch = 0 : i64, scratch_operands = 1 : i64, tpu.core_type = #tpu.core_type<tc>, window_params = [{transform_indices = @transform_0, window_bounds = array<i64: 1, 18, 18, 4>}, {pipeline_mode = #tpu.pipeline_mode<synchronous>, transform_indices = @transform_1, window_bounds = array<i64: 9, 4, 128>}, {pipeline_mode = #tpu.pipeline_mode<synchronous>, transform_indices = @transform_2, window_bounds = array<i64: 1, 128>}, {transform_indices = @transform_3, window_bounds = array<i64: 1, 256, 128>}]} {
    %cst = arith.constant 0.000000e+00 : f32
    %0 = vector.broadcast %cst : f32 to vector<256x128xf32>
    %c0 = arith.constant 0 : index
    %c0_0 = arith.constant 0 : index
    %1 = vector.load %arg5[%c0, %c0_0] : memref<256x128xf32, #tpu.memory_space<vmem>>, vector<256x128xf32>
    tpu.vector_store %arg5[%c0, %c0_0], %0 {strides = array<i32>} : memref<256x128xf32, #tpu.memory_space<vmem>>, vector<256x128xf32>,
    %c0_1 = arith.constant 0 : index
    %c0_2 = arith.constant 0 : index
    %c0_3 = arith.constant 0 : index
    %c0_4 = arith.constant 0 : index
    %2 = vector.load %arg1[%c0_1, %c0_2, %c0_3, %c0_4] : memref<1x18x18x4xbf16, #tpu.memory_space<vmem>>, vector<1x16x16x4xbf16>
    %3 = vector.shape_cast %2 : vector<1x16x16x4xbf16> to vector<16x16x4xbf16>
    %4 = vector.shape_cast %3 : vector<16x16x4xbf16> to vector<256x4xbf16>
    %c0_5 = arith.constant 0 : index
    %c0_6 = arith.constant 0 : index
    %5 = vector.load %arg5[%c0_5, %c0_6] : memref<256x128xf32, #tpu.memory_space<vmem>>, vector<256x128xf32>
    %c0_7 = arith.constant 0 : index
    %c0_8 = arith.constant 0 : index
    %c0_9 = arith.constant 0 : index
    %6 = vector.load %arg2[%c0_7, %c0_8, %c0_9] : memref<9x4x128xbf16, #tpu.memory_space<vmem>>, vector<1x4x128xbf16>
    %7 = vector.shape_cast %6 : vector<1x4x128xbf16> to vector<4x128xbf16>
    %cst_10 = arith.constant dense<0.000000e+00> : vector<256x128xf32>
    %8 = tpu.matmul %4, %7, %cst_10 {dimension_numbers = #tpu.dot_dimension_numbers<[1], [0], [0], [1], [0, 0, 1, 1], [], []>} : vector<256x4xbf16>, vector<4x128xbf16>, vector<256x128xf32> -> vector<256x128xf32>
    %9 = arith.addf %5, %8 : vector<256x128xf32>
    %c0_11 = arith.constant 0 : index
    %c0_12 = arith.constant 0 : index
    %10 = vector.load %arg5[%c0_11, %c0_12] : memref<256x128xf32, #tpu.memory_space<vmem>>, vector<256x128xf32>
    tpu.vector_store %arg5[%c0_11, %c0_12], %9 {strides = array<i32>} : memref<256x128xf32, #tpu.memory_space<vmem>>, vector<256x128xf32>,
    %c0_13 = arith.constant 0 : index
    %c0_14 = arith.constant 0 : index
    %c1 = arith.constant 1 : index
    %c0_15 = arith.constant 0 : index
    %11 = vector.load %arg1[%c0_13, %c0_14, %c1, %c0_15] : memref<1x18x18x4xbf16, #tpu.memory_space<vmem>>, vector<1x16x16x4xbf16>
    %12 = vector.shape_cast %11 : vector<1x16x16x4xbf16> to vector<16x16x4xbf16>
    %13 = vector.shape_cast %12 : vector<16x16x4xbf16> to vector<256x4xbf16>
    %c0_16 = arith.constant 0 : index
    %c0_17 = arith.constant 0 : index
    %14 = vector.load %arg5[%c0_16, %c0_17] : memref<256x128xf32, #tpu.memory_space<vmem>>, vector<256x128xf32>
    %c1_18 = arith.constant 1 : index
    %c0_19 = arith.constant 0 : index
    %c0_20 = arith.constant 0 : index
    %15 = vector.load %arg2[%c1_18, %c0_19, %c0_20] : memref<9x4x128xbf16, #tpu.memory_space<vmem>>, vector<1x4x128xbf16>
    %16 = vector.shape_cast %15 : vector<1x4x128xbf16> to vector<4x128xbf16>
    %cst_21 = arith.constant dense<0.000000e+00> : vector<256x128xf32>
    %17 = tpu.matmul %13, %16, %cst_21 {dimension_numbers = #tpu.dot_dimension_numbers<[1], [0], [0], [1], [0, 0, 1, 1], [], []>} : vector<256x4xbf16>, vector<4x128xbf16>, vector<256x128xf32> -> vector<256x128xf32>
    %18 = arith.addf %14, %17 : vector<256x128xf32>
    %c0_22 = arith.constant 0 : index
    %c0_23 = arith.constant 0 : index
    %19 = vector.load %arg5[%c0_22, %c0_23] : memref<256x128xf32, #tpu.memory_space<vmem>>, vector<256x128xf32>
    tpu.vector_store %arg5[%c0_22, %c0_23], %18 {strides = array<i32>} : memref<256x128xf32, #tpu.memory_space<vmem>>, vector<256x128xf32>,
    %c0_24 = arith.constant 0 : index
    %c0_25 = arith.constant 0 : index
    %c2 = arith.constant 2 : index
    %c0_26 = arith.constant 0 : index
    %20 = vector.load %arg1[%c0_24, %c0_25, %c2, %c0_26] : memref<1x18x18x4xbf16, #tpu.memory_space<vmem>>, vector<1x16x16x4xbf16>
    %21 = vector.shape_cast %20 : vector<1x16x16x4xbf16> to vector<16x16x4xbf16>
    %22 = vector.shape_cast %21 : vector<16x16x4xbf16> to vector<256x4xbf16>
    %c0_27 = arith.constant 0 : index
    %c0_28 = arith.constant 0 : index
    %23 = vector.load %arg5[%c0_27, %c0_28] : memref<256x128xf32, #tpu.memory_space<vmem>>, vector<256x128xf32>
    %c2_29 = arith.constant 2 : index
    %c0_30 = arith.constant 0 : index
    %c0_31 = arith.constant 0 : index
    %24 = vector.load %arg2[%c2_29, %c0_30, %c0_31] : memref<9x4x128xbf16, #tpu.memory_space<vmem>>, vector<1x4x128xbf16>
    %25 = vector.shape_cast %24 : vector<1x4x128xbf16> to vector<4x128xbf16>
    %cst_32 = arith.constant dense<0.000000e+00> : vector<256x128xf32>
    %26 = tpu.matmul %22, %25, %cst_32 {dimension_numbers = #tpu.dot_dimension_numbers<[1], [0], [0], [1], [0, 0, 1, 1], [], []>} : vector<256x4xbf16>, vector<4x128xbf16>, vector<256x128xf32> -> vector<256x128xf32>
    %27 = arith.addf %23, %26 : vector<256x128xf32>
    %c0_33 = arith.constant 0 : index
    %c0_34 = arith.constant 0 : index
    %28 = vector.load %arg5[%c0_33, %c0_34] : memref<256x128xf32, #tpu.memory_space<vmem>>, vector<256x128xf32>
    tpu.vector_store %arg5[%c0_33, %c0_34], %27 {strides = array<i32>} : memref<256x128xf32, #tpu.memory_space<vmem>>, vector<256x128xf32>,
    %c0_35 = arith.constant 0 : index
    %c1_36 = arith.constant 1 : index
    %c0_37 = arith.constant 0 : index
    %c0_38 = arith.constant 0 : index
    %29 = vector.load %arg1[%c0_35, %c1_36, %c0_37, %c0_38] : memref<1x18x18x4xbf16, #tpu.memory_space<vmem>>, vector<1x16x16x4xbf16>
    %30 = vector.shape_cast %29 : vector<1x16x16x4xbf16> to vector<16x16x4xbf16>
    %31 = vector.shape_cast %30 : vector<16x16x4xbf16> to vector<256x4xbf16>
    %c0_39 = arith.constant 0 : index
    %c0_40 = arith.constant 0 : index
    %32 = vector.load %arg5[%c0_39, %c0_40] : memref<256x128xf32, #tpu.memory_space<vmem>>, vector<256x128xf32>
    %c3 = arith.constant 3 : index
    %c0_41 = arith.constant 0 : index
    %c0_42 = arith.constant 0 : index
    %33 = vector.load %arg2[%c3, %c0_41, %c0_42] : memref<9x4x128xbf16, #tpu.memory_space<vmem>>, vector<1x4x128xbf16>
    %34 = vector.shape_cast %33 : vector<1x4x128xbf16> to vector<4x128xbf16>
    %cst_43 = arith.constant dense<0.000000e+00> : vector<256x128xf32>
    %35 = tpu.matmul %31, %34, %cst_43 {dimension_numbers = #tpu.dot_dimension_numbers<[1], [0], [0], [1], [0, 0, 1, 1], [], []>} : vector<256x4xbf16>, vector<4x128xbf16>, vector<256x128xf32> -> vector<256x128xf32>
    %36 = arith.addf %32, %35 : vector<256x128xf32>
    %c0_44 = arith.constant 0 : index
    %c0_45 = arith.constant 0 : index
    %37 = vector.load %arg5[%c0_44, %c0_45] : memref<256x128xf32, #tpu.memory_space<vmem>>, vector<256x128xf32>
    tpu.vector_store %arg5[%c0_44, %c0_45], %36 {strides = array<i32>} : memref<256x128xf32, #tpu.memory_space<vmem>>, vector<256x128xf32>,
    %c0_46 = arith.constant 0 : index
    %c1_47 = arith.constant 1 : index
    %c1_48 = arith.constant 1 : index
    %c0_49 = arith.constant 0 : index
    %38 = vector.load %arg1[%c0_46, %c1_47, %c1_48, %c0_49] : memref<1x18x18x4xbf16, #tpu.memory_space<vmem>>, vector<1x16x16x4xbf16>
    %39 = vector.shape_cast %38 : vector<1x16x16x4xbf16> to vector<16x16x4xbf16>
    %40 = vector.shape_cast %39 : vector<16x16x4xbf16> to vector<256x4xbf16>
    %c0_50 = arith.constant 0 : index
    %c0_51 = arith.constant 0 : index
    %41 = vector.load %arg5[%c0_50, %c0_51] : memref<256x128xf32, #tpu.memory_space<vmem>>, vector<256x128xf32>
    %c4 = arith.constant 4 : index
    %c0_52 = arith.constant 0 : index
    %c0_53 = arith.constant 0 : index
    %42 = vector.load %arg2[%c4, %c0_52, %c0_53] : memref<9x4x128xbf16, #tpu.memory_space<vmem>>, vector<1x4x128xbf16>
    %43 = vector.shape_cast %42 : vector<1x4x128xbf16> to vector<4x128xbf16>
    %cst_54 = arith.constant dense<0.000000e+00> : vector<256x128xf32>
    %44 = tpu.matmul %40, %43, %cst_54 {dimension_numbers = #tpu.dot_dimension_numbers<[1], [0], [0], [1], [0, 0, 1, 1], [], []>} : vector<256x4xbf16>, vector<4x128xbf16>, vector<256x128xf32> -> vector<256x128xf32>
    %45 = arith.addf %41, %44 : vector<256x128xf32>
    %c0_55 = arith.constant 0 : index
    %c0_56 = arith.constant 0 : index
    %46 = vector.load %arg5[%c0_55, %c0_56] : memref<256x128xf32, #tpu.memory_space<vmem>>, vector<256x128xf32>
    tpu.vector_store %arg5[%c0_55, %c0_56], %45 {strides = array<i32>} : memref<256x128xf32, #tpu.memory_space<vmem>>, vector<256x128xf32>,
    %c0_57 = arith.constant 0 : index
    %c1_58 = arith.constant 1 : index
    %c2_59 = arith.constant 2 : index
    %c0_60 = arith.constant 0 : index
    %47 = vector.load %arg1[%c0_57, %c1_58, %c2_59, %c0_60] : memref<1x18x18x4xbf16, #tpu.memory_space<vmem>>, vector<1x16x16x4xbf16>
    %48 = vector.shape_cast %47 : vector<1x16x16x4xbf16> to vector<16x16x4xbf16>
    %49 = vector.shape_cast %48 : vector<16x16x4xbf16> to vector<256x4xbf16>
    %c0_61 = arith.constant 0 : index
    %c0_62 = arith.constant 0 : index
    %50 = vector.load %arg5[%c0_61, %c0_62] : memref<256x128xf32, #tpu.memory_space<vmem>>, vector<256x128xf32>
    %c5 = arith.constant 5 : index
    %c0_63 = arith.constant 0 : index
    %c0_64 = arith.constant 0 : index
    %51 = vector.load %arg2[%c5, %c0_63, %c0_64] : memref<9x4x128xbf16, #tpu.memory_space<vmem>>, vector<1x4x128xbf16>
    %52 = vector.shape_cast %51 : vector<1x4x128xbf16> to vector<4x128xbf16>
    %cst_65 = arith.constant dense<0.000000e+00> : vector<256x128xf32>
    %53 = tpu.matmul %49, %52, %cst_65 {dimension_numbers = #tpu.dot_dimension_numbers<[1], [0], [0], [1], [0, 0, 1, 1], [], []>} : vector<256x4xbf16>, vector<4x128xbf16>, vector<256x128xf32> -> vector<256x128xf32>
    %54 = arith.addf %50, %53 : vector<256x128xf32>
    %c0_66 = arith.constant 0 : index
    %c0_67 = arith.constant 0 : index
    %55 = vector.load %arg5[%c0_66, %c0_67] : memref<256x128xf32, #tpu.memory_space<vmem>>, vector<256x128xf32>
    tpu.vector_store %arg5[%c0_66, %c0_67], %54 {strides = array<i32>} : memref<256x128xf32, #tpu.memory_space<vmem>>, vector<256x128xf32>,
    %c0_68 = arith.constant 0 : index
    %c2_69 = arith.constant 2 : index
    %c0_70 = arith.constant 0 : index
    %c0_71 = arith.constant 0 : index
    %56 = vector.load %arg1[%c0_68, %c2_69, %c0_70, %c0_71] : memref<1x18x18x4xbf16, #tpu.memory_space<vmem>>, vector<1x16x16x4xbf16>
    %57 = vector.shape_cast %56 : vector<1x16x16x4xbf16> to vector<16x16x4xbf16>
    %58 = vector.shape_cast %57 : vector<16x16x4xbf16> to vector<256x4xbf16>
    %c0_72 = arith.constant 0 : index
    %c0_73 = arith.constant 0 : index
    %59 = vector.load %arg5[%c0_72, %c0_73] : memref<256x128xf32, #tpu.memory_space<vmem>>, vector<256x128xf32>
    %c6 = arith.constant 6 : index
    %c0_74 = arith.constant 0 : index
    %c0_75 = arith.constant 0 : index
    %60 = vector.load %arg2[%c6, %c0_74, %c0_75] : memref<9x4x128xbf16, #tpu.memory_space<vmem>>, vector<1x4x128xbf16>
    %61 = vector.shape_cast %60 : vector<1x4x128xbf16> to vector<4x128xbf16>
    %cst_76 = arith.constant dense<0.000000e+00> : vector<256x128xf32>
    %62 = tpu.matmul %58, %61, %cst_76 {dimension_numbers = #tpu.dot_dimension_numbers<[1], [0], [0], [1], [0, 0, 1, 1], [], []>} : vector<256x4xbf16>, vector<4x128xbf16>, vector<256x128xf32> -> vector<256x128xf32>
    %63 = arith.addf %59, %62 : vector<256x128xf32>
    %c0_77 = arith.constant 0 : index
    %c0_78 = arith.constant 0 : index
    %64 = vector.load %arg5[%c0_77, %c0_78] : memref<256x128xf32, #tpu.memory_space<vmem>>, vector<256x128xf32>
    tpu.vector_store %arg5[%c0_77, %c0_78], %63 {strides = array<i32>} : memref<256x128xf32, #tpu.memory_space<vmem>>, vector<256x128xf32>,
    %c0_79 = arith.constant 0 : index
    %c2_80 = arith.constant 2 : index
    %c1_81 = arith.constant 1 : index
    %c0_82 = arith.constant 0 : index
    %65 = vector.load %arg1[%c0_79, %c2_80, %c1_81, %c0_82] : memref<1x18x18x4xbf16, #tpu.memory_space<vmem>>, vector<1x16x16x4xbf16>
    %66 = vector.shape_cast %65 : vector<1x16x16x4xbf16> to vector<16x16x4xbf16>
    %67 = vector.shape_cast %66 : vector<16x16x4xbf16> to vector<256x4xbf16>
    %c0_83 = arith.constant 0 : index
    %c0_84 = arith.constant 0 : index
    %68 = vector.load %arg5[%c0_83, %c0_84] : memref<256x128xf32, #tpu.memory_space<vmem>>, vector<256x128xf32>
    %c7 = arith.constant 7 : index
    %c0_85 = arith.constant 0 : index
    %c0_86 = arith.constant 0 : index
    %69 = vector.load %arg2[%c7, %c0_85, %c0_86] : memref<9x4x128xbf16, #tpu.memory_space<vmem>>, vector<1x4x128xbf16>
    %70 = vector.shape_cast %69 : vector<1x4x128xbf16> to vector<4x128xbf16>
    %cst_87 = arith.constant dense<0.000000e+00> : vector<256x128xf32>
    %71 = tpu.matmul %67, %70, %cst_87 {dimension_numbers = #tpu.dot_dimension_numbers<[1], [0], [0], [1], [0, 0, 1, 1], [], []>} : vector<256x4xbf16>, vector<4x128xbf16>, vector<256x128xf32> -> vector<256x128xf32>
    %72 = arith.addf %68, %71 : vector<256x128xf32>
    %c0_88 = arith.constant 0 : index
    %c0_89 = arith.constant 0 : index
    %73 = vector.load %arg5[%c0_88, %c0_89] : memref<256x128xf32, #tpu.memory_space<vmem>>, vector<256x128xf32>
    tpu.vector_store %arg5[%c0_88, %c0_89], %72 {strides = array<i32>} : memref<256x128xf32, #tpu.memory_space<vmem>>, vector<256x128xf32>,
    %c0_90 = arith.constant 0 : index
    %c2_91 = arith.constant 2 : index
    %c2_92 = arith.constant 2 : index
    %c0_93 = arith.constant 0 : index
    %74 = vector.load %arg1[%c0_90, %c2_91, %c2_92, %c0_93] : memref<1x18x18x4xbf16, #tpu.memory_space<vmem>>, vector<1x16x16x4xbf16>
    %75 = vector.shape_cast %74 : vector<1x16x16x4xbf16> to vector<16x16x4xbf16>
    %76 = vector.shape_cast %75 : vector<16x16x4xbf16> to vector<256x4xbf16>
    %c0_94 = arith.constant 0 : index
    %c0_95 = arith.constant 0 : index
    %77 = vector.load %arg5[%c0_94, %c0_95] : memref<256x128xf32, #tpu.memory_space<vmem>>, vector<256x128xf32>
    %c8 = arith.constant 8 : index
    %c0_96 = arith.constant 0 : index
    %c0_97 = arith.constant 0 : index
    %78 = vector.load %arg2[%c8, %c0_96, %c0_97] : memref<9x4x128xbf16, #tpu.memory_space<vmem>>, vector<1x4x128xbf16>
    %79 = vector.shape_cast %78 : vector<1x4x128xbf16> to vector<4x128xbf16>
    %cst_98 = arith.constant dense<0.000000e+00> : vector<256x128xf32>
    %80 = tpu.matmul %76, %79, %cst_98 {dimension_numbers = #tpu.dot_dimension_numbers<[1], [0], [0], [1], [0, 0, 1, 1], [], []>} : vector<256x4xbf16>, vector<4x128xbf16>, vector<256x128xf32> -> vector<256x128xf32>
    %81 = arith.addf %77, %80 : vector<256x128xf32>
    %c0_99 = arith.constant 0 : index
    %c0_100 = arith.constant 0 : index
    %82 = vector.load %arg5[%c0_99, %c0_100] : memref<256x128xf32, #tpu.memory_space<vmem>>, vector<256x128xf32>
    tpu.vector_store %arg5[%c0_99, %c0_100], %81 {strides = array<i32>} : memref<256x128xf32, #tpu.memory_space<vmem>>, vector<256x128xf32>,
    %c0_101 = arith.constant 0 : index
    %c0_102 = arith.constant 0 : index
    %83 = vector.load %arg5[%c0_101, %c0_102] : memref<256x128xf32, #tpu.memory_space<vmem>>, vector<256x128xf32>
    %c0_103 = arith.constant 0 : index
    %c0_104 = arith.constant 0 : index
    %84 = vector.load %arg3[%c0_103, %c0_104] : memref<1x128xf32, #tpu.memory_space<vmem>>, vector<1x128xf32>
    %85 = vector.broadcast %84 : vector<1x128xf32> to vector<256x128xf32>
    %86 = arith.addf %83, %85 : vector<256x128xf32>
    %c0_105 = arith.constant 0 : index
    %c0_106 = arith.constant 0 : index
    %c0_107 = arith.constant 0 : index
    %87 = vector.load %arg4[%c0_105, %c0_106, %c0_107] : memref<1x256x128xf32, #tpu.memory_space<vmem>>, vector<1x256x128xf32>
    %88 = vector.shape_cast %87 : vector<1x256x128xf32> to vector<256x128xf32>
    %89 = vector.shape_cast %86 : vector<256x128xf32> to vector<1x256x128xf32>
    tpu.vector_store %arg4[%c0_105, %c0_106, %c0_107], %89 {strides = array<i32>} : memref<1x256x128xf32, #tpu.memory_space<vmem>>, vector<1x256x128xf32>,
    return
  }
  func.func @transform_0(%arg0: i32) -> (i32, i32, i32, i32) {
    %c0_i32 = arith.constant 0 : i32
    %c0_i32_0 = arith.constant 0 : i32
    %c0_i32_1 = arith.constant 0 : i32
    %c0_i32_2 = arith.constant 0 : i32
    return %arg0, %c0_i32, %c0_i32_0, %c0_i32_1 : i32, i32, i32, i32
  }
  func.func @transform_1(%arg0: i32) -> (i32, i32, i32) {
    %c0_i32 = arith.constant 0 : i32
    %c0_i32_0 = arith.constant 0 : i32
    %c0_i32_1 = arith.constant 0 : i32
    %c0_i32_2 = arith.constant 0 : i32
    return %c0_i32, %c0_i32_0, %c0_i32_1 : i32, i32, i32
  }
  func.func @transform_2(%arg0: i32) -> (i32, i32) {
    %c0_i32 = arith.constant 0 : i32
    %c0_i32_0 = arith.constant 0 : i32
    %c0_i32_1 = arith.constant 0 : i32
    return %c0_i32, %c0_i32_0 : i32, i32
  }
  func.func @transform_3(%arg0: i32) -> (i32, i32, i32) {
    %c0_i32 = arith.constant 0 : i32
    %c0_i32_0 = arith.constant 0 : i32
    %c0_i32_1 = arith.constant 0 : i32
    return %arg0, %c0_i32, %c0_i32_0 : i32, i32, i32
  }
}

</mosaic_0001>

<bundles_post_ra>
// kernel: conv2d_pallas.1
= control target key start
LH: loop header
LB: loop body
LE: loop exit
PB: predicated region body
PF: predicated region fallthrough
CT: control target
= control target key end

     0   :  { %s6873_s12 = smov 0   ;;  %s8589_s0 = inlined_call_operand.vmem [shape: bf16[2,18,18,4], index: 0, kind: input, shape index: {}]   ;;  %s8590_s1 = inlined_call_operand.vmem [shape: bf16[9,4,128], index: 1, kind: input, shape index: {}]   ;;  %s8591_s2 = inlined_call_operand.vmem [shape: f32[1,128], index: 2, kind: input, shape index: {}]   ;;  %s8592_s3 = inlined_call_operand.vmem [shape: f32[2,256,128], index: 3, kind: output, shape index: {}]  }
   0x1 LB: > { %s5705_s13 = sadd.s32 4294967295, %s6851_s12   ;;  %p5709_p0 = scmp.ge.s32.totalorder %s6851_s12, 1  ;;  %s6851_s12 = sphi %s6873_s12, %s13_s12  }
   0x2   : > { %p137_p1 = scmp.lt.s32.totalorder %s6851_s12, 3 }
   0x4   : > { %p138_p2 = pnand %p5709_p0, %p137_p1 }
   0x6   : > { %141 = sbr.rel (%p138_p2) target bundleno = 546 (0x222), region = 32 }
   0xb   : > { %v268_v0 = vld [vmem:[%s8590_s1] sm:$0x3]  ;;  %vm398_vm0 = vcmask 1041408   ;;  %p161_p3 = scmp.lt.s32.totalorder %s5705_s13, 1  ;;  %v5745_v2 = vld [vmem:[%s8590_s1 + $0x2] sm:$0x3] }
   0xc   : > { %6779 = vmatprep.subr.msk.bf16.mxu1 %vm398_vm0, %v268_v0  ;;  %6778 = vmatprep.subr.msk.bf16.mxu0 %vm398_vm0, %v268_v0  ;;  %v400_v1 = vsel %vm398_vm0, %v268_v0, 0  ;;  %v5794_v3 = vld [vmem:[%s8590_s1 + $0x4] sm:$0x3]  ;;  %vm349_vm1 = vcmask 31744   ;;  %v5859_v8 = vld [vmem:[%s8590_s1 + $0x6] sm:$0x3] }
   0xd   : > { %6777 = vmatpush3.bf16.msra.mxu1 %v400_v1  ;;  %6471 = vmatpush3.bf16.msra.mxu0 %v400_v1  ;;  %s8698_s13 = smov (!%p161_p3, %s5705_s13), 1  ;;  %v1762_v7 = vsel %vm398_vm0, %v5794_v3, 0  ;;  %v1193_v10 = vsel %vm398_vm0, %v5745_v2, 0  ;;  %v5940_v11 = vld [vmem:[%s8590_s1 + $0x8] sm:$0x3]  ;;  %vm1516_vm2 = vcmask 1042432  }
   0xe   : > { %6780 = vmatprep.subr.msk.bf16.mxu1 %vm398_vm0, %v5745_v2  ;;  %6781 = vmatprep.subr.msk.bf16.mxu0 %vm398_vm0, %v5794_v3  ;;  %s6788_s20 = smul.u32 216, %s8698_s13  ;;  %vm675_vm3 = vsmask.f32 3328  ;;  %vm676_vm4 = vsmask.f32 7440  ;;  %vm1517_vm5 = vcmask 1046532  }
   0xf   : > { %v6933_v18 = vld [vmem:[%s8590_s1 + $0xa] sm:$0x3]  ;;  %v6938_v19 = vsel %vm398_vm0, %v5859_v8, 0  ;;  %v6943_v21 = vsel %vm398_vm0, %v5940_v11, 0  ;;  %vm6960_vm6 = vmor %vm1516_vm2, %vm1517_vm5  ;;  %s6316_s9 = sshll.u32 %s8698_s13, 8 }
  0x10   : > { %s6901_s23 = scalar_lea.vmem %s8589_s0, %s6788_s20  ;;  %v6949_v24 = vsel %vm398_vm0, %v6933_v18, 0  ;;  %vm6974_vm7 = vmor %vm675_vm3, %vm676_vm4  ;;  %s8458_s15 = scalar_lea.vmem %s8592_s3, %s6316_s9 }
  0x11   : > { %v6797_v4 = vld [vmem:[%s6901_s23] sm:$0xff]   ;;  %v6799_v6 = vld [vmem:[%s6901_s23 + $0xc] sm:$0xff]   ;;  %v6801_v12 = vld [vmem:[%s6901_s23 + $0x18] sm:$0xff]  }
  0x12   : > { %v6798_v5 = vld [vmem:[%s6901_s23 + $0x60] sm:$0xff]   ;;  %6472 = vmatprep.mubr.msk.bf16.mxu0 %vm349_vm1, %v6797_v4  ;;  %v6800_v9 = vld [vmem:[%s6901_s23 + $0x6c] sm:$0xff]   ;;  %v6802_v13 = vld [vmem:[%s6901_s23 + $0x78] sm:$0xff]  }
  0x13   : > { %6488 = vmatprep.mubr.msk.bf16.mxu1 %vm349_vm1, %v6798_v5  ;;  %6473 = vmatmul.mubr.msk.bf16.vlgmr.msra.gmra.mxu0 %vm349_vm1, %v6799_v6  ;;  %v6803_v14 = vld [vmem:[%s6901_s23 + $0x24] sm:$0xff]   ;;  %v6805_v16 = vld [vmem:[%s6901_s23 + $0x30] sm:$0xff]   ;;  %v6807_v20 = vld [vmem:[%s6901_s23 + $0x3c] sm:$0xff]  }
  0x14   : > { %6489 = vmatmul.mubr.msk.bf16.vlgmr.msra.gmra.mxu1 %vm349_vm1, %v6800_v9  ;;  %6539 = vmatpush3.bf16.msra.mxu0 %v1762_v7  ;;  %v6804_v15 = vld [vmem:[%s6901_s23 + $0x84] sm:$0xff]   ;;  %v6806_v17 = vld [vmem:[%s6901_s23 + $0x90] sm:$0xff]   ;;  %v6808_v22 = vld [vmem:[%s6901_s23 + $0x9c] sm:$0xff]  }
  0x15   : > { %6505 = vmatpush3.bf16.msra.mxu1 %v1193_v10  ;;  %6476 = vmatprep.mubr.msk.bf16.mxu0 %vm349_vm1, %v6801_v12  ;;  %v6809_v23 = vld [vmem:[%s6901_s23 + $0x48] sm:$0xff]   ;;  %v627_v26 = vld [vmem:[%s6901_s23] sm:$0xf]  ;;  %v628_v27 = vld [vmem:[%s6901_s23 + $0x4] sm:$0xf] }
  0x16   : > { %6492 = vmatprep.mubr.msk.bf16.mxu1 %vm349_vm1, %v6802_v13  ;;  %6782 = vmatprep.subr.msk.bf16.mxu1 %vm398_vm0, %v5859_v8  ;;  %v6810_v25 = vld [vmem:[%s6901_s23 + $0xa8] sm:$0xff]   ;;  %v679_v29 = vshrl.u32 %v627_v26, 16  ;;  %v682_v30 = vshll.u32 %v627_v26, 16  ;;  %v688_v31 = vshll.u32 %v628_v27, 16  ;;  %v692_v32 = vshrl.u32 %v628_v27, 16  ;;  %v6811_v2 = vld [vmem:[%s6901_s23 + $0x54] sm:$0xff]  }
  0x17   : > { %6783 = vmatprep.subr.msk.bf16.mxu0 %vm398_vm0, %v5940_v11  ;;  %v629_v28 = vld [vmem:[%s6901_s23 + $0x8] sm:$0x1]  ;;  %v1420_v33 = vld [vmem:[%s6901_s23] sm:$0xe]  ;;  %v1421_v35 = vld [vmem:[%s6901_s23 + $0x4] sm:$0xf] }
  0x18   : > { %v698_v34 = vshll.u32 %v629_v28, 16  ;;  %v1422_v36 = vld [vmem:[%s6901_s23 + $0x8] sm:$0x1]  ;;  %v5778_v37 = vrot.slane %v1420_v33, 9  ;;  %v681_v38 = vrot.slane %v679_v29, 4  ;;  %v684_v39 = vrot.slane %v682_v30, 5 }
  0x19   : > { %v690_v40 = vrot.slane %v688_v31, 5  ;;  %v694_v41 = vrot.slane %v692_v32, 4  ;;  %v630_v43 = vld [vmem:[%s6901_s23 + $0xc] sm:$0xf]  ;;  %v1521_v45 = vrot.slane %v1421_v35, 5  ;;  %v1524_v46 = vrot.slane %v1422_v36, 5 }
  0x1a   : > { %v700_v44 = vrot.slane %v698_v34, 5  ;;  %v631_v47 = vld [vmem:[%s6901_s23 + $0x10] sm:$0xf]  ;;  %v703_v48 = vshrl.u32 %v630_v43, 16  ;;  %v685_v49 = vor.u32 %v684_v39, %v681_v38  ;;  %v632_v51 = vld [vmem:[%s6901_s23 + $0x14] sm:$0x1] }
  0x1b   : > { %6477 = vmatmul.mubr.msk.bf16.gmra.mxu0 %vm349_vm1, %v6803_v14  ;;  %v695_v50 = vor.u32 %v694_v41, %v690_v40  ;;  %v706_v52 = vshll.u32 %v630_v43, 16  ;;  %v712_v53 = vshll.u32 %v631_v47, 16  ;;  %v1423_v54 = vld [vmem:[%s6901_s23 + $0xc] sm:$0xe]  ;;  %v1522_v56 = vsel %vm6960_vm6, %v5778_v37, %v1521_v45  ;;  %v1424_v60 = vld [vmem:[%s6901_s23 + $0x10] sm:$0xf] }
  0x1c   : > { %6493 = vmatmul.mubr.msk.bf16.gmra.mxu1 %vm349_vm1, %v6804_v15  ;;  %6480 = vmatprep.mubr.msk.bf16.mxu0 %vm349_vm1, %v6805_v16  ;;  %v1523_v57 = vrot.slane %v1521_v45, 4  ;;  %v705_v58 = vrot.slane %v703_v48, 4  ;;  %v716_v59 = vshrl.u32 %v631_v47, 16  ;;  %v686_v61 = vrot.slane %v685_v49, 4  ;;  %v1425_v1 = vld [vmem:[%s6901_s23 + $0x14] sm:$0x1] }
  0x1d   : > { %6496 = vmatprep.mubr.msk.bf16.mxu1 %vm349_vm1, %v6806_v17  ;;  %v696_v62 = vrot.slane %v695_v50, 4  ;;  %v708_v63 = vrot.slane %v706_v52, 5  ;;  %v714_v0 = vrot.slane %v712_v53, 5  ;;  %v722_v5 = vshll.u32 %v632_v51, 16  ;;  %v633_v7 = vld [vmem:[%s6901_s23 + $0x18] sm:$0xf] }
  0x1e   : > { %v1525_v3 = vsel %vm6960_vm6, %v1523_v57, %v1524_v46  ;;  %v718_v4 = vrot.slane %v716_v59, 4  ;;  %v5779_v6 = vrot.slane %v1423_v54, 9  ;;  %v6812_v8 = vld [vmem:[%s6901_s23 + $0xb4] sm:$0xff]   ;;  %v691_v9 = vsel %vm6974_vm7, %v686_v61, %v690_v40  ;;  %v634_v13 = vld [vmem:[%s6901_s23 + $0x1c] sm:$0xf] }
  0x1f   : > { %v701_v10 = vsel %vm6974_vm7, %v696_v62, %v700_v44  ;;  %v5795_v11 = vcombine.low %v1522_v56, %v1525_v3  ;;  %v709_v12 = vor.u32 %v708_v63, %v705_v58  ;;  %v724_v16 = vrot.slane %v722_v5, 5  ;;  %v1426_v27 = vld [vmem:[%s6901_s23 + $0x18] sm:$0xe]  ;;  %v1427_v32 = vld [vmem:[%s6901_s23 + $0x1c] sm:$0xf] }
  0x20   : > { %v5746_v14 = vcombine.low %v691_v9, %v701_v10  ;;  %v719_v15 = vor.u32 %v718_v4, %v714_v0  ;;  %v1528_v17 = vrot.slane %v1424_v60, 5  ;;  %v730_v26 = vshll.u32 %v633_v7, 16  ;;  %v1428_v37 = vld [vmem:[%s6901_s23 + $0x20] sm:$0x1]  ;;  %v636_v43 = vld [vmem:[%s6901_s23 + $0x24] sm:$0xf] }
  0x21   : > { %v736_v31 = vshll.u32 %v634_v13, 16  ;;  %v740_v36 = vshrl.u32 %v634_v13, 16  ;;  %v637_v48 = vld [vmem:[%s6901_s23 + $0x28] sm:$0xf]  ;;  %v5780_v50 = vrot.slane %v1426_v27, 9  ;;  %v1535_v51 = vrot.slane %v1427_v32, 5 }
  0x22   : > { %v720_v28 = vrot.slane %v719_v15, 4  ;;  %v1529_v29 = vsel %vm6960_vm6, %v5779_v6, %v1528_v17  ;;  %v1530_v30 = vrot.slane %v1528_v17, 4  ;;  %v732_v35 = vrot.slane %v730_v26, 5  ;;  %v638_v53 = vld [vmem:[%s6901_s23 + $0x2c] sm:$0x1] }
  0x23   : > { %6481 = vmatmul.mubr.msk.bf16.gmra.mxu0 %vm349_vm1, %v6807_v20  ;;  %v635_v20 = vld [vmem:[%s6901_s23 + $0x20] sm:$0x1]  ;;  %v738_v40 = vrot.slane %v736_v31, 5  ;;  %v742_v47 = vrot.slane %v740_v36, 4  ;;  %v1538_v52 = vrot.slane %v1428_v37, 5  ;;  %v751_v57 = vshrl.u32 %v636_v43, 16 }
  0x24   : > { %6497 = vmatmul.mubr.msk.bf16.gmra.mxu1 %vm349_vm1, %v6808_v22  ;;  %6484 = vmatprep.mubr.msk.bf16.mxu0 %vm349_vm1, %v6809_v23  ;;  %v710_v22 = vrot.slane %v709_v12, 4  ;;  %v1531_v23 = vrot.slane %v1425_v1, 5  ;;  %v725_v38 = vsel %vm6974_vm7, %v720_v28, %v724_v16  ;;  %v746_v41 = vshll.u32 %v635_v20, 16  ;;  %v1429_v59 = vld [vmem:[%s6901_s23 + $0x24] sm:$0xe] }
  0x25   : > { %6500 = vmatprep.mubr.msk.bf16.mxu1 %vm349_vm1, %v6810_v25  ;;  %v727_v25 = vshrl.u32 %v633_v7, 16  ;;  %v743_v56 = vor.u32 %v742_v47, %v738_v40  ;;  %v754_v58 = vshll.u32 %v636_v43, 16  ;;  %v1536_v60 = vsel %vm6960_vm6, %v5780_v50, %v1535_v51  ;;  %v1431_v5 = vld [vmem:[%s6901_s23 + $0x2c] sm:$0x1]  ;;  %v639_v10 = vld [vmem:[%s6901_s23 + $0x30] sm:$0xf] }
  0x26   : > { %v715_v33 = vsel %vm6974_vm7, %v710_v22, %v714_v0  ;;  %v1532_v39 = vsel %vm6960_vm6, %v1530_v30, %v1531_v23  ;;  %v748_v49 = vrot.slane %v746_v41, 5  ;;  %v1537_v61 = vrot.slane %v1535_v51, 4  ;;  %v1430_v0 = vld [vmem:[%s6901_s23 + $0x28] sm:$0xf]  ;;  %v640_v15 = vld [vmem:[%s6901_s23 + $0x34] sm:$0xf] }
  0x27   : > { %v729_v34 = vrot.slane %v727_v25, 4  ;;  %v5747_v44 = vcombine.low %v715_v33, %v725_v38  ;;  %v5796_v45 = vcombine.low %v1529_v29, %v1532_v39  ;;  %v760_v62 = vshll.u32 %v637_v48, 16  ;;  %v641_v23 = vld [vmem:[%s6901_s23 + $0x38] sm:$0x1]  ;;  %v1432_v28 = vld [vmem:[%s6901_s23 + $0x30] sm:$0xe] }
  0x28   : > { %v764_v63 = vshrl.u32 %v637_v48, 16  ;;  %v753_v3 = vrot.slane %v751_v57, 4  ;;  %v756_v4 = vrot.slane %v754_v58, 5  ;;  %v1539_v6 = vsel %vm6960_vm6, %v1537_v61, %v1538_v52  ;;  %v1433_v32 = vld [vmem:[%s6901_s23 + $0x34] sm:$0xf] }
  0x29   : > { %v733_v46 = vor.u32 %v732_v35, %v729_v34  ;;  %v762_v7 = vrot.slane %v760_v62, 5  ;;  %v770_v9 = vshll.u32 %v638_v53, 16  ;;  %v5797_v12 = vcombine.low %v1536_v60, %v1539_v6  ;;  %v1434_v37 = vld [vmem:[%s6901_s23 + $0x38] sm:$0x1]  ;;  %v642_v41 = vld [vmem:[%s6901_s23 + $0x3c] sm:$0xf] }
  0x2a   : > { %v757_v13 = vor.u32 %v756_v4, %v753_v3  ;;  %v1542_v22 = vrot.slane %v1430_v0, 5  ;;  %v775_v26 = vshrl.u32 %v639_v10, 16  ;;  %v778_v27 = vshll.u32 %v639_v10, 16  ;;  %v643_v47 = vld [vmem:[%s6901_s23 + $0x40] sm:$0xf] }
  0x2b   : > { %6485 = vmatmul.mubr.msk.bf16.gmra.mxu0 %vm349_vm1, %v6811_v2  ;;  %v734_v54 = vrot.slane %v733_v46, 4  ;;  %v744_v2 = vrot.slane %v743_v56, 4  ;;  %v772_v20 = vrot.slane %v770_v9, 5  ;;  %v784_v31 = vshll.u32 %v640_v15, 16  ;;  %v644_v52 = vld [vmem:[%s6901_s23 + $0x44] sm:$0x1] }
  0x2c   : > { %6501 = vmatmul.mubr.msk.bf16.gmra.mxu1 %vm349_vm1, %v6812_v8  ;;  %6540 = vmatprep.mubr.msk.bf16.mxu0 %vm349_vm1, %v5795_v11  ;;  %v766_v8 = vrot.slane %v764_v63, 4  ;;  %v758_v25 = vrot.slane %v757_v13, 4  ;;  %v1544_v30 = vrot.slane %v1542_v22, 4  ;;  %v777_v34 = vrot.slane %v775_v26, 4  ;;  %v1435_v58 = vld [vmem:[%s6901_s23 + $0x3c] sm:$0xe] }
  0x2d   : > { %6506 = vmatprep.mubr.msk.bf16.mxu1 %vm349_vm1, %v5746_v14  ;;  %v739_v1 = vsel %vm6974_vm7, %v734_v54, %v738_v40  ;;  %v749_v11 = vsel %vm6974_vm7, %v744_v2, %v748_v49  ;;  %v5781_v14 = vrot.slane %v1429_v59, 9  ;;  %v780_v35 = vrot.slane %v778_v27, 5  ;;  %v1436_v63 = vld [vmem:[%s6901_s23 + $0x40] sm:$0xf]  ;;  %v1437_v4 = vld [vmem:[%s6901_s23 + $0x44] sm:$0x1] }
  0x2e   : > { %v5748_v16 = vcombine.low %v739_v1, %v749_v11  ;;  %v767_v17 = vor.u32 %v766_v8, %v762_v7  ;;  %v763_v33 = vsel %vm6974_vm7, %v758_v25, %v762_v7  ;;  %v788_v36 = vshrl.u32 %v640_v15, 16  ;;  %v645_v9 = vld [vmem:[%s6901_s23 + $0x48] sm:$0xf] }
  0x2f   : > { %v1543_v29 = vsel %vm6960_vm6, %v5781_v14, %v1542_v22  ;;  %v786_v39 = vrot.slane %v784_v31, 5  ;;  %v794_v40 = vshll.u32 %v641_v23, 16  ;;  %v5782_v49 = vrot.slane %v1432_v28, 9  ;;  %v646_v14 = vld [vmem:[%s6901_s23 + $0x4c] sm:$0xf] }
  0x30   : > { %v790_v46 = vrot.slane %v788_v36, 4  ;;  %v1549_v50 = vrot.slane %v1433_v32, 5  ;;  %v1552_v51 = vrot.slane %v1434_v37, 5  ;;  %v799_v56 = vshrl.u32 %v642_v41, 16  ;;  %v647_v22 = vld [vmem:[%s6901_s23 + $0x50] sm:$0x1] }
  0x31   : > { %v796_v48 = vrot.slane %v794_v40, 5  ;;  %v802_v57 = vshll.u32 %v642_v41, 16  ;;  %v808_v61 = vshll.u32 %v643_v47, 16  ;;  %v812_v62 = vshrl.u32 %v643_v47, 16  ;;  %v1438_v27 = vld [vmem:[%s6901_s23 + $0x48] sm:$0xe] }
  0x32   : > { %v791_v54 = vor.u32 %v790_v46, %v786_v39  ;;  %v1550_v59 = vsel %vm6960_vm6, %v5782_v49, %v1549_v50  ;;  %v1551_v60 = vrot.slane %v1549_v50, 4  ;;  %v801_v2 = vrot.slane %v799_v56, 4  ;;  %v1439_v31 = vld [vmem:[%s6901_s23 + $0x4c] sm:$0xf]  ;;  %v1440_v36 = vld [vmem:[%s6901_s23 + $0x50] sm:$0x1] }
  0x33   : > { %6541 = vmatmul.mubr.msk.bf16.vlgmr.msra.gmra.mxu0 %vm349_vm1, %v5796_v45  ;;  %v781_v45 = vor.u32 %v780_v35, %v777_v34  ;;  %v804_v3 = vrot.slane %v802_v57, 5  ;;  %v810_v6 = vrot.slane %v808_v61, 5  ;;  %v814_v7 = vrot.slane %v812_v62, 4  ;;  %v648_v40 = vld [vmem:[%s6901_s23 + $0x54] sm:$0xf] }
  0x34   : > { %6507 = vmatmul.mubr.msk.bf16.vlgmr.msra.gmra.mxu1 %vm349_vm1, %v5747_v44  ;;  %6607 = vmatpush3.bf16.msra.mxu0 %v6943_v21  ;;  %v1545_v21 = vrot.slane %v1431_v5, 5  ;;  %v792_v1 = vrot.slane %v791_v54, 4  ;;  %v1553_v5 = vsel %vm6960_vm6, %v1551_v60, %v1552_v51  ;;  %v818_v8 = vshll.u32 %v644_v52, 16  ;;  %v649_v46 = vld [vmem:[%s6901_s23 + $0x58] sm:$0xf] }
  0x35   : > { %6573 = vmatpush3.bf16.msra.mxu1 %v6938_v19  ;;  %6544 = vmatprep.mubr.msk.bf16.mxu0 %vm349_vm1, %v5797_v12  ;;  %v768_v19 = vrot.slane %v767_v17, 4  ;;  %v782_v53 = vrot.slane %v781_v45, 4  ;;  %v5799_v11 = vcombine.low %v1550_v59, %v1553_v5  ;;  %v805_v12 = vor.u32 %v804_v3, %v801_v2  ;;  %v650_v51 = vld [vmem:[%s6901_s23 + $0x5c] sm:$0x1]  ;;  %v1441_v57 = vld [vmem:[%s6901_s23 + $0x54] sm:$0xe] }
  0x36   : > { %6784 = vmatprep.subr.msk.bf16.mxu1 %vm398_vm0, %v6933_v18  ;;  %6510 = vmatprep.mubr.msk.bf16.mxu1 %vm349_vm1, %v5748_v16  ;;  %v1546_v38 = vsel %vm6960_vm6, %v1544_v30, %v1545_v21  ;;  %v797_v10 = vsel %vm6974_vm7, %v792_v1, %v796_v48  ;;  %v5783_v13 = vrot.slane %v1435_v58, 9  ;;  %v815_v16 = vor.u32 %v814_v7, %v810_v6  ;;  %v1442_v62 = vld [vmem:[%s6901_s23 + $0x58] sm:$0xf]  ;;  %v1443_v3 = vld [vmem:[%s6901_s23 + $0x5c] sm:$0x1] }
  0x37   : > { %v773_v18 = vsel %vm6974_vm7, %v768_v19, %v772_v20  ;;  %v5798_v44 = vcombine.low %v1543_v29, %v1546_v38  ;;  %v787_v0 = vsel %vm6974_vm7, %v782_v53, %v786_v39  ;;  %v820_v17 = vrot.slane %v818_v8, 5  ;;  %v651_v8 = vld [vmem:[%s6901_s23 + $0x60] sm:$0xf] }
  0x38   : > { %v5749_v43 = vcombine.low %v763_v33, %v773_v18  ;;  %v5750_v15 = vcombine.low %v787_v0, %v797_v10  ;;  %v1556_v20 = vrot.slane %v1436_v63, 5  ;;  %v806_v23 = vrot.slane %v805_v12, 4 }
  0x39   : > { %v1559_v25 = vrot.slane %v1437_v4, 5  ;;  %v823_v21 = vshrl.u32 %v645_v9, 16  ;;  %v826_v26 = vshll.u32 %v645_v9, 16  ;;  %v816_v28 = vrot.slane %v815_v16, 4 }
  0x3a   : > { %v1557_v19 = vsel %vm6960_vm6, %v5783_v13, %v1556_v20  ;;  %v1558_v29 = vrot.slane %v1556_v20, 4  ;;  %v832_v30 = vshll.u32 %v646_v14, 16  ;;  %v811_v32 = vsel %vm6974_vm7, %v806_v23, %v810_v6  ;;  %v652_v13 = vld [vmem:[%s6901_s23 + $0x64] sm:$0xf]  ;;  %v653_v20 = vld [vmem:[%s6901_s23 + $0x68] sm:$0x1] }
  0x3b   : > { %6545 = vmatmul.mubr.msk.bf16.gmra.mxu0 %vm349_vm1, %v5798_v44  ;;  %v825_v33 = vrot.slane %v823_v21, 4  ;;  %v828_v34 = vrot.slane %v826_v26, 5  ;;  %v836_v35 = vshrl.u32 %v646_v14, 16  ;;  %v821_v37 = vsel %vm6974_vm7, %v816_v28, %v820_v17  ;;  %v1444_v26 = vld [vmem:[%s6901_s23 + $0x60] sm:$0xe] }
  0x3c   : > { %6511 = vmatmul.mubr.msk.bf16.gmra.mxu1 %vm349_vm1, %v5749_v43  ;;  %6548 = vmatprep.mubr.msk.bf16.mxu0 %vm349_vm1, %v5799_v11  ;;  %v1560_v18 = vsel %vm6960_vm6, %v1558_v29, %v1559_v25  ;;  %v834_v38 = vrot.slane %v832_v30, 5  ;;  %v842_v39 = vshll.u32 %v647_v22, 16  ;;  %v5751_v41 = vcombine.low %v811_v32, %v821_v37  ;;  %v1445_v30 = vld [vmem:[%s6901_s23 + $0x64] sm:$0xf] }
  0x3d   : > { %6514 = vmatprep.mubr.msk.bf16.mxu1 %vm349_vm1, %v5750_v15  ;;  %v5800_v43 = vcombine.low %v1557_v19, %v1560_v18  ;;  %v829_v44 = vor.u32 %v828_v34, %v825_v33  ;;  %v838_v45 = vrot.slane %v836_v35, 4  ;;  %v5784_v48 = vrot.slane %v1438_v27, 9  ;;  %v1446_v35 = vld [vmem:[%s6901_s23 + $0x68] sm:$0x1] }
  0x3e   : > { %v844_v47 = vrot.slane %v842_v39, 5  ;;  %v1563_v49 = vrot.slane %v1439_v31, 5  ;;  %v1566_v50 = vrot.slane %v1440_v36, 5  ;;  %v847_v54 = vshrl.u32 %v648_v40, 16  ;;  %v654_v39 = vld [vmem:[%s6901_s23 + $0x6c] sm:$0xf] }
  0x3f   : > { %v830_v52 = vrot.slane %v829_v44, 4  ;;  %v839_v53 = vor.u32 %v838_v45, %v834_v38  ;;  %v850_v56 = vshll.u32 %v648_v40, 16  ;;  %v856_v60 = vshll.u32 %v649_v46, 16  ;;  %v655_v45 = vld [vmem:[%s6901_s23 + $0x70] sm:$0xf] }
  0x40   : > { %v1564_v58 = vsel %vm6960_vm6, %v5784_v48, %v1563_v49  ;;  %v1565_v59 = vrot.slane %v1563_v49, 4  ;;  %v860_v61 = vshrl.u32 %v649_v46, 16  ;;  %v849_v1 = vrot.slane %v847_v54, 4 }
  0x41   : > { %v835_v63 = vsel %vm6974_vm7, %v830_v52, %v834_v38  ;;  %v840_v0 = vrot.slane %v839_v53, 4  ;;  %v852_v2 = vrot.slane %v850_v56, 5  ;;  %v858_v5 = vrot.slane %v856_v60, 5  ;;  %v1447_v56 = vld [vmem:[%s6901_s23 + $0x6c] sm:$0xe] }
  0x42   : > { %v1567_v4 = vsel %vm6960_vm6, %v1565_v59, %v1566_v50  ;;  %v862_v6 = vrot.slane %v860_v61, 4  ;;  %v866_v7 = vshll.u32 %v650_v51, 16  ;;  %v5785_v12 = vrot.slane %v1441_v57, 9  ;;  %v656_v50 = vld [vmem:[%s6901_s23 + $0x74] sm:$0x1] }
  0x43   : > { %6549 = vmatmul.mubr.msk.bf16.gmra.mxu0 %vm349_vm1, %v5800_v43  ;;  %v845_v9 = vsel %vm6974_vm7, %v840_v0, %v844_v47  ;;  %v5801_v10 = vcombine.low %v1564_v58, %v1567_v4  ;;  %v853_v11 = vor.u32 %v852_v2, %v849_v1  ;;  %v1570_v17 = vrot.slane %v1442_v62, 5  ;;  %v1448_v61 = vld [vmem:[%s6901_s23 + $0x70] sm:$0xf]  ;;  %v1449_v2 = vld [vmem:[%s6901_s23 + $0x74] sm:$0x1] }
  0x44   : > { %6515 = vmatmul.mubr.msk.bf16.gmra.mxu1 %vm349_vm1, %v5751_v41  ;;  %v5752_v14 = vcombine.low %v835_v63, %v845_v9  ;;  %v863_v15 = vor.u32 %v862_v6, %v858_v5  ;;  %v868_v16 = vrot.slane %v866_v7, 5  ;;  %v1573_v23 = vrot.slane %v1443_v3, 5  ;;  %v657_v7 = vld [vmem:[%s6901_s23 + $0x78] sm:$0xf] }
  0x45   : > { %6552 = vmatprep.mubr.msk.bf16.mxu0 %vm349_vm1, %v5801_v10  ;;  %v854_v22 = vrot.slane %v853_v11, 4  ;;  %v871_v25 = vshrl.u32 %v651_v8, 16  ;;  %v874_v21 = vshll.u32 %v651_v8, 16  ;;  %v1571_v28 = vsel %vm6960_vm6, %v5785_v12, %v1570_v17  ;;  %v658_v12 = vld [vmem:[%s6901_s23 + $0x7c] sm:$0xf] }
  0x46   : > { %6518 = vmatprep.mubr.msk.bf16.mxu1 %vm349_vm1, %v5752_v14  ;;  %v864_v27 = vrot.slane %v863_v15, 4  ;;  %v1572_v19 = vrot.slane %v1570_v17, 4  ;;  %v880_v29 = vshll.u32 %v652_v13, 16  ;;  %v884_v34 = vshrl.u32 %v652_v13, 16  ;;  %v659_v17 = vld [vmem:[%s6901_s23 + $0x80] sm:$0x1] }
  0x47   : > { %v859_v31 = vsel %vm6974_vm7, %v854_v22, %v858_v5  ;;  %v873_v32 = vrot.slane %v871_v25, 4  ;;  %v876_v33 = vrot.slane %v874_v21, 5  ;;  %v890_v38 = vshll.u32 %v653_v20, 16  ;;  %v1450_v21 = vld [vmem:[%s6901_s23 + $0x78] sm:$0xe] }
  0x48   : > { %v869_v36 = vsel %vm6974_vm7, %v864_v27, %v868_v16  ;;  %v1574_v37 = vsel %vm6960_vm6, %v1572_v19, %v1573_v23  ;;  %v882_v18 = vrot.slane %v880_v29, 5  ;;  %v886_v44 = vrot.slane %v884_v34, 4  ;;  %v1451_v29 = vld [vmem:[%s6901_s23 + $0x7c] sm:$0xf]  ;;  %v1452_v34 = vld [vmem:[%s6901_s23 + $0x80] sm:$0x1] }
  0x49   : > { %v5753_v40 = vcombine.low %v859_v31, %v869_v36  ;;  %v5802_v41 = vcombine.low %v1571_v28, %v1574_v37  ;;  %v877_v43 = vor.u32 %v876_v33, %v873_v32  ;;  %v892_v46 = vrot.slane %v890_v38, 5  ;;  %v660_v38 = vld [vmem:[%s6901_s23 + $0x84] sm:$0xf] }
  0x4a   : > { %v5786_v47 = vrot.slane %v1444_v26, 9  ;;  %v1577_v48 = vrot.slane %v1445_v30, 5  ;;  %v1580_v49 = vrot.slane %v1446_v35, 5  ;;  %v887_v52 = vor.u32 %v886_v44, %v882_v18  ;;  %v661_v44 = vld [vmem:[%s6901_s23 + $0x88] sm:$0xf] }
  0x4b   : > { %6553 = vmatmul.mubr.msk.bf16.gmra.mxu0 %vm349_vm1, %v5802_v41  ;;  %v878_v51 = vrot.slane %v877_v43, 4  ;;  %v895_v53 = vshrl.u32 %v654_v39, 16  ;;  %v898_v54 = vshll.u32 %v654_v39, 16  ;;  %v904_v59 = vshll.u32 %v655_v45, 16 }
  0x4c   : > { %6519 = vmatmul.mubr.msk.bf16.gmra.mxu1 %vm349_vm1, %v5753_v40  ;;  %v1578_v57 = vsel %vm6960_vm6, %v5786_v47, %v1577_v48  ;;  %v1579_v58 = vrot.slane %v1577_v48, 4  ;;  %v908_v60 = vshrl.u32 %v655_v45, 16  ;;  %v888_v63 = vrot.slane %v887_v52, 4 }
  0x4d   : > { %v883_v62 = vsel %vm6974_vm7, %v878_v51, %v882_v18  ;;  %v897_v0 = vrot.slane %v895_v53, 4  ;;  %v900_v1 = vrot.slane %v898_v54, 5  ;;  %v906_v4 = vrot.slane %v904_v59, 5  ;;  %v1453_v54 = vld [vmem:[%s6901_s23 + $0x84] sm:$0xe] }
  0x4e   : > { %v1581_v3 = vsel %vm6960_vm6, %v1579_v58, %v1580_v49  ;;  %v910_v5 = vrot.slane %v908_v60, 4  ;;  %v914_v6 = vshll.u32 %v656_v50, 16  ;;  %v893_v8 = vsel %vm6974_vm7, %v888_v63, %v892_v46  ;;  %v662_v49 = vld [vmem:[%s6901_s23 + $0x8c] sm:$0x1]  ;;  %v1454_v60 = vld [vmem:[%s6901_s23 + $0x88] sm:$0xf] }
  0x4f   : > { %v5803_v9 = vcombine.low %v1578_v57, %v1581_v3  ;;  %v901_v10 = vor.u32 %v900_v1, %v897_v0  ;;  %v5787_v11 = vrot.slane %v1447_v56, 9  ;;  %v5754_v13 = vcombine.low %v883_v62, %v893_v8  ;;  %v1455_v1 = vld [vmem:[%s6901_s23 + $0x8c] sm:$0x1] }
  0x50   : > { %v911_v14 = vor.u32 %v910_v5, %v906_v4  ;;  %v916_v15 = vrot.slane %v914_v6, 5  ;;  %v1584_v16 = vrot.slane %v1448_v61, 5  ;;  %v1587_v22 = vrot.slane %v1449_v2, 5  ;;  %v663_v6 = vld [vmem:[%s6901_s23 + $0x90] sm:$0xf] }
  0x51   : > { %6556 = vmatprep.mubr.msk.bf16.mxu0 %vm349_vm1, %v5803_v9  ;;  %v902_v20 = vrot.slane %v901_v10, 4  ;;  %v919_v23 = vshrl.u32 %v657_v7, 16  ;;  %v922_v25 = vshll.u32 %v657_v7, 16  ;;  %6522 = vmatprep.mubr.msk.bf16.mxu1 %vm349_vm1, %v5754_v13  ;;  %v928_v19 = vshll.u32 %v658_v12, 16 }
  0x52   : > { %v912_v26 = vrot.slane %v911_v14, 4  ;;  %v1585_v27 = vsel %vm6960_vm6, %v5787_v11, %v1584_v16  ;;  %v1586_v28 = vrot.slane %v1584_v16, 4  ;;  %v932_v33 = vshrl.u32 %v658_v12, 16  ;;  %v664_v11 = vld [vmem:[%s6901_s23 + $0x94] sm:$0xf] }
  0x53   : > { %v907_v30 = vsel %vm6974_vm7, %v902_v20, %v906_v4  ;;  %v921_v31 = vrot.slane %v919_v23, 4  ;;  %v924_v32 = vrot.slane %v922_v25, 5  ;;  %v930_v37 = vrot.slane %v928_v19, 5  ;;  %v665_v12 = vld [vmem:[%s6901_s23 + $0x98] sm:$0x1] }
  0x54   : > { %v917_v35 = vsel %vm6974_vm7, %v912_v26, %v916_v15  ;;  %v1588_v36 = vsel %vm6960_vm6, %v1586_v28, %v1587_v22  ;;  %v938_v18 = vshll.u32 %v659_v17, 16  ;;  %v934_v43 = vrot.slane %v932_v33, 4  ;;  %v1456_v25 = vld [vmem:[%s6901_s23 + $0x90] sm:$0xe] }
  0x55   : > { %v5755_v39 = vcombine.low %v907_v30, %v917_v35  ;;  %v5804_v40 = vcombine.low %v1585_v27, %v1588_v36  ;;  %v925_v41 = vor.u32 %v924_v32, %v921_v31  ;;  %v5788_v46 = vrot.slane %v1450_v21, 9  ;;  %v1457_v21 = vld [vmem:[%s6901_s23 + $0x94] sm:$0xf] }
  0x56   : > { %v940_v45 = vrot.slane %v938_v18, 5  ;;  %v1591_v47 = vrot.slane %v1451_v29, 5  ;;  %v1594_v48 = vrot.slane %v1452_v34, 5  ;;  %v935_v51 = vor.u32 %v934_v43, %v930_v37  ;;  %v1458_v29 = vld [vmem:[%s6901_s23 + $0x98] sm:$0x1] }
  0x57   : > { %6523 = vmatmul.mubr.msk.bf16.gmra.mxu1 %vm349_vm1, %v5755_v39  ;;  %6557 = vmatmul.mubr.msk.bf16.gmra.mxu0 %vm349_vm1, %v5804_v40  ;;  %v926_v50 = vrot.slane %v925_v41, 4  ;;  %v943_v52 = vshrl.u32 %v660_v38, 16  ;;  %v946_v53 = vshll.u32 %v660_v38, 16  ;;  %v952_v58 = vshll.u32 %v661_v44, 16  ;;  %v666_v34 = vld [vmem:[%s6901_s23 + $0x9c] sm:$0xf] }
  0x58   : > { %v1592_v56 = vsel %vm6960_vm6, %v5788_v46, %v1591_v47  ;;  %v1593_v57 = vrot.slane %v1591_v47, 4  ;;  %v956_v59 = vshrl.u32 %v661_v44, 16  ;;  %v936_v62 = vrot.slane %v935_v51, 4  ;;  %v667_v43 = vld [vmem:[%s6901_s23 + $0xa0] sm:$0xf] }
  0x59   : > { %v931_v61 = vsel %vm6974_vm7, %v926_v50, %v930_v37  ;;  %v945_v63 = vrot.slane %v943_v52, 4  ;;  %v948_v0 = vrot.slane %v946_v53, 5  ;;  %v954_v3 = vrot.slane %v952_v58, 5  ;;  %v668_v44 = vld [vmem:[%s6901_s23 + $0xa4] sm:$0x1] }
  0x5a   : > { %v1595_v2 = vsel %vm6960_vm6, %v1593_v57, %v1594_v48  ;;  %v958_v4 = vrot.slane %v956_v59, 4  ;;  %v962_v5 = vshll.u32 %v662_v49, 16  ;;  %v941_v7 = vsel %vm6974_vm7, %v936_v62, %v940_v45  ;;  %v1459_v49 = vld [vmem:[%s6901_s23 + $0x9c] sm:$0xe] }
  0x5b   : > { %v5805_v8 = vcombine.low %v1592_v56, %v1595_v2  ;;  %v949_v9 = vor.u32 %v948_v0, %v945_v63  ;;  %v5789_v10 = vrot.slane %v1453_v54, 9  ;;  %v5756_v13 = vcombine.low %v931_v61, %v941_v7  ;;  %v1460_v54 = vld [vmem:[%s6901_s23 + $0xa0] sm:$0xf]  ;;  %v7182_v56 = vld [vmem:[%s8590_s1 + $0xc] sm:$0x3] }
  0x5c   : > { %v959_v14 = vor.u32 %v958_v4, %v954_v3  ;;  %v964_v15 = vrot.slane %v962_v5, 5  ;;  %v1598_v16 = vrot.slane %v1454_v60, 5  ;;  %v1601_v20 = vrot.slane %v1455_v1, 5  ;;  %v1461_v61 = vld [vmem:[%s6901_s23 + $0xa4] sm:$0x1]  ;;  %6785 = vmatprep.subr.msk.bf16.mxu0 %vm398_vm0, %v7182_v56 }
  0x5d   : > { %6560 = vmatprep.mubr.msk.bf16.mxu0 %vm349_vm1, %v5805_v8  ;;  %v950_v17 = vrot.slane %v949_v9, 4  ;;  %v967_v22 = vshrl.u32 %v663_v6, 16  ;;  %v970_v23 = vshll.u32 %v663_v6, 16  ;;  %6526 = vmatprep.mubr.msk.bf16.mxu1 %vm349_vm1, %v5756_v13  ;;  %v976_v19 = vshll.u32 %v664_v11, 16  ;;  %v669_v6 = vld [vmem:[%s6901_s23 + $0xa8] sm:$0xf] }
  0x5e   : > { %v960_v26 = vrot.slane %v959_v14, 4  ;;  %v1599_v27 = vsel %vm6960_vm6, %v5789_v10, %v1598_v16  ;;  %v1600_v28 = vrot.slane %v1598_v16, 4  ;;  %v980_v33 = vshrl.u32 %v664_v11, 16  ;;  %v670_v11 = vld [vmem:[%s6901_s23 + $0xac] sm:$0xf] }
  0x5f   : > { %v955_v30 = vsel %vm6974_vm7, %v950_v17, %v954_v3  ;;  %v969_v31 = vrot.slane %v967_v22, 4  ;;  %v972_v32 = vrot.slane %v970_v23, 5  ;;  %v978_v37 = vrot.slane %v976_v19, 5 }
  0x60   : > { %v965_v35 = vsel %vm6974_vm7, %v960_v26, %v964_v15  ;;  %v1602_v36 = vsel %vm6960_vm6, %v1600_v28, %v1601_v20  ;;  %v986_v18 = vshll.u32 %v665_v12, 16  ;;  %v982_v41 = vrot.slane %v980_v33, 4  ;;  %v671_v12 = vld [vmem:[%s6901_s23 + $0xb0] sm:$0x1] }
  0x61   : > { %v5757_v38 = vcombine.low %v955_v30, %v965_v35  ;;  %v5806_v39 = vcombine.low %v1599_v27, %v1602_v36  ;;  %v973_v40 = vor.u32 %v972_v32, %v969_v31  ;;  %v5790_v46 = vrot.slane %v1456_v25, 9  ;;  %v1462_v25 = vld [vmem:[%s6901_s23 + $0xa8] sm:$0xe] }
  0x62   : > { %v988_v45 = vrot.slane %v986_v18, 5  ;;  %v1605_v47 = vrot.slane %v1457_v21, 5  ;;  %v1608_v48 = vrot.slane %v1458_v29, 5  ;;  %v983_v51 = vor.u32 %v982_v41, %v978_v37  ;;  %v1463_v21 = vld [vmem:[%s6901_s23 + $0xac] sm:$0xf] }
  0x63   : > { %6527 = vmatmul.mubr.msk.bf16.gmra.mxu1 %vm349_vm1, %v5757_v38  ;;  %6561 = vmatmul.mubr.msk.bf16.gmra.mxu0 %vm349_vm1, %v5806_v39  ;;  %v974_v50 = vrot.slane %v973_v40, 4  ;;  %v991_v52 = vshrl.u32 %v666_v34, 16  ;;  %v994_v53 = vshll.u32 %v666_v34, 16  ;;  %v1000_v59 = vshll.u32 %v667_v43, 16  ;;  %v1464_v29 = vld [vmem:[%s6901_s23 + $0xb0] sm:$0x1] }
  0x64   : > { %v1606_v57 = vsel %vm6960_vm6, %v5790_v46, %v1605_v47  ;;  %v1607_v58 = vrot.slane %v1605_v47, 4  ;;  %v1004_v60 = vshrl.u32 %v667_v43, 16  ;;  %v984_v63 = vrot.slane %v983_v51, 4  ;;  %v672_v34 = vld [vmem:[%s6901_s23 + $0xb4] sm:$0xf] }
  0x65   : > { %v979_v62 = vsel %vm6974_vm7, %v974_v50, %v978_v37  ;;  %v993_v0 = vrot.slane %v991_v52, 4  ;;  %v996_v1 = vrot.slane %v994_v53, 5  ;;  %v1002_v3 = vrot.slane %v1000_v59, 5  ;;  %v673_v43 = vld [vmem:[%s6901_s23 + $0xb8] sm:$0xf] }
  0x66   : > { %v1609_v2 = vsel %vm6960_vm6, %v1607_v58, %v1608_v48  ;;  %v1006_v4 = vrot.slane %v1004_v60, 4  ;;  %v1010_v5 = vshll.u32 %v668_v44, 16  ;;  %v989_v7 = vsel %vm6974_vm7, %v984_v63, %v988_v45  ;;  %v674_v44 = vld [vmem:[%s6901_s23 + $0xbc] sm:$0x1] }
  0x67   : > { %v5807_v8 = vcombine.low %v1606_v57, %v1609_v2  ;;  %v997_v9 = vor.u32 %v996_v1, %v993_v0  ;;  %v5791_v10 = vrot.slane %v1459_v49, 9  ;;  %v5758_v13 = vcombine.low %v979_v62, %v989_v7  ;;  %v1465_v49 = vld [vmem:[%s6901_s23 + $0xb4] sm:$0xe]  ;;  %v1467_v1 = vld [vmem:[%s6901_s23 + $0xbc] sm:$0x1] }
  0x68   : > { %v1007_v14 = vor.u32 %v1006_v4, %v1002_v3  ;;  %v1012_v15 = vrot.slane %v1010_v5, 5  ;;  %v1612_v16 = vrot.slane %v1460_v54, 5  ;;  %v1615_v20 = vrot.slane %v1461_v61, 5  ;;  %v1466_v54 = vld [vmem:[%s6901_s23 + $0xb8] sm:$0xf] }
  0x69   : > { %6564 = vmatprep.mubr.msk.bf16.mxu0 %vm349_vm1, %v5807_v8  ;;  %v998_v17 = vrot.slane %v997_v9, 4  ;;  %v1015_v22 = vshrl.u32 %v669_v6, 16  ;;  %v1018_v23 = vshll.u32 %v669_v6, 16  ;;  %6530 = vmatprep.mubr.msk.bf16.mxu1 %vm349_vm1, %v5758_v13  ;;  %v1024_v19 = vshll.u32 %v670_v11, 16  ;;  %v5892_v6 = vld [vmem:[%s6901_s23 + $0xc] sm:$0xf] }
  0x6a   : > { %v1008_v26 = vrot.slane %v1007_v14, 4  ;;  %v1613_v27 = vsel %vm6960_vm6, %v5791_v10, %v1612_v16  ;;  %v1614_v28 = vrot.slane %v1612_v16, 4  ;;  %v1028_v33 = vshrl.u32 %v670_v11, 16  ;;  %v5893_v11 = vld [vmem:[%s6901_s23 + $0x10] sm:$0xf] }
  0x6b   : > { %v1003_v30 = vsel %vm6974_vm7, %v998_v17, %v1002_v3  ;;  %v1017_v31 = vrot.slane %v1015_v22, 4  ;;  %v1020_v32 = vrot.slane %v1018_v23, 5  ;;  %v1026_v37 = vrot.slane %v1024_v19, 5  ;;  %v5894_v16 = vld [vmem:[%s6901_s23 + $0x14] sm:$0x1] }
  0x6c   : > { %v1013_v35 = vsel %vm6974_vm7, %v1008_v26, %v1012_v15  ;;  %v1616_v36 = vsel %vm6960_vm6, %v1614_v28, %v1615_v20  ;;  %v1034_v18 = vshll.u32 %v671_v12, 16  ;;  %v1030_v41 = vrot.slane %v1028_v33, 4  ;;  %v5896_v19 = vld [vmem:[%s6901_s23 + $0x1c] sm:$0xf] }
  0x6d   : > { %v5759_v38 = vcombine.low %v1003_v30, %v1013_v35  ;;  %v5808_v39 = vcombine.low %v1613_v27, %v1616_v36  ;;  %v1021_v40 = vor.u32 %v1020_v32, %v1017_v31  ;;  %v5792_v46 = vrot.slane %v1462_v25, 9  ;;  %v5895_v25 = vld [vmem:[%s6901_s23 + $0x18] sm:$0xf]  ;;  %v6813_v30 = vld [vmem:[%s6901_s23 + $0xc] sm:$0xff]  }
  0x6e   : > { %v1036_v45 = vrot.slane %v1034_v18, 5  ;;  %v1619_v47 = vrot.slane %v1463_v21, 5  ;;  %v1622_v48 = vrot.slane %v1464_v29, 5  ;;  %v1031_v51 = vor.u32 %v1030_v41, %v1026_v37  ;;  %v5897_v18 = vld [vmem:[%s6901_s23 + $0x20] sm:$0x1] }
  0x6f   : > { %6531 = vmatmul.mubr.msk.bf16.gmra.mxu1 %vm349_vm1, %v5759_v38  ;;  %6565 = vmatmul.mubr.msk.bf16.gmra.mxu0 %vm349_vm1, %v5808_v39  ;;  %v1022_v50 = vrot.slane %v1021_v40, 4  ;;  %v1039_v52 = vshrl.u32 %v672_v34, 16  ;;  %v1042_v53 = vshll.u32 %v672_v34, 16  ;;  %v1048_v59 = vshll.u32 %v673_v43, 16 }
  0x70   : > { %v1620_v57 = vsel %vm6960_vm6, %v5792_v46, %v1619_v47  ;;  %v1621_v58 = vrot.slane %v1619_v47, 4  ;;  %v1052_v60 = vshrl.u32 %v673_v43, 16  ;;  %v1032_v62 = vrot.slane %v1031_v51, 4  ;;  %v5898_v43 = vld [vmem:[%s6901_s23 + $0x24] sm:$0xf] }
  0x71   : > { %v1027_v61 = vsel %vm6974_vm7, %v1022_v50, %v1026_v37  ;;  %v1041_v63 = vrot.slane %v1039_v52, 4  ;;  %v1044_v0 = vrot.slane %v1042_v53, 5  ;;  %v1050_v3 = vrot.slane %v1048_v59, 5  ;;  %v5900_v59 = vld [vmem:[%s6901_s23 + $0x2c] sm:$0x1] }
  0x72   : > { %v1623_v2 = vsel %vm6960_vm6, %v1621_v58, %v1622_v48  ;;  %v1054_v4 = vrot.slane %v1052_v60, 4  ;;  %v1058_v5 = vshll.u32 %v674_v44, 16  ;;  %v1037_v7 = vsel %vm6974_vm7, %v1032_v62, %v1036_v45  ;;  %v5899_v44 = vld [vmem:[%s6901_s23 + $0x28] sm:$0xf] }
  0x73   : > { %v5809_v8 = vcombine.low %v1620_v57, %v1623_v2  ;;  %v1045_v9 = vor.u32 %v1044_v0, %v1041_v63  ;;  %v5793_v10 = vrot.slane %v1465_v49, 9  ;;  %v5760_v12 = vcombine.low %v1027_v61, %v1037_v7  ;;  %v6814_v0 = vld [vmem:[%s6901_s23 + $0x18] sm:$0xff]  }
  0x74   : > { %v1055_v13 = vor.u32 %v1054_v4, %v1050_v3  ;;  %v1060_v14 = vrot.slane %v1058_v5, 5  ;;  %v1626_v15 = vrot.slane %v1466_v54, 5  ;;  %v1629_v20 = vrot.slane %v1467_v1, 5  ;;  %v5901_v5 = vld [vmem:[%s6901_s23 + $0x30] sm:$0xf] }
  0x75   : > { %6568 = vmatprep.mubr.msk.bf16.mxu0 %vm349_vm1, %v5809_v8  ;;  %v1046_v17 = vrot.slane %v1045_v9, 4  ;;  %v2461_v22 = vshrl.u32 %v5892_v6, 16  ;;  %v2464_v23 = vshll.u32 %v5892_v6, 16  ;;  %6534 = vmatprep.mubr.msk.bf16.mxu1 %vm349_vm1, %v5760_v12  ;;  %v2470_v28 = vshll.u32 %v5893_v11, 16 }
  0x76   : > { %v1056_v21 = vrot.slane %v1055_v13, 4  ;;  %v1627_v26 = vsel %vm6960_vm6, %v5793_v10, %v1626_v15  ;;  %v1628_v27 = vrot.slane %v1626_v15, 4  ;;  %v2474_v33 = vshrl.u32 %v5893_v11, 16  ;;  %v6815_v11 = vld [vmem:[%s6901_s23 + $0x24] sm:$0xff]  }
  0x77   : > { %v1051_v29 = vsel %vm6974_vm7, %v1046_v17, %v1050_v3  ;;  %v2463_v31 = vrot.slane %v2461_v22, 4  ;;  %v2466_v32 = vrot.slane %v2464_v23, 5  ;;  %v2472_v36 = vrot.slane %v2470_v28, 5 }
  0x78   : > { %v1061_v34 = vsel %vm6974_vm7, %v1056_v21, %v1060_v14  ;;  %v1630_v35 = vsel %vm6960_vm6, %v1628_v27, %v1629_v20  ;;  %v2480_v37 = vshll.u32 %v5894_v16, 16  ;;  %v2476_v41 = vrot.slane %v2474_v33, 4  ;;  %v5902_v14 = vld [vmem:[%s6901_s23 + $0x34] sm:$0xf] }
  0x79   : > { %v5761_v38 = vcombine.low %v1051_v29, %v1061_v34  ;;  %v5810_v39 = vcombine.low %v1627_v26, %v1630_v35  ;;  %v2467_v40 = vor.u32 %v2466_v32, %v2463_v31  ;;  %v2485_v46 = vshrl.u32 %v5895_v25, 16  ;;  %v5905_v35 = vld [vmem:[%s6901_s23 + $0x40] sm:$0xf] }
  0x7a   : > { %v2482_v45 = vrot.slane %v2480_v37, 5  ;;  %v2488_v47 = vshll.u32 %v5895_v25, 16  ;;  %v2494_v48 = vshll.u32 %v5896_v19, 16  ;;  %v2477_v50 = vor.u32 %v2476_v41, %v2472_v36  ;;  %v5903_v25 = vld [vmem:[%s6901_s23 + $0x38] sm:$0x1] }
  0x7b   : > { %6535 = vmatmul.mubr.msk.bf16.gmra.mxu1 %vm349_vm1, %v5761_v38  ;;  %6569 = vmatmul.mubr.msk.bf16.gmra.mxu0 %vm349_vm1, %v5810_v39  ;;  %v2468_v49 = vrot.slane %v2467_v40, 4  ;;  %v2498_v51 = vshrl.u32 %v5896_v19, 16  ;;  %v2504_v52 = vshll.u32 %v5897_v18, 16  ;;  %v2487_v53 = vrot.slane %v2485_v46, 4  ;;  %v5906_v39 = vld [vmem:[%s6901_s23 + $0x44] sm:$0x1] }
  0x7c   : > { %6574 = vmatprep.mubr.msk.bf16.mxu1 %vm349_vm1, %v6813_v30  ;;  %v2490_v54 = vrot.slane %v2488_v47, 5  ;;  %v2496_v57 = vrot.slane %v2494_v48, 5  ;;  %v3964_v58 = vsel %vm398_vm0, %v7182_v56, 0  ;;  %v2478_v61 = vrot.slane %v2477_v50, 4  ;;  %v5904_v30 = vld [vmem:[%s6901_s23 + $0x3c] sm:$0xf] }
  0x7d   : > { %v2473_v60 = vsel %vm6974_vm7, %v2468_v49, %v2472_v36  ;;  %v2500_v62 = vrot.slane %v2498_v51, 4  ;;  %v2506_v63 = vrot.slane %v2504_v52, 5  ;;  %v2509_v2 = vshrl.u32 %v5898_v43, 16  ;;  %v5907_v49 = vld [vmem:[%s6901_s23 + $0x48] sm:$0xf]  ;;  %v6817_v52 = vld [vmem:[%s6901_s23 + $0x3c] sm:$0xff]  }
  0x7e   : > { %v2491_v1 = vor.u32 %v2490_v54, %v2487_v53  ;;  %v2512_v3 = vshll.u32 %v5898_v43, 16  ;;  %v2518_v4 = vshll.u32 %v5899_v44, 16  ;;  %v2483_v6 = vsel %vm6974_vm7, %v2478_v61, %v2482_v45  ;;  %v6816_v45 = vld [vmem:[%s6901_s23 + $0x30] sm:$0xff]  }
  0x7f   : > { %v2501_v7 = vor.u32 %v2500_v62, %v2496_v57  ;;  %v2522_v56 = vshrl.u32 %v5899_v44, 16  ;;  %v2528_v8 = vshll.u32 %v5900_v59, 16  ;;  %v5941_v9 = vcombine.low %v2473_v60, %v2483_v6 }
  0x80   : > { %v2492_v10 = vrot.slane %v2491_v1, 4  ;;  %v2511_v12 = vrot.slane %v2509_v2, 4  ;;  %v2514_v13 = vrot.slane %v2512_v3, 5  ;;  %v2520_v16 = vrot.slane %v2518_v4, 5 }
  0x81   : > { %v2502_v15 = vrot.slane %v2501_v7, 4  ;;  %v2524_v17 = vrot.slane %v2522_v56, 4  ;;  %v2530_v20 = vrot.slane %v2528_v8, 5  ;;  %6608 = vmatprep.mubr.msk.bf16.mxu0 %vm349_vm1, %v5941_v9  ;;  %v2533_v21 = vshrl.u32 %v5901_v5, 16  ;;  %v5910_v7 = vld [vmem:[%s6901_s23 + $0x54] sm:$0xf] }
  0x82   : > { %v2497_v22 = vsel %vm6974_vm7, %v2492_v10, %v2496_v57  ;;  %v2515_v23 = vor.u32 %v2514_v13, %v2511_v12  ;;  %v2536_v26 = vshll.u32 %v5901_v5, 16  ;;  %v2542_v19 = vshll.u32 %v5902_v14, 16  ;;  %v5908_v57 = vld [vmem:[%s6901_s23 + $0x4c] sm:$0xf] }
  0x83   : > { %6575 = vmatmul.mubr.msk.bf16.vlgmr.msra.gmra.mxu1 %vm349_vm1, %v6814_v0  ;;  %v2507_v27 = vsel %vm6974_vm7, %v2502_v15, %v2506_v63  ;;  %v2525_v28 = vor.u32 %v2524_v17, %v2520_v16  ;;  %v2546_v29 = vshrl.u32 %v5902_v14, 16  ;;  %v2535_v33 = vrot.slane %v2533_v21, 4  ;;  %v5909_v0 = vld [vmem:[%s6901_s23 + $0x50] sm:$0x1]  ;;  %v6818_v13 = vld [vmem:[%s6901_s23 + $0x48] sm:$0xff]  }
  0x84   : > { %v5942_v31 = vcombine.low %v2497_v22, %v2507_v27  ;;  %6641 = vmatpush3.bf16.msra.mxu1 %v6949_v24  ;;  %6578 = vmatprep.mubr.msk.bf16.mxu1 %vm349_vm1, %v6815_v11  ;;  %v2516_v32 = vrot.slane %v2515_v23, 4  ;;  %v2538_v34 = vrot.slane %v2536_v26, 5  ;;  %v2544_v37 = vrot.slane %v2542_v19, 5  ;;  %v5911_v11 = vld [vmem:[%s6901_s23 + $0x58] sm:$0xf] }
  0x85   : > { %v2526_v36 = vrot.slane %v2525_v28, 4  ;;  %v2548_v18 = vrot.slane %v2546_v29, 4  ;;  %v2552_v38 = vshll.u32 %v5903_v25, 16  ;;  %v2557_v41 = vshrl.u32 %v5904_v30, 16  ;;  %v6819_v22 = vld [vmem:[%s6901_s23 + $0x54] sm:$0xff]  }
  0x86   : > { %6609 = vmatmul.mubr.msk.bf16.vlgmr.msra.gmra.mxu0 %vm349_vm1, %v5942_v31  ;;  %v2521_v40 = vsel %vm6974_vm7, %v2516_v32, %v2520_v16  ;;  %v2539_v24 = vor.u32 %v2538_v34, %v2535_v33  ;;  %v2560_v43 = vshll.u32 %v5904_v30, 16  ;;  %v2566_v48 = vshll.u32 %v5905_v35, 16  ;;  %v5912_v23 = vld [vmem:[%s6901_s23 + $0x5c] sm:$0x1]  ;;  %v5913_v29 = vld [vmem:[%s6901_s23 + $0x60] sm:$0xf] }
  0x87   : > { %6675 = vmatpush3.bf16.msra.mxu0 %v3964_v58  ;;  %v2531_v44 = vsel %vm6974_vm7, %v2526_v36, %v2530_v20  ;;  %v2549_v46 = vor.u32 %v2548_v18, %v2544_v37  ;;  %v2554_v47 = vrot.slane %v2552_v38, 5  ;;  %v2559_v53 = vrot.slane %v2557_v41, 4  ;;  %v5914_v34 = vld [vmem:[%s6901_s23 + $0x64] sm:$0xf]  ;;  %v5915_v41 = vld [vmem:[%s6901_s23 + $0x68] sm:$0x1] }
  0x88   : > { %v5943_v50 = vcombine.low %v2521_v40, %v2531_v44  ;;  %v2540_v51 = vrot.slane %v2539_v24, 4  ;;  %v2562_v54 = vrot.slane %v2560_v43, 5  ;;  %v2568_v60 = vrot.slane %v2566_v48, 5  ;;  %v5916_v43 = vld [vmem:[%s6901_s23 + $0x6c] sm:$0xf] }
  0x89   : > { %v2550_v59 = vrot.slane %v2549_v46, 4  ;;  %v2570_v61 = vshrl.u32 %v5905_v35, 16  ;;  %v2576_v58 = vshll.u32 %v5906_v39, 16  ;;  %v2581_v1 = vshrl.u32 %v5907_v49, 16  ;;  %v5917_v48 = vld [vmem:[%s6901_s23 + $0x70] sm:$0xf] }
  0x8a   : > { %6612 = vmatprep.mubr.msk.bf16.mxu0 %vm349_vm1, %v5943_v50  ;;  %v2545_v62 = vsel %vm6974_vm7, %v2540_v51, %v2544_v37  ;;  %v2563_v63 = vor.u32 %v2562_v54, %v2559_v53  ;;  %v2584_v2 = vshll.u32 %v5907_v49, 16  ;;  %v2590_v6 = vshll.u32 %v5908_v57, 16 }
  0x8b   : > { %6579 = vmatmul.mubr.msk.bf16.gmra.mxu1 %vm349_vm1, %v6816_v45  ;;  %v2555_v3 = vsel %vm6974_vm7, %v2550_v59, %v2554_v47  ;;  %v2572_v4 = vrot.slane %v2570_v61, 4  ;;  %v2578_v5 = vrot.slane %v2576_v58, 5  ;;  %v2583_v9 = vrot.slane %v2581_v1, 4 }
  0x8c   : > { %v5944_v56 = vcombine.low %v2545_v62, %v2555_v3  ;;  %6582 = vmatprep.mubr.msk.bf16.mxu1 %vm349_vm1, %v6817_v52  ;;  %v2564_v8 = vrot.slane %v2563_v63, 4  ;;  %v2586_v10 = vrot.slane %v2584_v2, 5  ;;  %v2592_v14 = vrot.slane %v2590_v6, 5  ;;  %v6820_v63 = vld [vmem:[%s6901_s23 + $0x60] sm:$0xff]   ;;  %v5918_v3 = vld [vmem:[%s6901_s23 + $0x74] sm:$0x1] }
  0x8d   : > { %v2573_v12 = vor.u32 %v2572_v4, %v2568_v60  ;;  %v2594_v15 = vshrl.u32 %v5908_v57, 16  ;;  %v2600_v16 = vshll.u32 %v5909_v0, 16  ;;  %v2605_v25 = vshrl.u32 %v5910_v7, 16  ;;  %v6821_v6 = vld [vmem:[%s6901_s23 + $0x6c] sm:$0xff]  }
  0x8e   : > { %6613 = vmatmul.mubr.msk.bf16.gmra.mxu0 %vm349_vm1, %v5944_v56  ;;  %v2569_v17 = vsel %vm6974_vm7, %v2564_v8, %v2568_v60  ;;  %v2587_v20 = vor.u32 %v2586_v10, %v2583_v9  ;;  %v2608_v21 = vshll.u32 %v5910_v7, 16  ;;  %v2614_v19 = vshll.u32 %v5911_v11, 16  ;;  %v5919_v9 = vld [vmem:[%s6901_s23 + $0x78] sm:$0xf] }
  0x8f   : > { %v2574_v26 = vrot.slane %v2573_v12, 4  ;;  %v2596_v27 = vrot.slane %v2594_v15, 4  ;;  %v2602_v28 = vrot.slane %v2600_v16, 5  ;;  %v2607_v31 = vrot.slane %v2605_v25, 4 }
  0x90   : > { %v2588_v30 = vrot.slane %v2587_v20, 4  ;;  %v2610_v32 = vrot.slane %v2608_v21, 5  ;;  %v2618_v33 = vshrl.u32 %v5911_v11, 16  ;;  %v2616_v37 = vrot.slane %v2614_v19, 5 }
  0x91   : > { %v2579_v35 = vsel %vm6974_vm7, %v2574_v26, %v2578_v5  ;;  %v2597_v36 = vor.u32 %v2596_v27, %v2592_v14  ;;  %v2624_v18 = vshll.u32 %v5912_v23, 16  ;;  %v2629_v46 = vshrl.u32 %v5913_v29, 16 }
  0x92   : > { %v5945_v38 = vcombine.low %v2569_v17, %v2579_v35  ;;  %v2593_v39 = vsel %vm6974_vm7, %v2588_v30, %v2592_v14  ;;  %v2611_v40 = vor.u32 %v2610_v32, %v2607_v31  ;;  %v2620_v24 = vrot.slane %v2618_v33, 4  ;;  %v5920_v14 = vld [vmem:[%s6901_s23 + $0x7c] sm:$0xf]  ;;  %v5922_v30 = vld [vmem:[%s6901_s23 + $0x84] sm:$0xf] }
  0x93   : > { %6583 = vmatmul.mubr.msk.bf16.gmra.mxu1 %vm349_vm1, %v6818_v13  ;;  %v2598_v44 = vrot.slane %v2597_v36, 4  ;;  %v2626_v45 = vrot.slane %v2624_v18, 5  ;;  %v2632_v47 = vshll.u32 %v5913_v29, 16  ;;  %v2638_v51 = vshll.u32 %v5914_v34, 16  ;;  %v7331_v31 = vld [vmem:[%s8590_s1 + $0xe] sm:$0x3] }
  0x94   : > { %6616 = vmatprep.mubr.msk.bf16.mxu0 %vm349_vm1, %v5945_v38  ;;  %6586 = vmatprep.mubr.msk.bf16.mxu1 %vm349_vm1, %v6819_v22  ;;  %v2612_v49 = vrot.slane %v2611_v40, 4  ;;  %v2621_v50 = vor.u32 %v2620_v24, %v2616_v37  ;;  %v2642_v52 = vshrl.u32 %v5914_v34, 16  ;;  %v2631_v54 = vrot.slane %v2629_v46, 4  ;;  %v5921_v22 = vld [vmem:[%s6901_s23 + $0x80] sm:$0x1]  ;;  %v6823_v46 = vld [vmem:[%s6901_s23 + $0x84] sm:$0xff]  }
  0x95   : > { %v2603_v53 = vsel %vm6974_vm7, %v2598_v44, %v2602_v28  ;;  %v2634_v57 = vrot.slane %v2632_v47, 5  ;;  %v2648_v59 = vshll.u32 %v5915_v41, 16  ;;  %v2640_v62 = vrot.slane %v2638_v51, 5  ;;  %v5923_v36 = vld [vmem:[%s6901_s23 + $0x88] sm:$0xf]  ;;  %6786 = vmatprep.subr.msk.bf16.mxu1 %vm398_vm0, %v7331_v31 }
  0x96   : > { %v5946_v60 = vcombine.low %v2593_v39, %v2603_v53  ;;  %v2617_v61 = vsel %vm6974_vm7, %v2612_v49, %v2616_v37  ;;  %v2622_v58 = vrot.slane %v2621_v50, 4  ;;  %v2644_v1 = vrot.slane %v2642_v52, 4  ;;  %v6822_v39 = vld [vmem:[%s6901_s23 + $0x78] sm:$0xff]   ;;  %v5924_v24 = vld [vmem:[%s6901_s23 + $0x8c] sm:$0x1] }
  0x97   : > { %v2635_v0 = vor.u32 %v2634_v57, %v2631_v54  ;;  %v2650_v2 = vrot.slane %v2648_v59, 5  ;;  %v2653_v4 = vshrl.u32 %v5916_v43, 16  ;;  %v2656_v7 = vshll.u32 %v5916_v43, 16  ;;  %v5925_v41 = vld [vmem:[%s6901_s23 + $0x90] sm:$0xf] }
  0x98   : > { %6617 = vmatmul.mubr.msk.bf16.gmra.mxu0 %vm349_vm1, %v5946_v60  ;;  %v2627_v5 = vsel %vm6974_vm7, %v2622_v58, %v2626_v45  ;;  %v2662_v56 = vshll.u32 %v5917_v48, 16  ;;  %v2666_v8 = vshrl.u32 %v5917_v48, 16  ;;  %v2645_v12 = vor.u32 %v2644_v1, %v2640_v62  ;;  %v7350_v52 = vld [vmem:[%s8590_s1 + $0x10] sm:$0x3]  ;;  %v5926_v60 = vld [vmem:[%s6901_s23 + $0x94] sm:$0xf] }
  0x99   : > { %v5947_v10 = vcombine.low %v2617_v61, %v2627_v5  ;;  %v2636_v11 = vrot.slane %v2635_v0, 4  ;;  %v2655_v13 = vrot.slane %v2653_v4, 4  ;;  %v2658_v15 = vrot.slane %v2656_v7, 5  ;;  %6787 = vmatprep.subr.msk.bf16.mxu0 %vm398_vm0, %v7350_v52  ;;  %v5927_v0 = vld [vmem:[%s6901_s23 + $0x98] sm:$0x1] }
  0x9a   : > { %v2664_v16 = vrot.slane %v2662_v56, 5  ;;  %v2668_v17 = vrot.slane %v2666_v8, 4  ;;  %v2672_v20 = vshll.u32 %v5918_v3, 16  ;;  %v2646_v25 = vrot.slane %v2645_v12, 4  ;;  %v5928_v1 = vld [vmem:[%s6901_s23 + $0x9c] sm:$0xf] }
  0x9b   : > { %6620 = vmatprep.mubr.msk.bf16.mxu0 %vm349_vm1, %v5947_v10  ;;  %6587 = vmatmul.mubr.msk.bf16.gmra.mxu1 %vm349_vm1, %v6820_v63  ;;  %v2641_v23 = vsel %vm6974_vm7, %v2636_v11, %v2640_v62  ;;  %v2677_v21 = vshrl.u32 %v5919_v9, 16  ;;  %v2680_v26 = vshll.u32 %v5919_v9, 16  ;;  %v2659_v27 = vor.u32 %v2658_v15, %v2655_v13 }
  0x9c   : > { %6590 = vmatprep.mubr.msk.bf16.mxu1 %vm349_vm1, %v6821_v6  ;;  %v2669_v28 = vor.u32 %v2668_v17, %v2664_v16  ;;  %v2674_v19 = vrot.slane %v2672_v20, 5  ;;  %v2686_v29 = vshll.u32 %v5920_v14, 16  ;;  %v2651_v32 = vsel %vm6974_vm7, %v2646_v25, %v2650_v2  ;;  %v6825_v20 = vld [vmem:[%s6901_s23 + $0x9c] sm:$0xff]  }
  0x9d   : > { %v2679_v33 = vrot.slane %v2677_v21, 4  ;;  %v2682_v34 = vrot.slane %v2680_v26, 5  ;;  %v2690_v35 = vshrl.u32 %v5920_v14, 16  ;;  %v5948_v37 = vcombine.low %v2641_v23, %v2651_v32 }
  0x9e   : > { %v2660_v18 = vrot.slane %v2659_v27, 4  ;;  %v2670_v38 = vrot.slane %v2669_v28, 4  ;;  %v2688_v40 = vrot.slane %v2686_v29, 5  ;;  %v2696_v45 = vshll.u32 %v5921_v22, 16  ;;  %v5929_v22 = vld [vmem:[%s6901_s23 + $0xa0] sm:$0xf] }
  0x9f   : > { %v2683_v43 = vor.u32 %v2682_v34, %v2679_v33  ;;  %v2692_v44 = vrot.slane %v2690_v35, 4  ;;  %v2701_v47 = vshrl.u32 %v5922_v30, 16  ;;  %v2704_v50 = vshll.u32 %v5922_v30, 16  ;;  %v5930_v29 = vld [vmem:[%s6901_s23 + $0xa4] sm:$0x1] }
  0xa0   : > { %6621 = vmatmul.mubr.msk.bf16.gmra.mxu0 %vm349_vm1, %v5948_v37  ;;  %v2665_v48 = vsel %vm6974_vm7, %v2660_v18, %v2664_v16  ;;  %v2675_v49 = vsel %vm6974_vm7, %v2670_v38, %v2674_v19  ;;  %v2710_v51 = vshll.u32 %v5923_v36, 16  ;;  %v2698_v59 = vrot.slane %v2696_v45, 5  ;;  %v6824_v16 = vld [vmem:[%s6901_s23 + $0x90] sm:$0xff]  }
  0xa1   : > { %v5949_v53 = vcombine.low %v2665_v48, %v2675_v49  ;;  %v2684_v54 = vrot.slane %v2683_v43, 4  ;;  %v2693_v57 = vor.u32 %v2692_v44, %v2688_v40  ;;  %v2703_v61 = vrot.slane %v2701_v47, 4  ;;  %v5933_v48 = vld [vmem:[%s6901_s23 + $0xb0] sm:$0x1] }
  0xa2   : > { %v2706_v58 = vrot.slane %v2704_v50, 5  ;;  %v2712_v62 = vrot.slane %v2710_v51, 5  ;;  %v2714_v63 = vshrl.u32 %v5923_v36, 16  ;;  %v2720_v4 = vshll.u32 %v5924_v24, 16  ;;  %v5931_v36 = vld [vmem:[%s6901_s23 + $0xa8] sm:$0xf] }
  0xa3   : > { %6624 = vmatprep.mubr.msk.bf16.mxu0 %vm349_vm1, %v5949_v53  ;;  %6591 = vmatmul.mubr.msk.bf16.gmra.mxu1 %vm349_vm1, %v6822_v39  ;;  %v2689_v2 = vsel %vm6974_vm7, %v2684_v54, %v2688_v40  ;;  %v2694_v3 = vrot.slane %v2693_v57, 4  ;;  %v2725_v5 = vshrl.u32 %v5925_v41, 16  ;;  %v2728_v56 = vshll.u32 %v5925_v41, 16  ;;  %v5932_v40 = vld [vmem:[%s6901_s23 + $0xac] sm:$0xf] }
  0xa4   : > { %6594 = vmatprep.mubr.msk.bf16.mxu1 %vm349_vm1, %v6823_v46  ;;  %v2707_v6 = vor.u32 %v2706_v58, %v2703_v61  ;;  %v2716_v7 = vrot.slane %v2714_v63, 4  ;;  %v2734_v8 = vshll.u32 %v5926_v60, 16  ;;  %v2722_v10 = vrot.slane %v2720_v4, 5  ;;  %v6826_v53 = vld [vmem:[%s6901_s23 + $0xa8] sm:$0xff]   ;;  %v5935_v63 = vld [vmem:[%s6901_s23 + $0xb8] sm:$0xf] }
  0xa5   : > { %v2699_v9 = vsel %vm6974_vm7, %v2694_v3, %v2698_v59  ;;  %v2727_v11 = vrot.slane %v2725_v5, 4  ;;  %v2738_v12 = vshrl.u32 %v5926_v60, 16  ;;  %v2730_v17 = vrot.slane %v2728_v56, 5  ;;  %v5934_v59 = vld [vmem:[%s6901_s23 + $0xb4] sm:$0xf] }
  0xa6   : > { %v5950_v13 = vcombine.low %v2689_v2, %v2699_v9  ;;  %v2708_v14 = vrot.slane %v2707_v6, 4  ;;  %v2717_v15 = vor.u32 %v2716_v7, %v2712_v62  ;;  %v2736_v23 = vrot.slane %v2734_v8, 5  ;;  %v6827_v6 = vld [vmem:[%s6901_s23 + $0xb4] sm:$0xff]   ;;  %v5936_v7 = vld [vmem:[%s6901_s23 + $0xbc] sm:$0x1] }
  0xa7   : > { %v2740_v25 = vrot.slane %v2738_v12, 4  ;;  %v2744_v21 = vshll.u32 %v5927_v0, 16  ;;  %v2749_v26 = vshrl.u32 %v5928_v1, 16  ;;  %v2731_v19 = vor.u32 %v2730_v17, %v2727_v11 }
  0xa8   : > { %6625 = vmatmul.mubr.msk.bf16.gmra.mxu0 %vm349_vm1, %v5950_v13  ;;  %v2713_v27 = vsel %vm6974_vm7, %v2708_v14, %v2712_v62  ;;  %v2718_v28 = vrot.slane %v2717_v15, 4  ;;  %v2752_v30 = vshll.u32 %v5928_v1, 16  ;;  %v2758_v35 = vshll.u32 %v5929_v22, 16  ;;  %v5937_v13 = vld [vmem:[%s6901_s23 + $0xc0] sm:$0xf] }
  0xa9   : > { %v2741_v32 = vor.u32 %v2740_v25, %v2736_v23  ;;  %v2746_v33 = vrot.slane %v2744_v21, 5  ;;  %v2751_v34 = vrot.slane %v2749_v26, 4  ;;  %v2732_v18 = vrot.slane %v2731_v19, 4  ;;  %v5939_v26 = vld [vmem:[%s6901_s23 + $0xc8] sm:$0x1] }
  0xaa   : > { %v2723_v37 = vsel %vm6974_vm7, %v2718_v28, %v2722_v10  ;;  %v2754_v38 = vrot.slane %v2752_v30, 5  ;;  %v2762_v39 = vshrl.u32 %v5929_v22, 16  ;;  %v2760_v43 = vrot.slane %v2758_v35, 5  ;;  %v5973_v30 = vld [vmem:[%s6901_s23 + $0xc] sm:$0xe] }
  0xab   : > { %v5951_v24 = vcombine.low %v2713_v27, %v2723_v37  ;;  %6595 = vmatmul.mubr.msk.bf16.gmra.mxu1 %vm349_vm1, %v6824_v16  ;;  %v2742_v41 = vrot.slane %v2741_v32, 4  ;;  %v2768_v44 = vshll.u32 %v5930_v29, 16  ;;  %v2737_v45 = vsel %vm6974_vm7, %v2732_v18, %v2736_v23  ;;  %v5974_v32 = vld [vmem:[%s6901_s23 + $0x10] sm:$0xf]  ;;  %v5975_v37 = vld [vmem:[%s6901_s23 + $0x14] sm:$0x1] }
  0xac   : > { %6598 = vmatprep.mubr.msk.bf16.mxu1 %vm349_vm1, %v6825_v20  ;;  %v2755_v46 = vor.u32 %v2754_v38, %v2751_v34  ;;  %v2764_v47 = vrot.slane %v2762_v39, 4  ;;  %v2773_v49 = vshrl.u32 %v5931_v36, 16  ;;  %v2776_v54 = vshll.u32 %v5931_v36, 16  ;;  %v5938_v20 = vld [vmem:[%s6901_s23 + $0xc4] sm:$0xf] }
  0xad   : > { %6628 = vmatprep.mubr.msk.bf16.mxu0 %vm349_vm1, %v5951_v24  ;;  %v2747_v50 = vsel %vm6974_vm7, %v2742_v41, %v2746_v33  ;;  %v2770_v51 = vrot.slane %v2768_v44, 5  ;;  %v2782_v57 = vshll.u32 %v5932_v40, 16  ;;  %v2786_v2 = vshrl.u32 %v5932_v40, 16  ;;  %v5976_v24 = vld [vmem:[%s6901_s23 + $0x18] sm:$0xe] }
  0xae   : > { %v5952_v60 = vcombine.low %v2737_v45, %v2747_v50  ;;  %v2756_v61 = vrot.slane %v2755_v46, 4  ;;  %v2765_v58 = vor.u32 %v2764_v47, %v2760_v43  ;;  %v2775_v62 = vrot.slane %v2773_v49, 4  ;;  %v5977_v47 = vld [vmem:[%s6901_s23 + $0x1c] sm:$0xf] }
  0xaf   : > { %v2778_v0 = vrot.slane %v2776_v54, 5  ;;  %v2784_v1 = vrot.slane %v2782_v57, 5  ;;  %v2792_v3 = vshll.u32 %v5933_v48, 16  ;;  %v2797_v56 = vshrl.u32 %v5934_v59, 16  ;;  %v5978_v48 = vld [vmem:[%s6901_s23 + $0x20] sm:$0x1] }
  0xb0   : > { %6629 = vmatmul.mubr.msk.bf16.gmra.mxu0 %vm349_vm1, %v5952_v60  ;;  %v2761_v4 = vsel %vm6974_vm7, %v2756_v61, %v2760_v43  ;;  %v2766_v5 = vrot.slane %v2765_v58, 4  ;;  %v2800_v8 = vshll.u32 %v5934_v59, 16  ;;  %v2788_v10 = vrot.slane %v2786_v2, 4  ;;  %v6828_v43 = vld [vmem:[%s6901_s23 + $0xc0] sm:$0xff]   ;;  %v5980_v58 = vld [vmem:[%s6901_s23 + $0x28] sm:$0xf] }
  0xb1   : > { %v2779_v9 = vor.u32 %v2778_v0, %v2775_v62  ;;  %v2794_v11 = vrot.slane %v2792_v3, 5  ;;  %v2806_v12 = vshll.u32 %v5935_v63, 16  ;;  %v2799_v15 = vrot.slane %v2797_v56, 4  ;;  %v5979_v54 = vld [vmem:[%s6901_s23 + $0x24] sm:$0xe] }
  0xb2   : > { %v2771_v14 = vsel %vm6974_vm7, %v2766_v5, %v2770_v51  ;;  %v2802_v16 = vrot.slane %v2800_v8, 5  ;;  %v2810_v17 = vshrl.u32 %v5935_v63, 16  ;;  %v2789_v25 = vor.u32 %v2788_v10, %v2784_v1  ;;  %v5981_v2 = vld [vmem:[%s6901_s23 + $0x2c] sm:$0x1]  ;;  %v5982_v3 = vld [vmem:[%s6901_s23 + $0x30] sm:$0xe] }
  0xb3   : > { %v5953_v22 = vcombine.low %v2761_v4, %v2771_v14  ;;  %6599 = vmatmul.mubr.msk.bf16.gmra.mxu1 %vm349_vm1, %v6826_v53  ;;  %v2780_v23 = vrot.slane %v2779_v9, 4  ;;  %v2808_v21 = vrot.slane %v2806_v12, 5  ;;  %v2816_v19 = vshll.u32 %v5936_v7, 16  ;;  %v5984_v12 = vld [vmem:[%s6901_s23 + $0x38] sm:$0x1] }
  0xb4   : > { %6602 = vmatprep.mubr.msk.bf16.mxu1 %vm349_vm1, %v6827_v6  ;;  %v2803_v27 = vor.u32 %v2802_v16, %v2799_v15  ;;  %v2812_v28 = vrot.slane %v2810_v17, 4  ;;  %v2821_v29 = vshrl.u32 %v5937_v13, 16  ;;  %v2790_v34 = vrot.slane %v2789_v25, 4  ;;  %v6829_v16 = vld [vmem:[%s6901_s23 + $0x18] sm:$0xff]  }
  0xb5   : > { %6632 = vmatprep.mubr.msk.bf16.mxu0 %vm349_vm1, %v5953_v22  ;;  %v2785_v33 = vsel %vm6974_vm7, %v2780_v23, %v2784_v1  ;;  %v2824_v35 = vshll.u32 %v5937_v13, 16  ;;  %v2830_v36 = vshll.u32 %v5938_v20, 16  ;;  %v2818_v39 = vrot.slane %v2816_v19, 5  ;;  %v5985_v13 = vld [vmem:[%s6901_s23 + $0x3c] sm:$0xe] }
  0xb6   : > { %v2804_v18 = vrot.slane %v2803_v27, 4  ;;  %v2813_v38 = vor.u32 %v2812_v28, %v2808_v21  ;;  %v2823_v40 = vrot.slane %v2821_v29, 4  ;;  %v2795_v41 = vsel %vm6974_vm7, %v2790_v34, %v2794_v11  ;;  %v5983_v11 = vld [vmem:[%s6901_s23 + $0x34] sm:$0xf]  ;;  %v5986_v22 = vld [vmem:[%s6901_s23 + $0x40] sm:$0xf] }
  0xb7   : > { %v2826_v44 = vrot.slane %v2824_v35, 5  ;;  %v2832_v45 = vrot.slane %v2830_v36, 5  ;;  %v2834_v46 = vshrl.u32 %v5938_v20, 16  ;;  %v5954_v49 = vcombine.low %v2785_v33, %v2795_v41  ;;  %v5987_v23 = vld [vmem:[%s6901_s23 + $0x44] sm:$0x1] }
  0xb8   : > { %v2809_v50 = vsel %vm6974_vm7, %v2804_v18, %v2808_v21  ;;  %v2814_v51 = vrot.slane %v2813_v38, 4  ;;  %v2840_v53 = vshll.u32 %v5939_v26, 16  ;;  %v6021_v60 = vrot.slane %v5973_v30, 9  ;;  %v5989_v28 = vld [vmem:[%s6901_s23 + $0x4c] sm:$0xf] }
  0xb9   : > { %v2827_v57 = vor.u32 %v2826_v44, %v2823_v40  ;;  %v2836_v59 = vrot.slane %v2834_v46, 4  ;;  %v3300_v61 = vrot.slane %v5974_v32, 5  ;;  %6633 = vmatmul.mubr.msk.bf16.gmra.mxu0 %vm349_vm1, %v5954_v49  ;;  %v3303_v0 = vrot.slane %v5975_v37, 5  ;;  %v5990_v32 = vld [vmem:[%s6901_s23 + $0x50] sm:$0x1] }
  0xba   : > { %v2819_v62 = vsel %vm6974_vm7, %v2814_v51, %v2818_v39  ;;  %v2842_v63 = vrot.slane %v2840_v53, 5  ;;  %v6022_v1 = vrot.slane %v5976_v24, 9  ;;  %v3307_v8 = vrot.slane %v5977_v47, 5  ;;  %v5991_v37 = vld [vmem:[%s6901_s23 + $0x54] sm:$0xe] }
  0xbb   : > { %v5955_v4 = vcombine.low %v2809_v50, %v2819_v62  ;;  %6603 = vmatmul.mubr.msk.bf16.gmra.mxu1 %vm349_vm1, %v6828_v43  ;;  %v2828_v5 = vrot.slane %v2827_v57, 4  ;;  %v2837_v6 = vor.u32 %v2836_v59, %v2832_v45  ;;  %v3301_v7 = vsel %vm6960_vm6, %v6021_v60, %v3300_v61  ;;  %v5992_v18 = vld [vmem:[%s6901_s23 + $0x58] sm:$0xf]  ;;  %v5993_v41 = vld [vmem:[%s6901_s23 + $0x5c] sm:$0x1]  ;;  %v6830_v59 = vld [vmem:[%s6901_s23 + $0x24] sm:$0xff]  }
  0xbc   : > { %v3302_v56 = vrot.slane %v3300_v61, 4  ;;  %v3310_v9 = vrot.slane %v5978_v48, 5  ;;  %v4754_v10 = vsel %vm398_vm0, %v7331_v31, 0  ;;  %v7433_v17 = vsel %vm398_vm0, %v7350_v52, 0  ;;  %v5988_v31 = vld [vmem:[%s6901_s23 + $0x48] sm:$0xe] }
  0xbd   : > { %6636 = vmatprep.mubr.msk.bf16.mxu0 %vm349_vm1, %v5955_v4  ;;  %v2833_v14 = vsel %vm6974_vm7, %v2828_v5, %v2832_v45  ;;  %v2838_v15 = vrot.slane %v2837_v6, 4  ;;  %v6023_v20 = vrot.slane %v5979_v54, 9  ;;  %v3308_v21 = vsel %vm6960_vm6, %v6022_v1, %v3307_v8  ;;  %v5994_v43 = vld [vmem:[%s6901_s23 + $0x60] sm:$0xe]  ;;  %v5995_v53 = vld [vmem:[%s6901_s23 + $0x64] sm:$0xf] }
  0xbe   : > { %v3304_v25 = vsel %vm6960_vm6, %v3302_v56, %v3303_v0  ;;  %v3309_v26 = vrot.slane %v3307_v8, 4  ;;  %v3314_v27 = vrot.slane %v5980_v58, 5  ;;  %v3317_v29 = vrot.slane %v5981_v2, 5  ;;  %v5996_v54 = vld [vmem:[%s6901_s23 + $0x68] sm:$0x1] }
  0xbf   : > { %v2843_v19 = vsel %vm6974_vm7, %v2838_v15, %v2842_v63  ;;  %v6038_v52 = vcombine.low %v3301_v7, %v3304_v25  ;;  %v6024_v30 = vrot.slane %v5982_v3, 9  ;;  %v3321_v39 = vrot.slane %v5983_v11, 5  ;;  %v5997_v57 = vld [vmem:[%s6901_s23 + $0x6c] sm:$0xe]  ;;  %v5998_v63 = vld [vmem:[%s6901_s23 + $0x70] sm:$0xf] }
  0xc0   : > { %v5956_v33 = vcombine.low %v2833_v14, %v2843_v19  ;;  %v3311_v34 = vsel %vm6960_vm6, %v3309_v26, %v3310_v9  ;;  %v3315_v35 = vsel %vm6960_vm6, %v6023_v20, %v3314_v27  ;;  %v3316_v36 = vrot.slane %v3314_v27, 4  ;;  %v5999_v0 = vld [vmem:[%s6901_s23 + $0x74] sm:$0x1]  ;;  %v6000_v1 = vld [vmem:[%s6901_s23 + $0x78] sm:$0xe] }
  0xc1   : > { %6642 = vmatprep.mubr.msk.bf16.mxu1 %vm349_vm1, %v6038_v52  ;;  %v6039_v38 = vcombine.low %v3308_v21, %v3311_v34  ;;  %v3324_v40 = vrot.slane %v5984_v12, 5  ;;  %v6025_v24 = vrot.slane %v5985_v13, 9  ;;  %v3328_v45 = vrot.slane %v5986_v22, 5  ;;  %v6001_v6 = vld [vmem:[%s6901_s23 + $0x7c] sm:$0xf]  ;;  %v6831_v12 = vld [vmem:[%s6901_s23 + $0x30] sm:$0xff]  }
  0xc2   : > { %6637 = vmatmul.mubr.msk.bf16.gmra.mxu0 %vm349_vm1, %v5956_v33  ;;  %v3318_v44 = vsel %vm6960_vm6, %v3316_v36, %v3317_v29  ;;  %v3331_v46 = vrot.slane %v5987_v23, 5  ;;  %v6026_v47 = vrot.slane %v5988_v31, 9  ;;  %v7462_v49 = vsel %vm6960_vm6, %v6024_v30, %v3321_v39  ;;  %v6003_v11 = vld [vmem:[%s6901_s23 + $0x84] sm:$0xe]  ;;  %v6004_v20 = vld [vmem:[%s6901_s23 + $0x88] sm:$0xf] }
  0xc3   : > { %6676 = vmatprep.mubr.msk.bf16.mxu0 %vm349_vm1, %v6829_v16  ;;  %6643 = vmatmul.mubr.msk.bf16.vlgmr.msra.gmra.mxu1 %vm349_vm1, %v6039_v38  ;;  %v6040_v48 = vcombine.low %v3315_v35, %v3318_v44  ;;  %v3323_v50 = vrot.slane %v3321_v39, 4  ;;  %v3335_v51 = vrot.slane %v5989_v28, 5  ;;  %v3329_v60 = vsel %vm6960_vm6, %v6025_v24, %v3328_v45  ;;  %v6005_v21 = vld [vmem:[%s6901_s23 + $0x8c] sm:$0x1]  ;;  %v6006_v52 = vld [vmem:[%s6901_s23 + $0x90] sm:$0xe] }
  0xc4   : > { %6709 = vmatpush3.bf16.msra.mxu1 %v4754_v10  ;;  %v3330_v61 = vrot.slane %v3328_v45, 4  ;;  %v3338_v58 = vrot.slane %v5990_v32, 5  ;;  %v6027_v62 = vrot.slane %v5991_v37, 9  ;;  %v3342_v5 = vrot.slane %v5992_v18, 5  ;;  %v6002_v10 = vld [vmem:[%s6901_s23 + $0x80] sm:$0x1] }
  0xc5   : > { %6646 = vmatprep.mubr.msk.bf16.mxu1 %vm349_vm1, %v6040_v48  ;;  %v3325_v2 = vsel %vm6960_vm6, %v3323_v50, %v3324_v40  ;;  %v7478_v3 = vsel %vm6960_vm6, %v6026_v47, %v3335_v51  ;;  %v3337_v4 = vrot.slane %v3335_v51, 4  ;;  %v3345_v8 = vrot.slane %v5993_v41, 5  ;;  %v6007_v35 = vld [vmem:[%s6901_s23 + $0x94] sm:$0xf]  ;;  %v7515_v36 = vld [vmem:[%s6901_s23 + $0x98] sm:$0x1] }
  0xc6   : > { %v6041_v7 = vcombine.low %v7462_v49, %v3325_v2  ;;  %v3332_v56 = vsel %vm6960_vm6, %v3330_v61, %v3331_v46  ;;  %v6028_v9 = vrot.slane %v5994_v43, 9  ;;  %v7493_v15 = vsel %vm6960_vm6, %v6027_v62, %v3342_v5  ;;  %v6009_v37 = vld [vmem:[%s6901_s23 + $0x9c] sm:$0xe]  ;;  %v6010_v41 = vld [vmem:[%s6901_s23 + $0xa0] sm:$0xf] }
  0xc7   : > { %v6042_v13 = vcombine.low %v3329_v60, %v3332_v56  ;;  %v7489_v14 = vsel %vm6960_vm6, %v3337_v4, %v3338_v58  ;;  %v3344_v16 = vrot.slane %v3342_v5, 4  ;;  %v3349_v23 = vrot.slane %v5995_v53, 5  ;;  %v6011_v43 = vld [vmem:[%s6901_s23 + $0xa4] sm:$0x1]  ;;  %v6012_v44 = vld [vmem:[%s6901_s23 + $0xa8] sm:$0xe] }
  0xc8   : > { %v6043_v22 = vcombine.low %v7478_v3, %v7489_v14  ;;  %v3352_v31 = vrot.slane %v5996_v54, 5  ;;  %v6029_v25 = vrot.slane %v5997_v57, 9  ;;  %v3356_v27 = vrot.slane %v5998_v63, 5  ;;  %v6013_v49 = vld [vmem:[%s6901_s23 + $0xac] sm:$0xf]  ;;  %v6832_v61 = vld [vmem:[%s6901_s23 + $0x3c] sm:$0xff]  }
  0xc9   : > { %v7501_v26 = vsel %vm6960_vm6, %v3344_v16, %v3345_v8  ;;  %v3359_v28 = vrot.slane %v5999_v0, 5  ;;  %v6030_v19 = vrot.slane %v6000_v1, 9  ;;  %v7509_v30 = vsel %vm6960_vm6, %v6028_v9, %v3349_v23  ;;  %v6015_v60 = vld [vmem:[%s6901_s23 + $0xb4] sm:$0xe]  ;;  %v6016_v2 = vld [vmem:[%s6901_s23 + $0xb8] sm:$0xf] }
  0xca   : > { %6677 = vmatmul.mubr.msk.bf16.vlgmr.msra.gmra.mxu0 %vm349_vm1, %v6830_v59  ;;  %v6044_v29 = vcombine.low %v7493_v15, %v7501_v26  ;;  %v3351_v32 = vrot.slane %v3349_v23, 4  ;;  %v3363_v34 = vrot.slane %v6001_v6, 5  ;;  %v7522_v18 = vsel %vm6960_vm6, %v6029_v25, %v3356_v27  ;;  %v6014_v59 = vld [vmem:[%s6901_s23 + $0xb0] sm:$0x1]  ;;  %v6833_v4 = vld [vmem:[%s6901_s23 + $0x48] sm:$0xff]   ;;  %v6834_v26 = vld [vmem:[%s6901_s23 + $0x54] sm:$0xff]  }
  0xcb   : > { %6743 = vmatpush3.bf16.msra.mxu0 %v7433_v17  ;;  %6680 = vmatprep.mubr.msk.bf16.mxu0 %vm349_vm1, %v6831_v12  ;;  %v3358_v38 = vrot.slane %v3356_v27, 4  ;;  %v3366_v40 = vrot.slane %v6002_v10, 5  ;;  %v6031_v24 = vrot.slane %v6003_v11, 9  ;;  %v3370_v48 = vrot.slane %v6004_v20, 5  ;;  %v6017_v9 = vld [vmem:[%s6901_s23 + $0xbc] sm:$0x1] }
  0xcc   : > { %6647 = vmatmul.mubr.msk.bf16.gmra.mxu1 %vm349_vm1, %v6041_v7  ;;  %v7532_v17 = vsel %vm6960_vm6, %v3351_v32, %v3352_v31  ;;  %v7536_v45 = vsel %vm6960_vm6, %v6030_v19, %v3363_v34  ;;  %v3365_v46 = vrot.slane %v3363_v34, 4  ;;  %v3373_v54 = vrot.slane %v6005_v21, 5  ;;  %v6018_v20 = vld [vmem:[%s6901_s23 + $0xc0] sm:$0xe]  ;;  %v6216_v15 = vld [vmem:[%s6901_s23 + $0x18] sm:$0xe] }
  0xcd   : > { %6650 = vmatprep.mubr.msk.bf16.mxu1 %vm349_vm1, %v6042_v13  ;;  %v6045_v50 = vcombine.low %v7509_v30, %v7532_v17  ;;  %v7546_v51 = vsel %vm6960_vm6, %v3358_v38, %v3359_v28  ;;  %v6032_v57 = vrot.slane %v6006_v52, 9  ;;  %v7563_v0 = vsel %vm6960_vm6, %v6031_v24, %v3370_v48  ;;  %v6019_v28 = vld [vmem:[%s6901_s23 + $0xc4] sm:$0xf]  ;;  %v6140_v14 = vld [vmem:[%s6901_s23 + $0x2c] sm:$0x1] }
  0xce   : > { %v6046_v58 = vcombine.low %v7522_v18, %v7546_v51  ;;  %v7557_v62 = vsel %vm6960_vm6, %v3365_v46, %v3366_v40  ;;  %v3372_v1 = vrot.slane %v3370_v48, 4  ;;  %v3377_v7 = vrot.slane %v6007_v35, 5  ;;  %v6141_v51 = vld [vmem:[%s6901_s23 + $0x30] sm:$0xf] }
  0xcf   : > { %v3380_v56 = vrot.slane %v7515_v36, 5  ;;  %v6033_v8 = vrot.slane %v6009_v37, 9  ;;  %v3384_v12 = vrot.slane %v6010_v41, 5  ;;  %v3387_v13 = vrot.slane %v6011_v43, 5  ;;  %v6020_v41 = vld [vmem:[%s6901_s23 + $0xc8] sm:$0x1] }
  0xd0   : > { %v7577_v11 = vsel %vm6960_vm6, %v3372_v1, %v3373_v54  ;;  %v6034_v16 = vrot.slane %v6012_v44, 9  ;;  %v7586_v25 = vsel %vm6960_vm6, %v6032_v57, %v3377_v7  ;;  %v3379_v21 = vrot.slane %v3377_v7, 4  ;;  %v6135_v43 = vld [vmem:[%s6901_s23 + $0x18] sm:$0xf]  ;;  %v6136_v57 = vld [vmem:[%s6901_s23 + $0x1c] sm:$0xf] }
  0xd1   : > { %v3391_v27 = vrot.slane %v6013_v49, 5  ;;  %v7594_v52 = vsel %vm6960_vm6, %v6033_v8, %v3384_v12  ;;  %v3386_v32 = vrot.slane %v3384_v12, 4  ;;  %v3394_v34 = vrot.slane %v6014_v59, 5  ;;  %v6835_v8 = vld [vmem:[%s6901_s23 + $0x60] sm:$0xff]  }
  0xd2   : > { %6681 = vmatmul.mubr.msk.bf16.gmra.mxu0 %vm349_vm1, %v6832_v61  ;;  %v6035_v35 = vrot.slane %v6015_v60, 9  ;;  %v7601_v37 = vsel %vm6960_vm6, %v3379_v21, %v3380_v56  ;;  %v3398_v24 = vrot.slane %v6016_v2, 5  ;;  %v3401_v49 = vrot.slane %v6017_v9, 5  ;;  %v6137_v61 = vld [vmem:[%s6901_s23 + $0x20] sm:$0x1] }
  0xd3   : > { %v7511_v33 = vpop.f32.mrf.mxu0  ;;  %6684 = vmatprep.mubr.msk.bf16.mxu0 %vm349_vm1, %v6833_v4  ;;  %v7605_v38 = vsel %vm6960_vm6, %v6034_v16, %v3391_v27  ;;  %v3393_v40 = vrot.slane %v3391_v27, 4  ;;  %v7619_v48 = vsel %vm6960_vm6, %v3386_v32, %v3387_v13  ;;  %v6036_v54 = vrot.slane %v6018_v20, 9  ;;  %v6217_v56 = vld [vmem:[%s6901_s23 + $0x1c] sm:$0xf]  ;;  %v6218_v21 = vld [vmem:[%s6901_s23 + $0x20] sm:$0x1] }
  0xd4   : > { %v7524_v39 = vpop.f32.mrf.mxu1  ;;  %6651 = vmatmul.mubr.msk.bf16.gmra.mxu1 %vm349_vm1, %v6043_v22  ;;  %v7636_v59 = vsel %vm6960_vm6, %v6035_v35, %v3398_v24  ;;  %v3400_v60 = vrot.slane %v3398_v24, 4  ;;  %v3405_v2 = vrot.slane %v6019_v28, 5  ;;  %v3408_v4 = vrot.slane %v6020_v41, 5 }
  0xd5   : > { %v7538_v47 = vpop.f32.mrf.mxu0  ;;  %6654 = vmatprep.mubr.msk.bf16.mxu1 %vm349_vm1, %v6044_v29  ;;  %v7632_v22 = vsel %vm6960_vm6, %v3393_v40, %v3394_v34  ;;  %v4240_v7 = vshrl.u32 %v6135_v43, 16  ;;  %v4243_v13 = vshll.u32 %v6135_v43, 16  ;;  %v4249_v16 = vshll.u32 %v6136_v57, 16 }
  0xd6   : > { %v7548_v53 = vpop.f32.mrf.mxu1  ;;  %v7651_v12 = vsel %vm6960_vm6, %v3400_v60, %v3401_v49  ;;  %v4253_v20 = vshrl.u32 %v6136_v57, 16  ;;  %v7660_v32 = vsel %vm6960_vm6, %v6036_v54, %v3405_v2  ;;  %v3407_v34 = vrot.slane %v3405_v2, 4  ;;  %v6138_v57 = vld [vmem:[%s6901_s23 + $0x24] sm:$0xf] }
  0xd7   : > { %v7559_v63 = vpop.f32.mrf.mxu0  ;;  %v4242_v35 = vrot.slane %v4240_v7, 4  ;;  %v4245_v24 = vrot.slane %v4243_v13, 5  ;;  %v4251_v41 = vrot.slane %v4249_v16, 5  ;;  %v4259_v49 = vshll.u32 %v6137_v61, 16  ;;  %v6139_v7 = vld [vmem:[%s6901_s23 + $0x28] sm:$0xf] }
  0xd8   : > { %v7569_v6 = vpop.f32.mrf.mxu1  ;;  %v4255_v43 = vrot.slane %v4253_v20, 4  ;;  %v7670_v28 = vsel %vm6960_vm6, %v3407_v34, %v3408_v4  ;;  %v6264_v54 = vrot.slane %v6216_v15, 9  ;;  %v5079_v29 = vrot.slane %v6217_v56, 5  ;;  %v6219_v34 = vld [vmem:[%s6901_s23 + $0x24] sm:$0xe] }
  0xd9   : > { %v7573_v10 = vpop.f32.mrf.mxu0  ;;  %v5082_v2 = vrot.slane %v6218_v21, 5  ;;  %v4261_v20 = vrot.slane %v4259_v49, 5  ;;  %v4267_v21 = vshll.u32 %v6138_v57, 16  ;;  %v6221_v49 = vld [vmem:[%s6901_s23 + $0x2c] sm:$0x1]  ;;  %v4283_v18 = vshll.u32 %v6140_v14, 16 }
  0xda   : > { %v7580_v23 = vpop.f32.mrf.mxu1  ;;  %6685 = vmatmul.mubr.msk.bf16.gmra.mxu0 %vm349_vm1, %v6834_v26  ;;  %v4246_v26 = vor.u32 %v4245_v24, %v4242_v35  ;;  %v4256_v16 = vor.u32 %v4255_v43, %v4251_v41  ;;  %v7687_v4 = vsel %vm6960_vm6, %v6264_v54, %v5079_v29  ;;  %v5081_v56 = vrot.slane %v5079_v29, 4  ;;  %v6220_v35 = vld [vmem:[%s6901_s23 + $0x28] sm:$0xf]  ;;  %v6836_v29 = vld [vmem:[%s6901_s23 + $0x6c] sm:$0xff]  }
  0xdb   : > { %8597 = vst [vmem:[#allocation3_spill] sm:$0xff] %v7580_v23  ;;  %v7590_v19 = vpop.f32.mrf.mxu0  ;;  %6688 = vmatprep.mubr.msk.bf16.mxu0 %vm349_vm1, %v6835_v8  ;;  %v4264_v8 = vshrl.u32 %v6138_v57, 16  ;;  %v4273_v24 = vshll.u32 %v6139_v7, 16  ;;  %v4277_v43 = vshrl.u32 %v6139_v7, 16  ;;  %v4269_v44 = vrot.slane %v4267_v21, 5 }
  0xdc   : > { %v7597_v36 = vpop.f32.mrf.mxu1  ;;  %6655 = vmatmul.mubr.msk.bf16.gmra.mxu1 %vm349_vm1, %v6045_v50  ;;  %v4247_v17 = vrot.slane %v4246_v26, 4  ;;  %v4257_v50 = vrot.slane %v4256_v16, 4  ;;  %v7703_v57 = vsel %vm6960_vm6, %v5081_v56, %v5082_v2  ;;  %v6142_v2 = vld [vmem:[%s6901_s23 + $0x34] sm:$0xf] }
  0xdd   : > { %8598 = vst [vmem:[#allocation4_spill] sm:$0xff] %v7597_v36  ;;  %v7615_v46 = vpop.f32.mrf.mxu0  ;;  %6658 = vmatprep.mubr.msk.bf16.mxu1 %vm349_vm1, %v6046_v58  ;;  %v4266_v61 = vrot.slane %v4264_v8, 4  ;;  %v6837_v58 = vld [vmem:[%s6901_s23 + $0x78] sm:$0xff]   ;;  %v4275_v5 = vrot.slane %v4273_v24, 5  ;;  %v4279_v21 = vrot.slane %v4277_v43, 4 }
  0xde   : > { %v7626_v3 = vpop.f32.mrf.mxu1  ;;  %v4252_v26 = vsel %vm6974_vm7, %v4247_v17, %v4251_v41  ;;  %v4262_v7 = vsel %vm6974_vm7, %v4257_v50, %v4261_v20  ;;  %v5086_v41 = vrot.slane %v6220_v35, 5  ;;  %v5089_v17 = vrot.slane %v6221_v49, 5  ;;  %v6143_v20 = vld [vmem:[%s6901_s23 + $0x38] sm:$0x1] }
  0xdf   : > { %8599 = vst [vmem:[#allocation5_spill] sm:$0xff] %v7626_v3  ;;  %v7641_v1 = vpop.f32.mrf.mxu0  ;;  %v7718_v8 = vcombine.low %v4252_v26, %v4262_v7  ;;  %v4270_v14 = vor.u32 %v4269_v44, %v4266_v61  ;;  %v4288_v50 = vshrl.u32 %v6141_v51, 16  ;;  %v4291_v26 = vshll.u32 %v6141_v51, 16  ;;  %v6222_v44 = vld [vmem:[%s6901_s23 + $0x30] sm:$0xe] }
  0xe0   : > { %v7647_v9 = vpop.f32.mrf.mxu1  ;;  %v4297_v7 = vshll.u32 %v6142_v2, 16  ;;  %v5088_v35 = vrot.slane %v5086_v41, 4  ;;  %v4301_v49 = vshrl.u32 %v6142_v2, 16  ;;  %v8608_v2 = vcombine.low %v7563_v0, %v7577_v11 }
  0xe1   : > { %8600 = vst [vmem:[#allocation6_spill] sm:$0xff] %v7647_v9  ;;  %v7654_v27 = vpop.f32.mrf.mxu0  ;;  %v4271_v16 = vrot.slane %v4270_v14, 4  ;;  %v4290_v43 = vrot.slane %v4288_v50, 4 }
  0xe2   : > { %v7662_v40 = vpop.f32.mrf.mxu1  ;;  %6689 = vmatmul.mubr.msk.bf16.gmra.mxu0 %vm349_vm1, %v6836_v29  ;;  %v6223_v29 = vld [vmem:[%s6901_s23 + $0x34] sm:$0xf] }
  0xe3   : > { %8601 = vst [vmem:[#allocation7_spill] sm:$0xff] %v7662_v40  ;;  %v7666_v60 = vpop.f32.mrf.mxu0  ;;  %v4280_v40 = vor.u32 %v4279_v21, %v4275_v5  ;;  %6692 = vmatprep.mubr.msk.bf16.mxu0 %vm349_vm1, %v6837_v58  ;;  %v4276_v58 = vsel %vm6974_vm7, %v4271_v16, %v4275_v5  ;;  %v4293_v21 = vrot.slane %v4291_v26, 5  ;;  %v6266_v5 = vrot.slane %v6222_v44, 9  ;;  %v6838_v16 = vld [vmem:[%s6901_s23 + $0x84] sm:$0xff]  }
  0xe4   : > { %v7674_v13 = vpop.f32.mrf.mxu1 }
  0xe5   : > { %8602 = vst [vmem:[#allocation8_spill] sm:$0xff] %v7674_v13  ;;  %v7683_v15 = vpop.f32.mrf.mxu0  ;;  %v6265_v13 = vrot.slane %v6219_v34, 9  ;;  %v4281_v14 = vrot.slane %v4280_v40, 4  ;;  %v6144_v40 = vld [vmem:[%s6901_s23 + $0x3c] sm:$0xf]  ;;  %v4294_v11 = vor.u32 %v4293_v21, %v4290_v43 }
  0xe6   : > { %v7695_v30 = vpop.f32.mrf.mxu1 }
  0xe7   : > { %8603 = vst [vmem:[#allocation9_spill] sm:$0xff] %v7695_v30  ;;  %v7699_v54 = vpop.f32.mrf.mxu0  ;;  %v4285_v30 = vrot.slane %v4283_v18, 5  ;;  %v7732_v34 = vsel %vm6960_vm6, %v6265_v13, %v5086_v41  ;;  %v8607_v18 = vcombine.low %v7536_v45, %v7557_v62  ;;  %v4299_v13 = vrot.slane %v4297_v7, 5  ;;  %v6224_v41 = vld [vmem:[%s6901_s23 + $0x38] sm:$0x1] }
  0xe8   : > { %v7707_v31 = vpop.f32.mrf.mxu1  ;;  %v7752_v45 = vsel %vm6960_vm6, %v5088_v35, %v5089_v17  ;;  %v4303_v62 = vrot.slane %v4301_v49, 4  ;;  %v5096_v49 = vrot.slane %v6224_v41, 5  ;;  %v4295_v3 = vrot.slane %v4294_v11, 4  ;;  %v6225_v41 = vld [vmem:[%s6901_s23 + $0x3c] sm:$0xe] }
  0xe9   : > { %8604 = vst [vmem:[#allocation10_spill] sm:$0xff] %v7707_v31  ;;  %v7716_v56 = vpop.f32.mrf.mxu0  ;;  %6659 = vmatmul.mubr.msk.bf16.gmra.mxu1 %vm349_vm1, %v8607_v18  ;;  %v4307_v18 = vshll.u32 %v6143_v20, 16  ;;  %v4286_v7 = vsel %vm6974_vm7, %v4281_v14, %v4285_v30 }
  0xea   : > { %v7720_v31 = vpop.f32.mrf.mxu1  ;;  %6662 = vmatprep.mubr.msk.bf16.mxu1 %vm349_vm1, %v8608_v2  ;;  %v5093_v2 = vrot.slane %v6223_v29, 5  ;;  %v7766_v20 = vcombine.low %v4276_v58, %v4286_v7  ;;  %v4304_v44 = vor.u32 %v4303_v62, %v4299_v13  ;;  %v4312_v29 = vshrl.u32 %v6144_v40, 16  ;;  %6693 = vmatmul.mubr.msk.bf16.gmra.mxu0 %vm349_vm1, %v6838_v16 }
  0xeb   : > { %8605 = vst [vmem:[#allocation11_spill] sm:$0xff] %v7720_v31  ;;  %v7724_v24 = vpop.f32.mrf.mxu0  ;;  %v4309_v35 = vrot.slane %v4307_v18, 5  ;;  %v6146_v31 = vld [vmem:[%s6901_s23 + $0x44] sm:$0x1]  ;;  %v4315_v58 = vshll.u32 %v6144_v40, 16  ;;  %v4300_v11 = vsel %vm6974_vm7, %v4295_v3, %v4299_v13  ;;  %v6267_v16 = vrot.slane %v6225_v41, 9 }
  0xec   : > { %v7728_v61 = vpop.f32.mrf.mxu1  ;;  %v7773_v30 = vsel %vm6960_vm6, %v6266_v5, %v5093_v2  ;;  %v5095_v43 = vrot.slane %v5093_v2, 4  ;;  %v4305_v21 = vrot.slane %v4304_v44, 4  ;;  %v4314_v2 = vrot.slane %v4312_v29, 4  ;;  %v6147_v13 = vld [vmem:[%s6901_s23 + $0x48] sm:$0xf] }
  0xed   : > { %8606 = vst [vmem:[#allocation12_spill] sm:$0xff] %v7728_v61  ;;  %v7739_v51 = vpop.f32.mrf.mxu0  ;;  %v6839_v61 = vld [vmem:[%s6901_s23 + $0x90] sm:$0xff]   ;;  %v4331_v0 = vshll.u32 %v6146_v31, 16  ;;  %v4317_v44 = vrot.slane %v4315_v58, 5 }
  0xee   : > { %v7748_v50 = vpop.f32.mrf.mxu1  ;;  %v7783_v5 = vsel %vm6960_vm6, %v5095_v43, %v5096_v49  ;;  %6696 = vmatprep.mubr.msk.bf16.mxu0 %vm349_vm1, %v6839_v61  ;;  %v8612_v49 = vcombine.low %v7586_v25, %v7601_v37 }
  0xef   : > { %8609 = vst [vmem:[#allocation13_spill] sm:$0xff] %v7748_v50  ;;  %v7756_v26 = vpop.f32.mrf.mxu0  ;;  %v6145_v50 = vld [vmem:[%s6901_s23 + $0x40] sm:$0xf]  ;;  %v4333_v29 = vrot.slane %v4331_v0, 5  ;;  %v4336_v0 = vshrl.u32 %v6147_v13, 16 }
  0xf0   : > { %v7764_v17 = vpop.f32.mrf.mxu1  ;;  %v4321_v7 = vshll.u32 %v6145_v50, 16  ;;  %v4325_v62 = vshrl.u32 %v6145_v50, 16  ;;  %v4310_v50 = vsel %vm6974_vm7, %v4305_v21, %v4309_v35  ;;  %v8613_v21 = vcombine.low %v7594_v52, %v7619_v48 }
  0xf1   : > { %8610 = vst [vmem:[#allocation14_spill] sm:$0xff] %v7764_v17  ;;  %v7769_v9 = vpop.f32.mrf.mxu0  ;;  %v6226_v17 = vld [vmem:[%s6901_s23 + $0x40] sm:$0xf]  ;;  %6663 = vmatmul.mubr.msk.bf16.gmra.mxu1 %vm349_vm1, %v8612_v49  ;;  %v7798_v43 = vcombine.low %v4300_v11, %v4310_v50  ;;  %v6148_v50 = vld [vmem:[%s6901_s23 + $0x4c] sm:$0xf] }
  0xf2   : > { %v7775_v14 = vpop.f32.mrf.mxu1  ;;  %v4323_v3 = vrot.slane %v4321_v7, 5  ;;  %v4327_v35 = vrot.slane %v4325_v62, 4  ;;  %6666 = vmatprep.mubr.msk.bf16.mxu1 %vm349_vm1, %v8613_v21  ;;  %v4318_v7 = vor.u32 %v4317_v44, %v4314_v2  ;;  %v5100_v25 = vrot.slane %v6226_v17, 5  ;;  %v6840_v49 = vld [vmem:[%s6901_s23 + $0x9c] sm:$0xff]   ;;  %v6841_v62 = vld [vmem:[%s6901_s23 + $0xa8] sm:$0xff]  }
  0xf3   : > { %8611 = vst [vmem:[#allocation15_spill] sm:$0xff] %v7775_v14  ;;  %v6542_v18 = vpop.f32.mrf.mxu0  ;;  %v6227_v14 = vld [vmem:[%s6901_s23 + $0x44] sm:$0x1]  ;;  %v4338_v44 = vrot.slane %v4336_v0, 4  ;;  %6697 = vmatmul.mubr.msk.bf16.gmra.mxu0 %vm349_vm1, %v6840_v49 }
  0xf4   : > { %v6508_v40 = vpop.f32.mrf.mxu1  ;;  %v5103_v37 = vrot.slane %v6227_v14, 5  ;;  %v4319_v52 = vrot.slane %v4318_v7, 4  ;;  %v7812_v48 = vsel %vm6960_vm6, %v6267_v16, %v5100_v25  ;;  %v5102_v17 = vrot.slane %v5100_v25, 4  ;;  %v6149_v16 = vld [vmem:[%s6901_s23 + $0x50] sm:$0x1]  ;;  %6700 = vmatprep.mubr.msk.bf16.mxu0 %vm349_vm1, %v6841_v62 }
  0xf5   : > { %v1358_v31 = vadd.f32 %v6508_v40, %v7511_v33  ;;  %v1798_v61 = vpop.f32.mrf.mxu0  ;;  %v4328_v40 = vor.u32 %v4327_v35, %v4323_v3  ;;  %v4339_v14 = vshll.u32 %v6147_v13, 16  ;;  %v4345_v13 = vshll.u32 %v6148_v50, 16  ;;  %v6229_v25 = vld [vmem:[%s6901_s23 + $0x4c] sm:$0xf] }
  0xf6   : > { %v1229_v58 = vpop.f32.mrf.mxu1  ;;  %v4324_v35 = vsel %vm6974_vm7, %v4319_v52, %v4323_v3  ;;  %v7821_v21 = vsel %vm6960_vm6, %v5102_v17, %v5103_v37  ;;  %v6230_v37 = vld [vmem:[%s6901_s23 + $0x50] sm:$0x1]  ;;  %v6150_v17 = vld [vmem:[%s6901_s23 + $0x54] sm:$0xf]  ;;  %v4355_v62 = vshll.u32 %v6149_v16, 16 }
  0xf7   : > { %v7805_v36 = vadd.f32 %v6542_v18, %v1358_v31  ;;  %v1356_v33 = vadd.f32 %v1229_v58, %v7538_v47  ;;  %v6543_v11 = vpop.f32.mrf.mxu0  ;;  %v4329_v2 = vrot.slane %v4328_v40, 4  ;;  %v4341_v58 = vrot.slane %v4339_v14, 5 }
  0xf8   : > { %v6509_v23 = vpop.f32.mrf.mxu1  ;;  %v6284_v3 = vcombine.low %v7812_v48, %v7821_v21  ;;  %v4347_v49 = vrot.slane %v4345_v13, 5  ;;  %v4357_v16 = vrot.slane %v4355_v62, 5  ;;  %v6151_v13 = vld [vmem:[%s6901_s23 + $0x58] sm:$0xf] }
  0xf9   : > { %v7814_v41 = vadd.f32 %v1798_v61, %v1356_v33  ;;  %v1359_v18 = vadd.f32 %v6509_v23, %v7559_v63  ;;  %v1801_v47 = vpop.f32.mrf.mxu0  ;;  %v6228_v61 = vld [vmem:[%s6901_s23 + $0x48] sm:$0xe]  ;;  %v4334_v7 = vsel %vm6974_vm7, %v4329_v2, %v4333_v29  ;;  %v4342_v52 = vor.u32 %v4341_v58, %v4338_v44  ;;  %v6842_v58 = vld [vmem:[%s6901_s23 + $0xb4] sm:$0xff]  }
  0xfa   : > { %v1232_v31 = vpop.f32.mrf.mxu1  ;;  %v7836_v0 = vcombine.low %v4324_v35, %v4334_v7  ;;  %v8615_v2 = vcombine.low %v7636_v59, %v7651_v12 }
  0xfb   : > { %v7826_v63 = vadd.f32 %v6543_v11, %v1359_v18  ;;  %v1357_v23 = vadd.f32 %v1232_v31, %v7573_v10  ;;  %v6546_v40 = vpop.f32.mrf.mxu0  ;;  %v4349_v11 = vshrl.u32 %v6148_v50, 16  ;;  %v8614_v10 = vcombine.low %v7605_v38, %v7632_v22  ;;  %6701 = vmatmul.mubr.msk.bf16.gmra.mxu0 %vm349_vm1, %v6842_v58 }
  0xfc   : > { %v6512_v33 = vpop.f32.mrf.mxu1  ;;  %v6268_v18 = vrot.slane %v6228_v61, 9  ;;  %v4343_v31 = vrot.slane %v4342_v52, 4  ;;  %v5107_v38 = vrot.slane %v6229_v25, 5  ;;  %v5110_v22 = vrot.slane %v6230_v37, 5  ;;  %v6152_v52 = vld [vmem:[%s6901_s23 + $0x5c] sm:$0x1] }
  0xfd   : > { %6667 = vmatmul.mubr.msk.bf16.gmra.mxu1 %vm349_vm1, %v8614_v10  ;;  %v7843_v29 = vadd.f32 %v1801_v47, %v1357_v23  ;;  %v1362_v14 = vadd.f32 %v6512_v33, %v7590_v19  ;;  %v1814_v44 = vpop.f32.mrf.mxu0  ;;  %v4351_v35 = vrot.slane %v4349_v11, 4  ;;  %v4360_v61 = vshrl.u32 %v6150_v17, 16  ;;  %v6843_v23 = vld [vmem:[%s6901_s23 + $0xc0] sm:$0xff]  }
  0xfe   : > { %6670 = vmatprep.mubr.msk.bf16.mxu1 %vm349_vm1, %v8615_v2  ;;  %v1245_v50 = vpop.f32.mrf.mxu1  ;;  %v4348_v7 = vsel %vm6974_vm7, %v4343_v31, %v4347_v49  ;;  %v7860_v25 = vsel %vm6960_vm6, %v6268_v18, %v5107_v38  ;;  %v5109_v37 = vrot.slane %v5107_v38, 4  ;;  %v4363_v10 = vshll.u32 %v6150_v17, 16  ;;  %v6232_v31 = vld [vmem:[%s6901_s23 + $0x58] sm:$0xf]  ;;  %v6233_v38 = vld [vmem:[%s6901_s23 + $0x5c] sm:$0x1]  ;;  %6704 = vmatprep.mubr.msk.bf16.mxu0 %vm349_vm1, %v6843_v23 }
  0xff   : > { %v7851_v47 = vadd.f32 %v6546_v40, %v1362_v14  ;;  %v1360_v19 = vadd.f32 %v1245_v50, %v7615_v46  ;;  %v6547_v12 = vpop.f32.mrf.mxu0  ;;  %v4352_v33 = vor.u32 %v4351_v35, %v4347_v49  ;;  %v4362_v11 = vrot.slane %v4360_v61, 4  ;;  %v6231_v14 = vld [vmem:[%s6901_s23 + $0x54] sm:$0xe] }
 0x100   : > { %v6513_v59 = vpop.f32.mrf.mxu1  ;;  %v7869_v49 = vsel %vm6960_vm6, %v5109_v37, %v5110_v22  ;;  %v4369_v50 = vshll.u32 %v6151_v13, 16  ;;  %v4373_v18 = vshrl.u32 %v6151_v13, 16  ;;  %v4365_v35 = vrot.slane %v4363_v10, 5 }
 0x101   : > { %v7862_v40 = vadd.f32 %v1814_v44, %v1360_v19  ;;  %v1363_v46 = vadd.f32 %v6513_v59, %v7641_v1  ;;  %v4353_v2 = vrot.slane %v4352_v33, 4  ;;  %v6285_v17 = vcombine.low %v7860_v25, %v7869_v49  ;;  %v6153_v19 = vld [vmem:[%s6901_s23 + $0x60] sm:$0xf]  ;;  %v1817_v22 = vpop.f32.mrf.mxu0 }
 0x102   : > { %v1248_v62 = vpop.f32.mrf.mxu1  ;;  %v4371_v61 = vrot.slane %v4369_v50, 5  ;;  %v4375_v59 = vrot.slane %v4373_v18, 4  ;;  %v4379_v58 = vshll.u32 %v6152_v52, 16  ;;  %v6269_v23 = vrot.slane %v6231_v14, 9 }
 0x103   : > { %v7873_v44 = vadd.f32 %v6547_v12, %v1363_v46  ;;  %v1361_v1 = vadd.f32 %v1248_v62, %v7654_v27  ;;  %v4358_v13 = vsel %vm6974_vm7, %v4353_v2, %v4357_v16  ;;  %v6154_v12 = vld [vmem:[%s6901_s23 + $0x64] sm:$0xf]  ;;  %v8616_v27 = vcombine.low %v7660_v32, %v7670_v28  ;;  %v6844_v2 = vld [vmem:[%s6901_s23 + $0xcc] sm:$0xff]  }
 0x104   : > { %v7890_v37 = vcombine.low %v4348_v7, %v4358_v13  ;;  %v4366_v46 = vor.u32 %v4365_v35, %v4362_v11  ;;  %v4376_v10 = vor.u32 %v4375_v59, %v4371_v61  ;;  %v4381_v16 = vrot.slane %v4379_v58, 5  ;;  %v6234_v59 = vld [vmem:[%s6901_s23 + $0x60] sm:$0xe]  ;;  %6705 = vmatmul.mubr.msk.bf16.gmra.mxu0 %vm349_vm1, %v6844_v2 }
 0x105   : > { %6671 = vmatmul.mubr.msk.bf16.gmra.mxu1 %vm349_vm1, %v8616_v27  ;;  %v7888_v33 = vadd.f32 %v1817_v22, %v1361_v1  ;;  %v5114_v62 = vrot.slane %v6232_v31, 5  ;;  %v5117_v52 = vrot.slane %v6233_v38, 5  ;;  %v4384_v28 = vshrl.u32 %v6153_v19, 16  ;;  %v6516_v1 = vpop.f32.mrf.mxu1  ;;  %v6550_v22 = vpop.f32.mrf.mxu0  ;;  %v6155_v38 = vld [vmem:[%s6901_s23 + $0x68] sm:$0x1] }
 0x106   : > { %6710 = vmatprep.mubr.msk.bf16.mxu1 %vm349_vm1, %v7718_v8  ;;  %v4367_v50 = vrot.slane %v4366_v46, 4  ;;  %v4387_v32 = vshll.u32 %v6153_v19, 16  ;;  %v4393_v18 = vshll.u32 %v6154_v12, 16  ;;  %v4377_v7 = vrot.slane %v4376_v10, 4 }
 0x107   : > { %v7897_v11 = vsel %vm6960_vm6, %v6269_v23, %v5114_v62  ;;  %v5116_v8 = vrot.slane %v5114_v62, 4  ;;  %v4397_v14 = vshrl.u32 %v6154_v12, 16  ;;  %v1366_v31 = vadd.f32 %v6516_v1, %v7666_v60  ;;  %v1261_v46 = vpop.f32.mrf.mxu1  ;;  %v1830_v23 = vpop.f32.mrf.mxu0  ;;  %v6235_v60 = vld [vmem:[%s6901_s23 + $0x64] sm:$0xf]  ;;  %v6236_v62 = vld [vmem:[%s6901_s23 + $0x68] sm:$0x1] }
 0x108   : > { %v4372_v35 = vsel %vm6974_vm7, %v4367_v50, %v4371_v61  ;;  %v4386_v13 = vrot.slane %v4384_v28, 4  ;;  %v4389_v19 = vrot.slane %v4387_v32, 5  ;;  %v4382_v58 = vsel %vm6974_vm7, %v4377_v7, %v4381_v16  ;;  %v6156_v32 = vld [vmem:[%s6901_s23 + $0x6c] sm:$0xf] }
 0x109   : > { %v7908_v27 = vsel %vm6960_vm6, %v5116_v8, %v5117_v52  ;;  %v4395_v12 = vrot.slane %v4393_v18, 5  ;;  %v4399_v10 = vrot.slane %v4397_v14, 4  ;;  %v7913_v61 = vadd.f32 %v6550_v22, %v1366_v31  ;;  %v6517_v18 = vpop.f32.mrf.mxu1  ;;  %v6551_v1 = vpop.f32.mrf.mxu0 }
 0x10a   : > { %v7915_v50 = vcombine.low %v4372_v35, %v4382_v58  ;;  %v6286_v28 = vcombine.low %v7897_v11, %v7908_v27  ;;  %v1364_v16 = vadd.f32 %v1261_v46, %v7683_v15  ;;  %v8617_v52 = vcombine.low %v7687_v4, %v7703_v57 }
 0x10b   : > { %v4390_v7 = vor.u32 %v4389_v19, %v4386_v13  ;;  %v4400_v2 = vor.u32 %v4399_v10, %v4395_v12  ;;  %v4403_v22 = vshll.u32 %v6155_v38, 16  ;;  %v6270_v8 = vrot.slane %v6234_v59, 9  ;;  %v1264_v57 = vpop.f32.mrf.mxu1  ;;  %v6157_v19 = vld [vmem:[%s6901_s23 + $0x70] sm:$0xf]  ;;  %v1833_v10 = vpop.f32.mrf.mxu0 }
 0x10c   : > { %6744 = vmatprep.mubr.msk.bf16.mxu0 %vm349_vm1, %v8617_v52  ;;  %v7927_v14 = vadd.f32 %v1830_v23, %v1364_v16  ;;  %v1367_v15 = vadd.f32 %v6517_v18, %v7699_v54  ;;  %v5121_v31 = vrot.slane %v6235_v60, 5  ;;  %v5124_v4 = vrot.slane %v6236_v62, 5  ;;  %v6158_v23 = vld [vmem:[%s6901_s23 + $0x74] sm:$0x1]  ;;  %v6238_v18 = vld [vmem:[%s6901_s23 + $0x70] sm:$0xf] }
 0x10d   : > { %6711 = vmatmul.mubr.msk.bf16.vlgmr.msra.gmra.mxu1 %vm349_vm1, %v7766_v20  ;;  %v4391_v35 = vrot.slane %v4390_v7, 4  ;;  %v4401_v13 = vrot.slane %v4400_v2, 4  ;;  %v4405_v38 = vrot.slane %v4403_v22, 5  ;;  %v4408_v59 = vshrl.u32 %v6156_v32, 16 }
 0x10e   : > { %6714 = vmatprep.mubr.msk.bf16.mxu1 %vm349_vm1, %v7798_v43  ;;  %v7933_v20 = vadd.f32 %v6551_v1, %v1367_v15  ;;  %v1365_v58 = vadd.f32 %v1264_v57, %v7716_v56  ;;  %v7938_v54 = vsel %vm6960_vm6, %v6270_v8, %v5121_v31  ;;  %v5123_v46 = vrot.slane %v5121_v31, 4  ;;  %v6237_v43 = vld [vmem:[%s6901_s23 + $0x6c] sm:$0xe]  ;;  %v6239_v56 = vld [vmem:[%s6901_s23 + $0x74] sm:$0x1] }
 0x10f   : > { %v4396_v60 = vsel %vm6974_vm7, %v4391_v35, %v4395_v12  ;;  %v4406_v62 = vsel %vm6974_vm7, %v4401_v13, %v4405_v38  ;;  %v4410_v16 = vrot.slane %v4408_v59, 4  ;;  %v4411_v52 = vshll.u32 %v6156_v32, 16  ;;  %v6159_v8 = vld [vmem:[%s6901_s23 + $0x78] sm:$0xf] }
 0x110   : > { %v7948_v1 = vadd.f32 %v1833_v10, %v1365_v58  ;;  %v7950_v7 = vcombine.low %v4396_v60, %v4406_v62  ;;  %v7954_v2 = vsel %vm6960_vm6, %v5123_v46, %v5124_v4  ;;  %v4417_v22 = vshll.u32 %v6157_v19, 16  ;;  %v6160_v58 = vld [vmem:[%s6901_s23 + $0x7c] sm:$0xf]  ;;  %v6520_v46 = vpop.f32.mrf.mxu1  ;;  %v6554_v10 = vpop.f32.mrf.mxu0 }
 0x111   : > { %v6287_v12 = vcombine.low %v7938_v54, %v7954_v2  ;;  %v4413_v15 = vrot.slane %v4411_v52, 5  ;;  %v4421_v31 = vshrl.u32 %v6157_v19, 16  ;;  %v4427_v57 = vshll.u32 %v6158_v23, 16 }
 0x112   : > { %v8618_v32 = vcombine.low %v7732_v34, %v7752_v45  ;;  %v4419_v35 = vrot.slane %v4417_v22, 5  ;;  %v6271_v13 = vrot.slane %v6237_v43, 9  ;;  %v5128_v38 = vrot.slane %v6238_v18, 5  ;;  %v1277_v52 = vpop.f32.mrf.mxu1  ;;  %v1846_v18 = vpop.f32.mrf.mxu0 }
 0x113   : > { %v5131_v59 = vrot.slane %v6239_v56, 5  ;;  %v8619_v4 = vcombine.low %v7773_v30, %v7783_v5  ;;  %v4414_v19 = vor.u32 %v4413_v15, %v4410_v16  ;;  %v4423_v23 = vrot.slane %v4421_v31, 4  ;;  %v6161_v56 = vld [vmem:[%s6901_s23 + $0x80] sm:$0x1] }
 0x114   : > { %6745 = vmatmul.mubr.msk.bf16.vlgmr.msra.gmra.mxu0 %vm349_vm1, %v8618_v32  ;;  %v4429_v60 = vrot.slane %v4427_v57, 5  ;;  %v4432_v62 = vshrl.u32 %v6159_v8, 16  ;;  %v1370_v34 = vadd.f32 %v6520_v46, %v7724_v24  ;;  %v7973_v45 = vsel %vm6960_vm6, %v6271_v13, %v5128_v38  ;;  %v6240_v57 = vld [vmem:[%s6901_s23 + $0x78] sm:$0xe]  ;;  %v6241_v32 = vld [vmem:[%s6901_s23 + $0x7c] sm:$0xf]  ;;  %v6555_v46 = vpop.f32.mrf.mxu0 }
 0x115   : > { %6748 = vmatprep.mubr.msk.bf16.mxu0 %vm349_vm1, %v8619_v4  ;;  %6715 = vmatmul.mubr.msk.bf16.gmra.mxu1 %vm349_vm1, %v7836_v0  ;;  %v5130_v30 = vrot.slane %v5128_v38, 4  ;;  %v4435_v5 = vshll.u32 %v6159_v8, 16  ;;  %v4415_v43 = vrot.slane %v4414_v19, 4  ;;  %v4424_v16 = vor.u32 %v4423_v23, %v4419_v35  ;;  %v6521_v4 = vpop.f32.mrf.mxu1 }
 0x116   : > { %6718 = vmatprep.mubr.msk.bf16.mxu1 %vm349_vm1, %v7890_v37  ;;  %v4434_v22 = vrot.slane %v4432_v62, 4  ;;  %v4441_v0 = vshll.u32 %v6160_v58, 16  ;;  %v7978_v15 = vadd.f32 %v6554_v10, %v1370_v34  ;;  %v1368_v31 = vadd.f32 %v1277_v52, %v7739_v51  ;;  %v6242_v62 = vld [vmem:[%s6901_s23 + $0x80] sm:$0x1] }
 0x117   : > { %v7982_v24 = vsel %vm6960_vm6, %v5130_v30, %v5131_v59  ;;  %v4437_v8 = vrot.slane %v4435_v5, 5  ;;  %v4420_v37 = vsel %vm6974_vm7, %v4415_v43, %v4419_v35  ;;  %v4425_v13 = vrot.slane %v4424_v16, 4  ;;  %v1280_v34 = vpop.f32.mrf.mxu1  ;;  %v6162_v16 = vld [vmem:[%s6901_s23 + $0x84] sm:$0xf] }
 0x118   : > { %v6288_v38 = vcombine.low %v7973_v45, %v7982_v24  ;;  %v4443_v10 = vrot.slane %v4441_v0, 5  ;;  %v7991_v19 = vadd.f32 %v1846_v18, %v1368_v31  ;;  %v1371_v59 = vadd.f32 %v6521_v4, %v7756_v26  ;;  %v6243_v31 = vld [vmem:[%s6901_s23 + $0x84] sm:$0xe]  ;;  %v6245_v4 = vld [vmem:[%s6901_s23 + $0x8c] sm:$0x1] }
 0x119   : > { %v4438_v51 = vor.u32 %v4437_v8, %v4434_v22  ;;  %v4445_v23 = vshrl.u32 %v6160_v58, 16  ;;  %v4430_v35 = vsel %vm6974_vm7, %v4425_v13, %v4429_v60  ;;  %v4451_v30 = vshll.u32 %v6161_v56, 16  ;;  %v6163_v22 = vld [vmem:[%s6901_s23 + $0x88] sm:$0xf]  ;;  %v6164_v60 = vld [vmem:[%s6901_s23 + $0x8c] sm:$0x1]  ;;  %v1849_v56 = vpop.f32.mrf.mxu0 }
 0x11a   : > { %v6272_v5 = vrot.slane %v6240_v57, 9  ;;  %v5135_v43 = vrot.slane %v6241_v32, 5  ;;  %v6191_v52 = vcombine.low %v4420_v37, %v4430_v35  ;;  %v8002_v26 = vadd.f32 %v6555_v46, %v1371_v59  ;;  %v6244_v8 = vld [vmem:[%s6901_s23 + $0x88] sm:$0xf] }
 0x11b   : > { %v1369_v58 = vadd.f32 %v1280_v34, %v7769_v9  ;;  %v4439_v18 = vrot.slane %v4438_v51, 4  ;;  %v4447_v0 = vrot.slane %v4445_v23, 4  ;;  %v4453_v48 = vrot.slane %v4451_v30, 5  ;;  %v6165_v23 = vld [vmem:[%s6901_s23 + $0x90] sm:$0xf]  ;;  %v6524_v34 = vpop.f32.mrf.mxu1 }
 0x11c   : > { %6749 = vmatmul.mubr.msk.bf16.gmra.mxu0 %vm349_vm1, %v6284_v3  ;;  %v8013_v21 = vsel %vm6960_vm6, %v6272_v5, %v5135_v43  ;;  %v5137_v3 = vrot.slane %v5135_v43, 4  ;;  %v5138_v49 = vrot.slane %v6242_v62, 5  ;;  %v4459_v32 = vshll.u32 %v6162_v16, 16 }
 0x11d   : > { %6752 = vmatprep.mubr.msk.bf16.mxu0 %vm349_vm1, %v6285_v17  ;;  %6719 = vmatmul.mubr.msk.bf16.gmra.mxu1 %vm349_vm1, %v7915_v50  ;;  %v8018_v9 = vadd.f32 %v1849_v56, %v1369_v58  ;;  %v4444_v25 = vsel %vm6974_vm7, %v4439_v18, %v4443_v10  ;;  %v4456_v17 = vshrl.u32 %v6162_v16, 16  ;;  %v4448_v57 = vor.u32 %v4447_v0, %v4443_v10  ;;  %v1293_v56 = vpop.f32.mrf.mxu1 }
 0x11e   : > { %6722 = vmatprep.mubr.msk.bf16.mxu1 %vm349_vm1, %v7950_v7  ;;  %v4465_v37 = vshll.u32 %v6163_v22, 16  ;;  %v4469_v13 = vshrl.u32 %v6163_v22, 16  ;;  %v8028_v50 = vsel %vm6960_vm6, %v5137_v3, %v5138_v49  ;;  %v4475_v59 = vshll.u32 %v6164_v60, 16  ;;  %v6558_v7 = vpop.f32.mrf.mxu0  ;;  %v6166_v3 = vld [vmem:[%s6901_s23 + $0x94] sm:$0xf] }
 0x11f   : > { %v4458_v46 = vrot.slane %v4456_v17, 4  ;;  %v6273_v51 = vrot.slane %v6243_v31, 9  ;;  %v4449_v62 = vrot.slane %v4448_v57, 4  ;;  %v6289_v35 = vcombine.low %v8013_v21, %v8028_v50  ;;  %v6525_v27 = vpop.f32.mrf.mxu1  ;;  %v6250_v21 = vld [vmem:[%s6901_s23 + $0xa0] sm:$0xf] }
 0x120   : > { %v4461_v10 = vrot.slane %v4459_v32, 5  ;;  %v4467_v30 = vrot.slane %v4465_v37, 5  ;;  %v1374_v5 = vadd.f32 %v6524_v34, %v7524_v39  ;;  %v4471_v43 = vrot.slane %v4469_v13, 4  ;;  %v1862_v0 = vpop.f32.mrf.mxu0  ;;  %v6167_v13 = vld [vmem:[%s6901_s23 + $0x98] sm:$0x1]  ;;  %v8620_v34 = vld [vmem:[#allocation3_spill] sm:$0xff] }
 0x121   : > { %v4477_v16 = vrot.slane %v4475_v59, 5  ;;  %v5142_v58 = vrot.slane %v6244_v8, 5  ;;  %v4454_v18 = vsel %vm6974_vm7, %v4449_v62, %v4453_v48  ;;  %v5145_v60 = vrot.slane %v6245_v4, 5  ;;  %v6246_v59 = vld [vmem:[%s6901_s23 + $0x90] sm:$0xe] }
 0x122   : > { %v4462_v22 = vor.u32 %v4461_v10, %v4458_v46  ;;  %v4480_v31 = vshrl.u32 %v6165_v23, 16  ;;  %v6192_v49 = vcombine.low %v4444_v25, %v4454_v18  ;;  %v8041_v39 = vadd.f32 %v6558_v7, %v1374_v5  ;;  %v6248_v10 = vld [vmem:[%s6901_s23 + $0x98] sm:$0x1]  ;;  %v6251_v50 = vld [vmem:[%s6901_s23 + $0xa4] sm:$0x1] }
 0x123   : > { %v4472_v17 = vor.u32 %v4471_v43, %v4467_v30  ;;  %v8045_v8 = vsel %vm6960_vm6, %v6273_v51, %v5142_v58  ;;  %v5144_v57 = vrot.slane %v5142_v58, 4  ;;  %v1372_v11 = vadd.f32 %v1293_v56, %v7548_v53 }
 0x124   : > { %6753 = vmatmul.mubr.msk.bf16.gmra.mxu0 %vm349_vm1, %v6286_v28  ;;  %v4463_v48 = vrot.slane %v4462_v22, 4  ;;  %v6559_v28 = vpop.f32.mrf.mxu0  ;;  %v4482_v25 = vrot.slane %v4480_v31, 4  ;;  %v1375_v37 = vadd.f32 %v6525_v27, %v7569_v6  ;;  %v4483_v54 = vshll.u32 %v6165_v23, 16  ;;  %v6247_v6 = vld [vmem:[%s6901_s23 + $0x94] sm:$0xf] }
 0x125   : > { %6756 = vmatprep.mubr.msk.bf16.mxu0 %vm349_vm1, %v6287_v12  ;;  %6723 = vmatmul.mubr.msk.bf16.gmra.mxu1 %vm349_vm1, %v6191_v52  ;;  %v4473_v32 = vrot.slane %v4472_v17, 4  ;;  %v4489_v2 = vshll.u32 %v6166_v3, 16  ;;  %v8060_v12 = vsel %vm6960_vm6, %v5144_v57, %v5145_v60  ;;  %v8062_v4 = vadd.f32 %v1862_v0, %v1372_v11  ;;  %v1296_v52 = vpop.f32.mrf.mxu1 }
 0x126   : > { %6726 = vmatprep.mubr.msk.bf16.mxu1 %vm349_vm1, %v6192_v49  ;;  %v4468_v53 = vsel %vm6974_vm7, %v4463_v48, %v4467_v30  ;;  %v4493_v46 = vshrl.u32 %v6166_v3, 16  ;;  %v6290_v23 = vcombine.low %v8045_v8, %v8060_v12  ;;  %v8070_v62 = vadd.f32 %v6559_v28, %v1375_v37  ;;  %v6168_v30 = vld [vmem:[%s6901_s23 + $0x9c] sm:$0xf]  ;;  %v1865_v43 = vpop.f32.mrf.mxu0  ;;  %v6169_v3 = vld [vmem:[%s6901_s23 + $0xa0] sm:$0xf] }
 0x127   : > { %v4478_v51 = vsel %vm6974_vm7, %v4473_v32, %v4477_v16  ;;  %v1373_v7 = vadd.f32 %v1296_v52, %v8620_v34  ;;  %v4485_v58 = vrot.slane %v4483_v54, 5  ;;  %v4491_v18 = vrot.slane %v4489_v2, 5  ;;  %v6170_v28 = vld [vmem:[%s6901_s23 + $0xa4] sm:$0x1]  ;;  %v6249_v54 = vld [vmem:[%s6901_s23 + $0x9c] sm:$0xe] }
 0x128   : > { %v6193_v5 = vcombine.low %v4468_v53, %v4478_v51  ;;  %v4495_v22 = vrot.slane %v4493_v46, 4  ;;  %v4499_v56 = vshll.u32 %v6167_v13, 16  ;;  %v6274_v0 = vrot.slane %v6246_v59, 9  ;;  %v6528_v13 = vpop.f32.mrf.mxu1  ;;  %v6562_v45 = vpop.f32.mrf.mxu0  ;;  %v8621_v53 = vld [vmem:[#allocation4_spill] sm:$0xff] }
 0x129   : > { %v8075_v60 = vadd.f32 %v1865_v43, %v1373_v7  ;;  %v5149_v16 = vrot.slane %v6247_v6, 5  ;;  %v4486_v31 = vor.u32 %v4485_v58, %v4482_v25  ;;  %v5152_v17 = vrot.slane %v6248_v10, 5 }
 0x12a   : > { %v4496_v49 = vor.u32 %v4495_v22, %v4491_v18  ;;  %v4504_v48 = vshrl.u32 %v6168_v30, 16  ;;  %v4501_v57 = vrot.slane %v4499_v56, 5  ;;  %v4507_v32 = vshll.u32 %v6168_v30, 16  ;;  %v1309_v7 = vpop.f32.mrf.mxu1  ;;  %v1878_v10 = vpop.f32.mrf.mxu0  ;;  %v6171_v22 = vld [vmem:[%s6901_s23 + $0xa8] sm:$0xf] }
 0x12b   : > { %v5150_v11 = vsel %vm6960_vm6, %v6274_v0, %v5149_v16  ;;  %v5151_v27 = vrot.slane %v5149_v16, 4  ;;  %v4487_v25 = vrot.slane %v4486_v31, 4  ;;  %v1378_v52 = vadd.f32 %v6528_v13, %v8621_v53  ;;  %v6172_v13 = vld [vmem:[%s6901_s23 + $0xac] sm:$0xf]  ;;  %v6173_v53 = vld [vmem:[%s6901_s23 + $0xb0] sm:$0x1] }
 0x12c   : > { %6757 = vmatmul.mubr.msk.bf16.gmra.mxu0 %vm349_vm1, %v6288_v38  ;;  %v4497_v37 = vrot.slane %v4496_v49, 4  ;;  %v4506_v24 = vrot.slane %v4504_v48, 4  ;;  %v4513_v38 = vshll.u32 %v6169_v3, 16  ;;  %v4509_v46 = vrot.slane %v4507_v32, 5  ;;  %v6529_v31 = vpop.f32.mrf.mxu1  ;;  %v8622_v48 = vld [vmem:[#allocation5_spill] sm:$0xff] }
 0x12d   : > { %6760 = vmatprep.mubr.msk.bf16.mxu0 %vm349_vm1, %v6289_v35  ;;  %6727 = vmatmul.mubr.msk.bf16.gmra.mxu1 %vm349_vm1, %v6193_v5  ;;  %v5153_v2 = vsel %vm6960_vm6, %v5151_v27, %v5152_v17  ;;  %v4517_v59 = vshrl.u32 %v6169_v3, 16  ;;  %v4492_v35 = vsel %vm6974_vm7, %v4487_v25, %v4491_v18  ;;  %v8100_v5 = vadd.f32 %v6562_v45, %v1378_v52  ;;  %v6563_v18 = vpop.f32.mrf.mxu0 }
 0x12e   : > { %v4502_v6 = vsel %vm6974_vm7, %v4497_v37, %v4501_v57  ;;  %v6291_v51 = vcombine.low %v5150_v11, %v5153_v2  ;;  %v4515_v34 = vrot.slane %v4513_v38, 5  ;;  %v4510_v43 = vor.u32 %v4509_v46, %v4506_v24  ;;  %v8623_v11 = vld [vmem:[#allocation6_spill] sm:$0xff]  ;;  %v8624_v46 = vld [vmem:[#allocation7_spill] sm:$0xff] }
 0x12f   : > { %v6194_v30 = vcombine.low %v4492_v35, %v4502_v6  ;;  %v4519_v58 = vrot.slane %v4517_v59, 4  ;;  %v4523_v56 = vshll.u32 %v6170_v28, 16  ;;  %v6275_v0 = vrot.slane %v6249_v54, 9  ;;  %v1312_v28 = vpop.f32.mrf.mxu1  ;;  %v1881_v12 = vpop.f32.mrf.mxu0 }
 0x130   : > { %v5156_v16 = vrot.slane %v6250_v21, 5  ;;  %v5159_v3 = vrot.slane %v6251_v50, 5  ;;  %v4511_v49 = vrot.slane %v4510_v43, 4  ;;  %v1376_v57 = vadd.f32 %v1309_v7, %v8622_v48  ;;  %v6252_v21 = vld [vmem:[%s6901_s23 + $0xa8] sm:$0xe] }
 0x131   : > { %6730 = vmatprep.mubr.msk.bf16.mxu1 %vm349_vm1, %v6194_v30  ;;  %v4520_v17 = vor.u32 %v4519_v58, %v4515_v34  ;;  %v1379_v27 = vadd.f32 %v6529_v31, %v8623_v11  ;;  %v4525_v32 = vrot.slane %v4523_v56, 5  ;;  %v4528_v45 = vshrl.u32 %v6171_v22, 16  ;;  %v6253_v50 = vld [vmem:[%s6901_s23 + $0xac] sm:$0xf]  ;;  %v6174_v30 = vld [vmem:[%s6901_s23 + $0xb4] sm:$0xf]  ;;  %v6532_v48 = vpop.f32.mrf.mxu1 }
 0x132   : > { %v5157_v25 = vsel %vm6960_vm6, %v6275_v0, %v5156_v16  ;;  %v5158_v37 = vrot.slane %v5156_v16, 4  ;;  %v4516_v24 = vsel %vm6974_vm7, %v4511_v49, %v4515_v34  ;;  %v8115_v54 = vadd.f32 %v1878_v10, %v1376_v57  ;;  %v6254_v10 = vld [vmem:[%s6901_s23 + $0xb0] sm:$0x1]  ;;  %v6175_v31 = vld [vmem:[%s6901_s23 + $0xb8] sm:$0xf]  ;;  %v6566_v57 = vpop.f32.mrf.mxu0 }
 0x133   : > { %v4521_v38 = vrot.slane %v4520_v17, 4  ;;  %v8117_v2 = vadd.f32 %v6563_v18, %v1379_v27  ;;  %v1377_v8 = vadd.f32 %v1312_v28, %v8624_v46  ;;  %v4531_v59 = vshll.u32 %v6171_v22, 16  ;;  %v1325_v46 = vpop.f32.mrf.mxu1 }
 0x134   : > { %6761 = vmatmul.mubr.msk.bf16.gmra.mxu0 %vm349_vm1, %v6290_v23  ;;  %v5160_v52 = vsel %vm6960_vm6, %v5158_v37, %v5159_v3  ;;  %v4530_v23 = vrot.slane %v4528_v45, 4  ;;  %v4537_v34 = vshll.u32 %v6172_v13, 16  ;;  %v4541_v7 = vshrl.u32 %v6172_v13, 16  ;;  %v8625_v37 = vld [vmem:[#allocation8_spill] sm:$0xff]  ;;  %v6176_v13 = vld [vmem:[%s6901_s23 + $0xbc] sm:$0x1] }
 0x135   : > { %6764 = vmatprep.mubr.msk.bf16.mxu0 %vm349_vm1, %v6291_v51  ;;  %v4526_v35 = vsel %vm6974_vm7, %v4521_v38, %v4525_v32  ;;  %v6292_v6 = vcombine.low %v5157_v25, %v5160_v52  ;;  %v8130_v43 = vadd.f32 %v1881_v12, %v1377_v8  ;;  %v4533_v58 = vrot.slane %v4531_v59, 5  ;;  %v6255_v52 = vld [vmem:[%s6901_s23 + $0xb4] sm:$0xe]  ;;  %v1894_v8 = vpop.f32.mrf.mxu0 }
 0x136   : > { %v6195_v51 = vcombine.low %v4516_v24, %v4526_v35  ;;  %v4547_v56 = vshll.u32 %v6173_v53, 16  ;;  %v4539_v0 = vrot.slane %v4537_v34, 5  ;;  %v4543_v16 = vrot.slane %v4541_v7, 4  ;;  %v6257_v35 = vld [vmem:[%s6901_s23 + $0xbc] sm:$0x1] }
 0x137   : > { %v6276_v22 = vrot.slane %v6252_v21, 9  ;;  %v5163_v3 = vrot.slane %v6253_v50, 5  ;;  %v4534_v18 = vor.u32 %v4533_v58, %v4530_v23  ;;  %v5166_v17 = vrot.slane %v6254_v10, 5  ;;  %v6256_v50 = vld [vmem:[%s6901_s23 + $0xb8] sm:$0xf]  ;;  %v6567_v58 = vpop.f32.mrf.mxu0 }
 0x138   : > { %6731 = vmatmul.mubr.msk.bf16.gmra.mxu1 %vm349_vm1, %v6195_v51  ;;  %v4549_v49 = vrot.slane %v4547_v56, 5  ;;  %v4552_v11 = vshrl.u32 %v6174_v30, 16  ;;  %v4544_v27 = vor.u32 %v4543_v16, %v4539_v0  ;;  %v1382_v28 = vadd.f32 %v6532_v48, %v8625_v37  ;;  %v6533_v51 = vpop.f32.mrf.mxu1  ;;  %v6177_v48 = vld [vmem:[%s6901_s23 + $0xc0] sm:$0xf] }
 0x139   : > { %v5164_v32 = vsel %vm6960_vm6, %v6276_v22, %v5163_v3  ;;  %v5165_v25 = vrot.slane %v5163_v3, 4  ;;  %v4535_v45 = vrot.slane %v4534_v18, 4  ;;  %v4555_v38 = vshll.u32 %v6174_v30, 16 }
 0x13a   : > { %v4554_v24 = vrot.slane %v4552_v11, 4  ;;  %v4561_v53 = vshll.u32 %v6175_v31, 16  ;;  %v4545_v12 = vrot.slane %v4544_v27, 4  ;;  %v8142_v59 = vadd.f32 %v6566_v57, %v1382_v28  ;;  %v8626_v27 = vld [vmem:[#allocation9_spill] sm:$0xff] }
 0x13b   : > { %v5167_v23 = vsel %vm6960_vm6, %v5165_v25, %v5166_v17  ;;  %v4565_v21 = vshrl.u32 %v6175_v31, 16  ;;  %v4540_v34 = vsel %vm6974_vm7, %v4535_v45, %v4539_v0  ;;  %v4557_v10 = vrot.slane %v4555_v38, 5  ;;  %v1328_v0 = vpop.f32.mrf.mxu1  ;;  %v8627_v25 = vld [vmem:[#allocation10_spill] sm:$0xff]  ;;  %v8628_v45 = vld [vmem:[#allocation11_spill] sm:$0xff]  ;;  %v1897_v38 = vpop.f32.mrf.mxu0 }
 0x13c   : > { %6765 = vmatmul.mubr.msk.bf16.gmra.mxu0 %vm349_vm1, %v6292_v6  ;;  %v6293_v7 = vcombine.low %v5164_v32, %v5167_v23  ;;  %v4563_v30 = vrot.slane %v4561_v53, 5  ;;  %v4550_v6 = vsel %vm6974_vm7, %v4545_v12, %v4549_v49  ;;  %v4571_v16 = vshll.u32 %v6176_v13, 16  ;;  %v6178_v53 = vld [vmem:[%s6901_s23 + $0xc4] sm:$0xf] }
 0x13d   : > { %v4567_v56 = vrot.slane %v4565_v21, 4  ;;  %v6277_v22 = vrot.slane %v6255_v52, 9  ;;  %v6196_v3 = vcombine.low %v4540_v34, %v4550_v6  ;;  %v4558_v31 = vor.u32 %v4557_v10, %v4554_v24  ;;  %v6260_v6 = vld [vmem:[%s6901_s23 + $0xc8] sm:$0x1] }
 0x13e   : > { %6768 = vmatprep.mubr.msk.bf16.mxu0 %vm349_vm1, %v6293_v7  ;;  %v5170_v18 = vrot.slane %v6256_v50, 5  ;;  %v5173_v17 = vrot.slane %v6257_v35, 5  ;;  %v4573_v11 = vrot.slane %v4571_v16, 5  ;;  %v1380_v32 = vadd.f32 %v1325_v46, %v8626_v27  ;;  %v6179_v46 = vld [vmem:[%s6901_s23 + $0xc8] sm:$0x1] }
 0x13f   : > { %v4568_v57 = vor.u32 %v4567_v56, %v4563_v30  ;;  %v1383_v49 = vadd.f32 %v6533_v51, %v8627_v25  ;;  %6734 = vmatprep.mubr.msk.bf16.mxu1 %vm349_vm1, %v6196_v3  ;;  %v4559_v37 = vrot.slane %v4558_v31, 4  ;;  %v1381_v24 = vadd.f32 %v1328_v0, %v8628_v45  ;;  %v6258_v50 = vld [vmem:[%s6901_s23 + $0xc0] sm:$0xe]  ;;  %v6259_v51 = vld [vmem:[%s6901_s23 + $0xc4] sm:$0xf]  ;;  %v6570_v0 = vpop.f32.mrf.mxu0 }
 0x140   : > { %v5171_v28 = vsel %vm6960_vm6, %v6277_v22, %v5170_v18  ;;  %v5172_v13 = vrot.slane %v5170_v18, 4  ;;  %v8159_v12 = vadd.f32 %v1894_v8, %v1380_v32  ;;  %v4576_v21 = vshrl.u32 %v6177_v48, 16  ;;  %v6536_v18 = vpop.f32.mrf.mxu1  ;;  %v6181_v25 = vld [vmem:[%s6901_s23 + $0xd0] sm:$0xf] }
 0x141   : > { %v4569_v52 = vrot.slane %v4568_v57, 4  ;;  %v8161_v23 = vadd.f32 %v6567_v58, %v1383_v49  ;;  %v4564_v35 = vsel %vm6974_vm7, %v4559_v37, %v4563_v30  ;;  %v8169_v7 = vadd.f32 %v1897_v38, %v1381_v24  ;;  %v6180_v57 = vld [vmem:[%s6901_s23 + $0xcc] sm:$0xf]  ;;  %v1910_v24 = vpop.f32.mrf.mxu0 }
 0x142   : > { %v5174_v34 = vsel %vm6960_vm6, %v5172_v13, %v5173_v17  ;;  %v4579_v10 = vshll.u32 %v6177_v48, 16  ;;  %v4578_v56 = vrot.slane %v4576_v21, 4  ;;  %v4585_v16 = vshll.u32 %v6178_v53, 16  ;;  %v1341_v45 = vpop.f32.mrf.mxu1 }
 0x143   : > { %v4574_v8 = vsel %vm6974_vm7, %v4569_v52, %v4573_v11  ;;  %v6294_v58 = vcombine.low %v5171_v28, %v5174_v34  ;;  %v4589_v31 = vshrl.u32 %v6178_v53, 16  ;;  %v4595_v30 = vshll.u32 %v6179_v46, 16  ;;  %v8629_v28 = vld [vmem:[#allocation12_spill] sm:$0xff]  ;;  %v6182_v52 = vld [vmem:[%s6901_s23 + $0xd4] sm:$0x1] }
 0x144   : > { %v6197_v22 = vcombine.low %v4564_v35, %v4574_v8  ;;  %v4581_v3 = vrot.slane %v4579_v10, 5  ;;  %v4587_v17 = vrot.slane %v4585_v16, 5  ;;  %v6278_v48 = vrot.slane %v6258_v50, 9  ;;  %v6537_v8 = vpop.f32.mrf.mxu1 }
 0x145   : > { %6769 = vmatmul.mubr.msk.bf16.gmra.mxu0 %vm349_vm1, %v6294_v58  ;;  %v5177_v27 = vrot.slane %v6259_v51, 5  ;;  %v5180_v32 = vrot.slane %v6260_v6, 5  ;;  %v4591_v49 = vrot.slane %v4589_v31, 4  ;;  %v4597_v37 = vrot.slane %v4595_v30, 5  ;;  %v6261_v51 = vld [vmem:[%s6901_s23 + $0xcc] sm:$0xe]  ;;  %v6571_v58 = vpop.f32.mrf.mxu0 }
 0x146   : > { %6735 = vmatmul.mubr.msk.bf16.gmra.mxu1 %vm349_vm1, %v6197_v22  ;;  %v4582_v11 = vor.u32 %v4581_v3, %v4578_v56  ;;  %v1386_v13 = vadd.f32 %v6536_v18, %v8629_v28  ;;  %v4600_v46 = vshrl.u32 %v6180_v57, 16  ;;  %v4603_v21 = vshll.u32 %v6180_v57, 16  ;;  %v6262_v6 = vld [vmem:[%s6901_s23 + $0xd0] sm:$0xf]  ;;  %v6263_v31 = vld [vmem:[%s6901_s23 + $0xd4] sm:$0x1] }
 0x147   : > { %v5178_v38 = vsel %vm6960_vm6, %v6278_v48, %v5177_v27  ;;  %v5179_v53 = vrot.slane %v5177_v27, 4  ;;  %v4592_v35 = vor.u32 %v4591_v49, %v4587_v17  ;;  %v4609_v10 = vshll.u32 %v6181_v25, 16 }
 0x148   : > { %v4583_v50 = vrot.slane %v4582_v11, 4  ;;  %v8183_v34 = vadd.f32 %v6570_v0, %v1386_v13  ;;  %v4602_v16 = vrot.slane %v4600_v46, 4  ;;  %v4605_v22 = vrot.slane %v4603_v21, 5  ;;  %v1344_v0 = vpop.f32.mrf.mxu1  ;;  %v1913_v13 = vpop.f32.mrf.mxu0 }
 0x149   : > { %v5181_v56 = vsel %vm6960_vm6, %v5179_v53, %v5180_v32  ;;  %v4613_v3 = vshrl.u32 %v6181_v25, 16  ;;  %v4593_v18 = vrot.slane %v4592_v35, 4  ;;  %v4611_v48 = vrot.slane %v4609_v10, 5  ;;  %v8631_v53 = vld [vmem:[#allocation13_spill] sm:$0xff] }
 0x14a   : > { %8630 = vst [vmem:[#allocation3_spill] sm:$0xff] %v8183_v34  ;;  %v4588_v30 = vsel %vm6974_vm7, %v4583_v50, %v4587_v17  ;;  %v6295_v57 = vcombine.low %v5178_v38, %v5181_v56  ;;  %v4606_v27 = vor.u32 %v4605_v22, %v4602_v16  ;;  %v4619_v49 = vshll.u32 %v6182_v52, 16  ;;  %v6576_v21 = vpop.f32.mrf.mxu1  ;;  %v8632_v56 = vld [vmem:[#allocation14_spill] sm:$0xff]  ;;  %v8633_v22 = vld [vmem:[#allocation15_spill] sm:$0xff] }
 0x14b   : > { %v4615_v11 = vrot.slane %v4613_v3, 4  ;;  %v6279_v28 = vrot.slane %v6261_v51, 9  ;;  %v4598_v34 = vsel %vm6974_vm7, %v4593_v18, %v4597_v37  ;;  %v5184_v32 = vrot.slane %v6262_v6, 5 }
 0x14c   : > { %6772 = vmatprep.mubr.msk.bf16.mxu0 %vm349_vm1, %v6295_v57  ;;  %v5187_v25 = vrot.slane %v6263_v31, 5  ;;  %v1384_v46 = vadd.f32 %v1341_v45, %v8631_v53  ;;  %v6198_v17 = vcombine.low %v4588_v30, %v4598_v34  ;;  %v4607_v50 = vrot.slane %v4606_v27, 4  ;;  %v2221_v37 = vpop.f32.mrf.mxu1  ;;  %v6610_v31 = vpop.f32.mrf.mxu0 }
 0x14d   : > { %v4616_v38 = vor.u32 %v4615_v11, %v4611_v48  ;;  %v4621_v35 = vrot.slane %v4619_v49, 5  ;;  %v5185_v10 = vsel %vm6960_vm6, %v6279_v28, %v5184_v32  ;;  %v5186_v52 = vrot.slane %v5184_v32, 4 }
 0x14e   : > { %v8198_v51 = vadd.f32 %v1910_v24, %v1384_v46  ;;  %v1387_v16 = vadd.f32 %v6537_v8, %v8632_v56  ;;  %6738 = vmatprep.mubr.msk.bf16.mxu1 %vm349_vm1, %v6198_v17  ;;  %v4612_v6 = vsel %vm6974_vm7, %v4607_v50, %v4611_v48  ;;  %v1385_v34 = vadd.f32 %v1344_v0, %v8633_v22  ;;  %v6577_v8 = vpop.f32.mrf.mxu1  ;;  %v3011_v0 = vpop.f32.mrf.mxu0 }
 0x14f   : > { %v4617_v45 = vrot.slane %v4616_v38, 4  ;;  %v2350_v3 = vadd.f32 %v6576_v21, %v7805_v36  ;;  %v5188_v30 = vsel %vm6960_vm6, %v5186_v52, %v5187_v25  ;;  %v2348_v24 = vadd.f32 %v2221_v37, %v7814_v41 }
 0x150   : > { %v8208_v18 = vadd.f32 %v6571_v58, %v1387_v16  ;;  %v6296_v27 = vcombine.low %v5185_v10, %v5188_v30  ;;  %v8213_v11 = vadd.f32 %v1913_v13, %v1385_v34  ;;  %v2351_v42 = vadd.f32 %v6577_v8, %v7826_v63  ;;  %v2224_v28 = vpop.f32.mrf.mxu1  ;;  %v6611_v58 = vpop.f32.mrf.mxu0 }
 0x151   : > { %v4622_v57 = vsel %vm6974_vm7, %v4617_v45, %v4621_v35  ;;  %v8215_v48 = vadd.f32 %v6610_v31, %v2350_v3  ;;  %v8217_v36 = vadd.f32 %v3011_v0, %v2348_v24  ;;  %v2349_v41 = vadd.f32 %v2224_v28, %v7843_v29 }
 0x152   : > { %v6199_v49 = vcombine.low %v4612_v6, %v4622_v57  ;;  %6773 = vmatmul.mubr.msk.bf16.gmra.mxu0 %vm349_vm1, %v6296_v27  ;;  %v8223_v55 = vadd.f32 %v6611_v58, %v2351_v42  ;;  %v6580_v13 = vpop.f32.mrf.mxu1  ;;  %v3014_v32 = vpop.f32.mrf.mxu0 }
 0x153   : > { %v2354_v25 = vadd.f32 %v6580_v13, %v7851_v47  ;;  %v8226_v53 = vadd.f32 %v3014_v32, %v2349_v41 }
 0x154   : > { %6739 = vmatmul.mubr.msk.bf16.gmra.mxu1 %vm349_vm1, %v6199_v49  ;;  %v2237_v46 = vpop.f32.mrf.mxu1  ;;  %v6614_v21 = vpop.f32.mrf.mxu0 }
 0x155   : > { %v2352_v63 = vadd.f32 %v2237_v46, %v7862_v40  ;;  %v8229_v17 = vadd.f32 %v6614_v21, %v2354_v25 }
 0x156   : > { %v6581_v50 = vpop.f32.mrf.mxu1  ;;  %v3027_v38 = vpop.f32.mrf.mxu0 }
 0x157   : > { %v2355_v29 = vadd.f32 %v6581_v50, %v7873_v44  ;;  %v8232_v35 = vadd.f32 %v3027_v38, %v2352_v63 }
 0x158   : > { %v2240_v10 = vpop.f32.mrf.mxu1  ;;  %v6615_v52 = vpop.f32.mrf.mxu0 }
 0x159   : > { %v2353_v56 = vadd.f32 %v2240_v10, %v7888_v33  ;;  %v8235_v16 = vadd.f32 %v6615_v52, %v2355_v29 }
 0x15a   : > { %v6584_v47 = vpop.f32.mrf.mxu1  ;;  %v3030_v37 = vpop.f32.mrf.mxu0 }
 0x15b   : > { %v2358_v6 = vadd.f32 %v6584_v47, %v7913_v61  ;;  %v8238_v45 = vadd.f32 %v3030_v37, %v2353_v56 }
 0x15c   : > { %v2253_v40 = vpop.f32.mrf.mxu1  ;;  %v6618_v3 = vpop.f32.mrf.mxu0 }
 0x15d   : > { %v2356_v22 = vadd.f32 %v2253_v40, %v7927_v14  ;;  %v8242_v31 = vadd.f32 %v6618_v3, %v2358_v6 }
 0x15e   : > { %v6585_v34 = vpop.f32.mrf.mxu1  ;;  %v3043_v24 = vpop.f32.mrf.mxu0 }
 0x15f   : > { %v2359_v44 = vadd.f32 %v6585_v34, %v7933_v20  ;;  %v8245_v8 = vadd.f32 %v3043_v24, %v2356_v22 }
 0x160   : > { %v2256_v30 = vpop.f32.mrf.mxu1  ;;  %v6619_v27 = vpop.f32.mrf.mxu0 }
 0x161   : > { %v2357_v33 = vadd.f32 %v2256_v30, %v7948_v1  ;;  %v8248_v0 = vadd.f32 %v6619_v27, %v2359_v44 }
 0x162   : > { %v6588_v57 = vpop.f32.mrf.mxu1  ;;  %v3046_v14 = vpop.f32.mrf.mxu0 }
 0x163   : > { %v2362_v61 = vadd.f32 %v6588_v57, %v7978_v15  ;;  %v8251_v28 = vadd.f32 %v3046_v14, %v2357_v33 }
 0x164   : > { %v2269_v49 = vpop.f32.mrf.mxu1  ;;  %v6622_v58 = vpop.f32.mrf.mxu0 }
 0x165   : > { %v2360_v42 = vadd.f32 %v2269_v49, %v7991_v19  ;;  %v8254_v13 = vadd.f32 %v6622_v58, %v2362_v61 }
 0x166   : > { %v6589_v20 = vpop.f32.mrf.mxu1  ;;  %v3059_v32 = vpop.f32.mrf.mxu0 }
 0x167   : > { %v2363_v41 = vadd.f32 %v6589_v20, %v8002_v26  ;;  %v8257_v46 = vadd.f32 %v3059_v32, %v2360_v42 }
 0x168   : > { %v2272_v1 = vpop.f32.mrf.mxu1  ;;  %v6623_v21 = vpop.f32.mrf.mxu0 }
 0x169   : > { %v2361_v25 = vadd.f32 %v2272_v1, %v8018_v9  ;;  %v8260_v50 = vadd.f32 %v6623_v21, %v2363_v41 }
 0x16a   : > { %v6592_v15 = vpop.f32.mrf.mxu1  ;;  %v3062_v38 = vpop.f32.mrf.mxu0 }
 0x16b   : > { %v2366_v63 = vadd.f32 %v6592_v15, %v8041_v39  ;;  %v8263_v10 = vadd.f32 %v3062_v38, %v2361_v25 }
 0x16c   : > { %v2285_v19 = vpop.f32.mrf.mxu1  ;;  %v6626_v52 = vpop.f32.mrf.mxu0 }
 0x16d   : > { %v2364_v29 = vadd.f32 %v2285_v19, %v8062_v4  ;;  %8634 = vst [vmem:[#allocation4_spill] sm:$0xff] %v8263_v10  ;;  %v8266_v47 = vadd.f32 %v6626_v52, %v2366_v63 }
 0x16e   : > { %v6593_v26 = vpop.f32.mrf.mxu1  ;;  %v3075_v37 = vpop.f32.mrf.mxu0 }
 0x16f   : > { %v2367_v56 = vadd.f32 %v6593_v26, %v8070_v62  ;;  %8635 = vst [vmem:[#allocation5_spill] sm:$0xff] %v8266_v47  ;;  %v8269_v40 = vadd.f32 %v3075_v37, %v2364_v29 }
 0x170   : > { %v2288_v9 = vpop.f32.mrf.mxu1  ;;  %v6627_v22 = vpop.f32.mrf.mxu0 }
 0x171   : > { %v2365_v6 = vadd.f32 %v2288_v9, %v8075_v60  ;;  %8636 = vst [vmem:[#allocation6_spill] sm:$0xff] %v8269_v40  ;;  %v8272_v3 = vadd.f32 %v6627_v22, %v2367_v56 }
 0x172   : > { %v6596_v39 = vpop.f32.mrf.mxu1  ;;  %v3078_v44 = vpop.f32.mrf.mxu0 }
 0x173   : > { %v2370_v34 = vadd.f32 %v6596_v39, %v8100_v5  ;;  %8637 = vst [vmem:[#allocation7_spill] sm:$0xff] %v8272_v3  ;;  %v8275_v24 = vadd.f32 %v3078_v44, %v2365_v6 }
 0x174   : > { %v2301_v4 = vpop.f32.mrf.mxu1  ;;  %v6630_v33 = vpop.f32.mrf.mxu0 }
 0x175   : > { %v2368_v30 = vadd.f32 %v2301_v4, %v8115_v54  ;;  %8638 = vst [vmem:[#allocation8_spill] sm:$0xff] %v8275_v24  ;;  %v8278_v27 = vadd.f32 %v6630_v33, %v2370_v34 }
 0x176   : > { %v6597_v62 = vpop.f32.mrf.mxu1  ;;  %v3091_v61 = vpop.f32.mrf.mxu0 }
 0x177   : > { %v2371_v57 = vadd.f32 %v6597_v62, %v8117_v2  ;;  %8639 = vst [vmem:[#allocation9_spill] sm:$0xff] %v8278_v27  ;;  %v8281_v14 = vadd.f32 %v3091_v61, %v2368_v30 }
 0x178   : > { %v2304_v60 = vpop.f32.mrf.mxu1  ;;  %v6631_v42 = vpop.f32.mrf.mxu0 }
 0x179   : > { %v2369_v49 = vadd.f32 %v2304_v60, %v8130_v43  ;;  %8640 = vst [vmem:[#allocation10_spill] sm:$0xff] %v8281_v14  ;;  %v8284_v58 = vadd.f32 %v6631_v42, %v2371_v57 }
 0x17a   : > { %v6600_v5 = vpop.f32.mrf.mxu1  ;;  %v3094_v41 = vpop.f32.mrf.mxu0 }
 0x17b   : > { %v2374_v20 = vadd.f32 %v6600_v5, %v8142_v59  ;;  %8641 = vst [vmem:[#allocation11_spill] sm:$0xff] %v8284_v58  ;;  %v8287_v32 = vadd.f32 %v3094_v41, %v2369_v49  ;;  %v8643_v59 = vld [vmem:[#allocation3_spill] sm:$0xff] }
 0x17c   : > { %v2317_v54 = vpop.f32.mrf.mxu1  ;;  %v6634_v21 = vpop.f32.mrf.mxu0 }
 0x17d   : > { %v2372_v1 = vadd.f32 %v2317_v54, %v8159_v12  ;;  %8642 = vst [vmem:[#allocation12_spill] sm:$0xff] %v8287_v32  ;;  %v8291_v63 = vadd.f32 %v6634_v21, %v2374_v20 }
 0x17e   : > { %v6601_v2 = vpop.f32.mrf.mxu1  ;;  %v3107_v38 = vpop.f32.mrf.mxu0 }
 0x17f   : > { %v2375_v25 = vadd.f32 %v6601_v2, %v8161_v23  ;;  %v8294_v26 = vadd.f32 %v3107_v38, %v2372_v1 }
 0x180   : > { %v2320_v15 = vpop.f32.mrf.mxu1  ;;  %v6635_v56 = vpop.f32.mrf.mxu0 }
 0x181   : > { %v2373_v43 = vadd.f32 %v2320_v15, %v8169_v7  ;;  %v8297_v9 = vadd.f32 %v6635_v56, %v2375_v25 }
 0x182   : > { %v6604_v19 = vpop.f32.mrf.mxu1  ;;  %v3110_v23 = vpop.f32.mrf.mxu0 }
 0x183   : > { %v2378_v29 = vadd.f32 %v6604_v19, %v8643_v59  ;;  %v8300_v39 = vadd.f32 %v3110_v23, %v2373_v43 }
 0x184   : > { %v2333_v52 = vpop.f32.mrf.mxu1  ;;  %v6638_v22 = vpop.f32.mrf.mxu0 }
 0x185   : > { %v2376_v12 = vadd.f32 %v2333_v52, %v8198_v51  ;;  %v8303_v4 = vadd.f32 %v6638_v22, %v2378_v29 }
 0x186   : > { %v6605_v37 = vpop.f32.mrf.mxu1  ;;  %v3123_v30 = vpop.f32.mrf.mxu0 }
 0x187   : > { %v2379_v6 = vadd.f32 %v6605_v37, %v8208_v18  ;;  %v8307_v62 = vadd.f32 %v3123_v30, %v2376_v12 }
 0x188   : > { %v2336_v7 = vpop.f32.mrf.mxu1  ;;  %v6639_v33 = vpop.f32.mrf.mxu0 }
 0x189   : > { %v2377_v34 = vadd.f32 %v2336_v7, %v8213_v11  ;;  %v8311_v57 = vadd.f32 %v6639_v33, %v2379_v6 }
 0x18a   : > { %v8305_v44 = vpop.f32.mrf.mxu1  ;;  %v3126_v18 = vpop.f32.mrf.mxu0 }
 0x18b   : > { %v8315_v61 = vadd.f32 %v3126_v18, %v2377_v34 }
 0x18c   : > { %v8309_v51 = vpop.f32.mrf.mxu1  ;;  %v8319_v11 = vpop.f32.mrf.mxu0 }
 0x18e   : > { %v8313_v60 = vpop.f32.mrf.mxu1  ;;  %v8321_v5 = vpop.f32.mrf.mxu0 }
 0x190   : > { %v8317_v49 = vpop.f32.mrf.mxu1  ;;  %v8325_v20 = vpop.f32.mrf.mxu0 }
 0x192   : > { %v8323_v42 = vpop.f32.mrf.mxu1  ;;  %v8329_v41 = vpop.f32.mrf.mxu0 }
 0x194   : > { %v8327_v54 = vpop.f32.mrf.mxu1  ;;  %v8333_v2 = vpop.f32.mrf.mxu0 }
 0x196   : > { %v8331_v1 = vpop.f32.mrf.mxu1  ;;  %v8337_v15 = vpop.f32.mrf.mxu0 }
 0x198   : > { %v8335_v25 = vpop.f32.mrf.mxu1  ;;  %v8341_v43 = vpop.f32.mrf.mxu0 }
 0x19a   : > { %v8339_v21 = vpop.f32.mrf.mxu1  ;;  %v8345_v38 = vpop.f32.mrf.mxu0 }
 0x19c   : > { %v8343_v19 = vpop.f32.mrf.mxu1  ;;  %v8349_v29 = vpop.f32.mrf.mxu0 }
 0x19e   : > { %v8347_v59 = vpop.f32.mrf.mxu1  ;;  %v8353_v56 = vpop.f32.mrf.mxu0 }
 0x1a0   : > { %v8351_v52 = vpop.f32.mrf.mxu1  ;;  %v8357_v37 = vpop.f32.mrf.mxu0 }
 0x1a2   : > { %v8355_v12 = vpop.f32.mrf.mxu1  ;;  %v8361_v6 = vpop.f32.mrf.mxu0 }
 0x1a4   : > { %v8359_v23 = vpop.f32.mrf.mxu1  ;;  %v8365_v22 = vpop.f32.mrf.mxu0 }
 0x1a5   : > { %8645 = vst [vmem:[#allocation14_spill] sm:$0xff] %v8365_v22 }
 0x1a6   : > { %v8363_v7 = vpop.f32.mrf.mxu1  ;;  %v8369_v30 = vpop.f32.mrf.mxu0 }
 0x1a7   : > { %8644 = vst [vmem:[#allocation13_spill] sm:$0xff] %v8363_v7  ;;  %8647 = vst [vmem:[#allocation3_spill] sm:$0xff] %v8369_v30 }
 0x1a8   : > { %v8367_v34 = vpop.f32.mrf.mxu1  ;;  %v8373_v18 = vpop.f32.mrf.mxu0 }
 0x1a9   : > { %8646 = vst [vmem:[#allocation15_spill] sm:$0xff] %v8367_v34  ;;  %8649 = vst [vmem:[#allocation17_spill] sm:$0xff] %v8373_v18 }
 0x1aa   : > { %v8371_v33 = vpop.f32.mrf.mxu1  ;;  %v8377_v58 = vpop.f32.mrf.mxu0 }
 0x1ab   : > { %8648 = vst [vmem:[#allocation16_spill] sm:$0xff] %v8371_v33  ;;  %8651 = vst [vmem:[#allocation19_spill] sm:$0xff] %v8377_v58 }
 0x1ac   : > { %v8375_v32 = vpop.f32.mrf.mxu1  ;;  %v8381_v27 = vpop.f32.mrf.mxu0 }
 0x1ad   : > { %8650 = vst [vmem:[#allocation18_spill] sm:$0xff] %v8375_v32  ;;  %8653 = vst [vmem:[#allocation21_spill] sm:$0xff] %v8381_v27 }
 0x1ae   : > { %v8379_v14 = vpop.f32.mrf.mxu1  ;;  %v8385_v3 = vpop.f32.mrf.mxu0 }
 0x1af   : > { %8652 = vst [vmem:[#allocation20_spill] sm:$0xff] %v8379_v14  ;;  %8655 = vst [vmem:[#allocation23_spill] sm:$0xff] %v8385_v3 }
 0x1b0   : > { %v8383_v24 = vpop.f32.mrf.mxu1  ;;  %v8389_v47 = vpop.f32.mrf.mxu0 }
 0x1b1   : > { %8654 = vst [vmem:[#allocation22_spill] sm:$0xff] %v8383_v24  ;;  %8657 = vst [vmem:[#allocation25_spill] sm:$0xff] %v8389_v47 }
 0x1b2   : > { %v8387_v40 = vpop.f32.mrf.mxu1  ;;  %v8393_v33 = vpop.f32.mrf.mxu0 }
 0x1b3   : > { %8656 = vst [vmem:[#allocation24_spill] sm:$0xff] %v8387_v40  ;;  %8659 = vst [vmem:[#allocation27_spill] sm:$0xff] %v8393_v33 }
 0x1b4   : > { %v8391_v30 = vpop.f32.mrf.mxu1  ;;  %v8397_v32 = vpop.f32.mrf.mxu0 }
 0x1b5   : > { %8658 = vst [vmem:[#allocation26_spill] sm:$0xff] %v8391_v30  ;;  %8661 = vst [vmem:[#allocation29_spill] sm:$0xff] %v8397_v32 }
 0x1b6   : > { %v8395_v18 = vpop.f32.mrf.mxu1  ;;  %v8401_v14 = vpop.f32.mrf.mxu0 }
 0x1b7   : > { %8660 = vst [vmem:[#allocation28_spill] sm:$0xff] %v8395_v18  ;;  %8663 = vst [vmem:[#allocation31_spill] sm:$0xff] %v8401_v14 }
 0x1b8   : > { %v8399_v58 = vpop.f32.mrf.mxu1  ;;  %v8404_v3 = vpop.f32.mrf.mxu0 }
 0x1b9   : > { %8662 = vst [vmem:[#allocation30_spill] sm:$0xff] %v8399_v58  ;;  %8664 = vst [vmem:[#allocation32_spill] sm:$0xff] %v8404_v3 }
 0x1ba   : > { %v8407_v34 = vpop.f32.mrf.mxu0 }
 0x1bb   : > { %8665 = vst [vmem:[#allocation33_spill] sm:$0xff] %v8407_v34 }
 0x1bc   : > { %v6702_v18 = vpop.f32.mrf.mxu0 }
 0x1bd   : > { %v6668_v27 = vpop.f32.mrf.mxu1 }
 0x1be   : > { %v3730_v24 = vadd.f32 %v6668_v27, %v8291_v63  ;;  %v4096_v14 = vpop.f32.mrf.mxu0 }
 0x1bf   : > { %v3673_v40 = vpop.f32.mrf.mxu1 }
 0x1c0   : > { %v3728_v47 = vadd.f32 %v3673_v40, %v8294_v26  ;;  %v8410_v32 = vadd.f32 %v6702_v18, %v3730_v24  ;;  %v6703_v63 = vpop.f32.mrf.mxu0  ;;  %v3706_v24 = vadd.f32 %v8305_v44, %v8215_v48  ;;  %v3707_v48 = vadd.f32 %v8313_v60, %v8223_v55 }
 0x1c1   : > { %v6669_v30 = vpop.f32.mrf.mxu1 }
 0x1c2   : > { %v3731_v33 = vadd.f32 %v6669_v30, %v8297_v9  ;;  %v8413_v7 = vadd.f32 %v4096_v14, %v3728_v47  ;;  %v4099_v34 = vpop.f32.mrf.mxu0  ;;  %v3704_v14 = vadd.f32 %v8309_v51, %v8217_v36  ;;  %v3705_v36 = vadd.f32 %v8317_v49, %v8226_v53 }
 0x1c3   : > { %v3676_v10 = vpop.f32.mrf.mxu1 }
 0x1c4   : > { %v3729_v58 = vadd.f32 %v3676_v10, %v8300_v39  ;;  %v8416_v40 = vadd.f32 %v6703_v63, %v3731_v33  ;;  %v6706_v39 = vpop.f32.mrf.mxu0  ;;  %v4130_v63 = vadd.f32 %v8325_v20, %v3707_v48  ;;  %v4128_v49 = vadd.f32 %v8329_v41, %v3705_v36 }
 0x1c5   : > { %v6672_v22 = vpop.f32.mrf.mxu1 }
 0x1c6   : > { %v3734_v27 = vadd.f32 %v6672_v22, %v8303_v4  ;;  %v8421_v30 = vadd.f32 %v4099_v34, %v3729_v58  ;;  %v4112_v33 = vpop.f32.mrf.mxu0  ;;  %v4127_v34 = vadd.f32 %v8321_v5, %v3704_v14  ;;  %v8448_v5 = vld [vmem:[%s8591_s2] ss:$0 sm:$0xff] }
 0x1c7   : > { %v3689_v3 = vpop.f32.mrf.mxu1 }
 0x1c8   : > { %v3732_v26 = vadd.f32 %v3689_v3, %v8307_v62  ;;  %v8426_v4 = vadd.f32 %v6706_v39, %v3734_v27  ;;  %v4129_v62 = vadd.f32 %v8319_v11, %v3706_v24  ;;  %v6707_v44 = vpop.f32.mrf.mxu0  ;;  %v3710_v11 = vadd.f32 %v8323_v42, %v8229_v17 }
 0x1c9   : > { %v6673_v9 = vpop.f32.mrf.mxu1  ;;  %v3711_v17 = vadd.f32 %v8331_v1, %v8235_v16 }
 0x1ca   : > { %v3735_v10 = vadd.f32 %v6673_v9, %v8311_v57  ;;  %v8432_v58 = vadd.f32 %v4112_v33, %v3732_v26  ;;  %v4115_v18 = vpop.f32.mrf.mxu0  ;;  %v3708_v9 = vadd.f32 %v8327_v54, %v8232_v35  ;;  %v4133_v39 = vadd.f32 %v8333_v2, %v3710_v11 }
 0x1cb   : > { %v3692_v47 = vpop.f32.mrf.mxu1  ;;  %v3709_v54 = vadd.f32 %v8335_v25, %v8238_v45  ;;  %v3714_v2 = vadd.f32 %v8339_v21, %v8242_v31 }
 0x1cc   : > { %v3733_v22 = vadd.f32 %v3692_v47, %v8315_v61  ;;  %v8437_v51 = vadd.f32 %v6707_v44, %v3735_v10  ;;  %v4131_v1 = vadd.f32 %v8337_v15, %v3708_v9  ;;  %v4134_v44 = vadd.f32 %v8341_v43, %v3711_v17 }
 0x1cd   : > { %v6712_v3 = vpop.f32.mrf.mxu1  ;;  %v3712_v15 = vadd.f32 %v8343_v19, %v8245_v8  ;;  %v3715_v43 = vadd.f32 %v8347_v59, %v8248_v0  ;;  %v4137_v11 = vadd.f32 %v8349_v29, %v3714_v2  ;;  %v3718_v29 = vadd.f32 %v8355_v12, %v8254_v13 }
 0x1ce   : > { %v4919_v61 = vadd.f32 %v6712_v3, %v4129_v62  ;;  %v8442_v55 = vadd.f32 %v4115_v18, %v3733_v22 }
 0x1cf   : > { %v4790_v57 = vpop.f32.mrf.mxu1  ;;  %v4138_v17 = vadd.f32 %v8357_v37, %v3715_v43  ;;  %v8666_v37 = vld [vmem:[#allocation13_spill] sm:$0xff] }
 0x1d0   : > { %v4917_v60 = vadd.f32 %v4790_v57, %v4127_v34 }
 0x1d1   : > { %v6713_v27 = vpop.f32.mrf.mxu1 }
 0x1d2   : > { %v4920_v24 = vadd.f32 %v6713_v27, %v4130_v63 }
 0x1d3   : > { %v4793_v53 = vpop.f32.mrf.mxu1 }
 0x1d4   : > { %v6746_v26 = vpop.f32.mrf.mxu0  ;;  %v4918_v35 = vadd.f32 %v4793_v53, %v4128_v49  ;;  %v4135_v49 = vadd.f32 %v8353_v56, %v3712_v15  ;;  %v3716_v56 = vadd.f32 %v8359_v23, %v8257_v46  ;;  %v8672_v15 = vld [vmem:[#allocation16_spill] sm:$0xff] }
 0x1d5   : > { %v5485_v20 = vadd.f32 %v6746_v26, %v4919_v61  ;;  %v6716_v10 = vpop.f32.mrf.mxu1  ;;  %v4132_v61 = vadd.f32 %v8345_v38, %v3709_v54  ;;  %v3713_v38 = vadd.f32 %v8351_v52, %v8251_v28 }
 0x1d6   : > { %v5356_v42 = vpop.f32.mrf.mxu0  ;;  %v4923_v3 = vadd.f32 %v6716_v10, %v4133_v39 }
 0x1d7   : > { %v5588_v41 = vadd.f32 %v8448_v5, %v5485_v20  ;;  %v5483_v47 = vadd.f32 %v5356_v42, %v4917_v60  ;;  %v4806_v16 = vpop.f32.mrf.mxu1 }
 0x1d8   : > { %v6747_v14 = vpop.f32.mrf.mxu0  ;;  %v4921_v57 = vadd.f32 %v4806_v16, %v4131_v1  ;;  %v8667_v16 = vld [vmem:[#allocation14_spill] sm:$0xff] }
 0x1d9   : > { %5620 = vst [vmem:[%s8458_s15 + $0x10] sm:$0xff] %v5588_v41  ;;  %v5586_v22 = vadd.f32 %v8448_v5, %v5483_v47  ;;  %v5486_v33 = vadd.f32 %v6747_v14, %v4920_v24  ;;  %v6717_v48 = vpop.f32.mrf.mxu1  ;;  %v4136_v41 = vadd.f32 %v8361_v6, %v3713_v38  ;;  %v4141_v1 = vadd.f32 %v8667_v16, %v3718_v29  ;;  %v8668_v6 = vld [vmem:[#allocation4_spill] sm:$0xff]  ;;  %v8676_v38 = vld [vmem:[#allocation19_spill] sm:$0xff] }
 0x1da   : > { %v5359_v62 = vpop.f32.mrf.mxu0  ;;  %v4924_v18 = vadd.f32 %v6717_v48, %v4134_v44  ;;  %v8670_v48 = vld [vmem:[#allocation3_spill] sm:$0xff] }
 0x1db   : > { %5618 = vst [vmem:[%s8458_s15] sm:$0xff] %v5586_v22  ;;  %v5589_v45 = vadd.f32 %v8448_v5, %v5486_v33  ;;  %v5484_v25 = vadd.f32 %v5359_v62, %v4918_v35  ;;  %v4809_v36 = vpop.f32.mrf.mxu1  ;;  %v3719_v35 = vadd.f32 %v8666_v37, %v8260_v50  ;;  %v8669_v33 = vld [vmem:[#allocation15_spill] sm:$0xff]  ;;  %v4139_v44 = vadd.f32 %v8670_v48, %v3716_v56 }
 0x1dc   : > { %v6750_v34 = vpop.f32.mrf.mxu0  ;;  %v4922_v60 = vadd.f32 %v4809_v36, %v4132_v61 }
 0x1dd   : > { %5621 = vst [vmem:[%s8458_s15 + $0x18] sm:$0xff] %v5589_v45  ;;  %v5587_v31 = vadd.f32 %v8448_v5, %v5484_v25  ;;  %v5489_v21 = vadd.f32 %v6750_v34, %v4923_v3  ;;  %v6720_v63 = vpop.f32.mrf.mxu1  ;;  %v3717_v3 = vadd.f32 %v8669_v33, %v8668_v6 }
 0x1de   : > { %v5372_v27 = vpop.f32.mrf.mxu0  ;;  %v4927_v9 = vadd.f32 %v6720_v63, %v4137_v11  ;;  %v8674_v63 = vld [vmem:[#allocation6_spill] sm:$0xff] }
 0x1df   : > { %5619 = vst [vmem:[%s8458_s15 + $0x8] sm:$0xff] %v5587_v31  ;;  %v5592_v8 = vadd.f32 %v8448_v5, %v5489_v21  ;;  %v5487_v19 = vadd.f32 %v5372_v27, %v4921_v57  ;;  %v4822_v53 = vpop.f32.mrf.mxu1  ;;  %v8671_v57 = vld [vmem:[#allocation5_spill] sm:$0xff]  ;;  %v8675_v11 = vld [vmem:[#allocation18_spill] sm:$0xff] }
 0x1e0   : > { %v6751_v26 = vpop.f32.mrf.mxu0  ;;  %v4925_v42 = vadd.f32 %v4822_v53, %v4135_v49  ;;  %v3722_v34 = vadd.f32 %v8672_v15, %v8671_v57  ;;  %v8673_v31 = vld [vmem:[#allocation17_spill] sm:$0xff] }
 0x1e1   : > { %5624 = vst [vmem:[%s8458_s15 + $0x30] sm:$0xff] %v5592_v8  ;;  %v5590_v0 = vadd.f32 %v8448_v5, %v5487_v19  ;;  %v5490_v59 = vadd.f32 %v6751_v26, %v4924_v18  ;;  %v6721_v24 = vpop.f32.mrf.mxu1  ;;  %v4142_v21 = vadd.f32 %v8673_v31, %v3719_v35  ;;  %v3720_v8 = vadd.f32 %v8675_v11, %v8674_v63  ;;  %v8690_v11 = vld [vmem:[#allocation11_spill] sm:$0xff] }
 0x1e2   : > { %v5375_v20 = vpop.f32.mrf.mxu0  ;;  %v4928_v47 = vadd.f32 %v6721_v24, %v4138_v17  ;;  %v4140_v26 = vadd.f32 %v8676_v38, %v3717_v3  ;;  %v8679_v17 = vld [vmem:[#allocation21_spill] sm:$0xff] }
 0x1e3   : > { %5622 = vst [vmem:[%s8458_s15 + $0x20] sm:$0xff] %v5590_v0  ;;  %v5593_v28 = vadd.f32 %v8448_v5, %v5490_v59  ;;  %v5488_v52 = vadd.f32 %v5375_v20, %v4922_v60  ;;  %v4825_v39 = vpop.f32.mrf.mxu1  ;;  %v8677_v59 = vld [vmem:[#allocation7_spill] sm:$0xff]  ;;  %v8684_v3 = vld [vmem:[#allocation9_spill] sm:$0xff] }
 0x1e4   : > { %v6754_v10 = vpop.f32.mrf.mxu0  ;;  %v4926_v22 = vadd.f32 %v4825_v39, %v4136_v41  ;;  %v8681_v39 = vld [vmem:[#allocation22_spill] sm:$0xff] }
 0x1e5   : > { %5625 = vst [vmem:[%s8458_s15 + $0x38] sm:$0xff] %v5593_v28  ;;  %v5591_v13 = vadd.f32 %v8448_v5, %v5488_v52  ;;  %v5493_v12 = vadd.f32 %v6754_v10, %v4927_v9  ;;  %v6724_v14 = vpop.f32.mrf.mxu1  ;;  %v8678_v9 = vld [vmem:[#allocation20_spill] sm:$0xff]  ;;  %v4145_v28 = vadd.f32 %v8679_v17, %v3722_v34  ;;  %v8687_v34 = vld [vmem:[#allocation10_spill] sm:$0xff] }
 0x1e6   : > { %v5388_v54 = vpop.f32.mrf.mxu0  ;;  %v4931_v25 = vadd.f32 %v6724_v14, %v4141_v1  ;;  %v3723_v29 = vadd.f32 %v8678_v9, %v8677_v59  ;;  %v8680_v10 = vld [vmem:[#allocation8_spill] sm:$0xff]  ;;  %v8694_v9 = vld [vmem:[#allocation30_spill] sm:$0xff] }
 0x1e7   : > { %5623 = vst [vmem:[%s8458_s15 + $0x28] sm:$0xff] %v5591_v13  ;;  %v5596_v46 = vadd.f32 %v8448_v5, %v5493_v12  ;;  %v5491_v23 = vadd.f32 %v5388_v54, %v4925_v42  ;;  %v4838_v62 = vpop.f32.mrf.mxu1  ;;  %v3721_v41 = vadd.f32 %v8681_v39, %v8680_v10  ;;  %v8693_v59 = vld [vmem:[#allocation12_spill] sm:$0xff] }
 0x1e8   : > { %v6755_v2 = vpop.f32.mrf.mxu0  ;;  %v4929_v27 = vadd.f32 %v4838_v62, %v4139_v44 }
 0x1e9   : > { %5628 = vst [vmem:[%s8458_s15 + $0x50] sm:$0xff] %v5596_v46  ;;  %v5594_v50 = vadd.f32 %v8448_v5, %v5491_v23  ;;  %v5494_v45 = vadd.f32 %v6755_v2, %v4928_v47  ;;  %v6725_v61 = vpop.f32.mrf.mxu1  ;;  %v8682_v47 = vld [vmem:[#allocation23_spill] sm:$0xff]  ;;  %v8683_v46 = vld [vmem:[#allocation25_spill] sm:$0xff]  ;;  %v8685_v2 = vld [vmem:[#allocation24_spill] sm:$0xff] }
 0x1ea   : > { %v5391_v36 = vpop.f32.mrf.mxu0  ;;  %v4932_v0 = vadd.f32 %v6725_v61, %v4142_v21  ;;  %v4143_v37 = vadd.f32 %v8682_v47, %v3720_v8  ;;  %v4146_v23 = vadd.f32 %v8683_v46, %v3723_v29  ;;  %v3726_v62 = vadd.f32 %v8685_v2, %v8684_v3  ;;  %v8691_v8 = vld [vmem:[#allocation28_spill] sm:$0xff]  ;;  %v8696_v47 = vld [vmem:[#allocation33_spill] sm:$0xff] }
 0x1eb   : > { %5626 = vst [vmem:[%s8458_s15 + $0x40] sm:$0xff] %v5594_v50  ;;  %v5597_v18 = vadd.f32 %v8448_v5, %v5494_v45  ;;  %v5492_v43 = vadd.f32 %v5391_v36, %v4926_v22  ;;  %v4841_v60 = vpop.f32.mrf.mxu1  ;;  %v8686_v50 = vld [vmem:[#allocation27_spill] sm:$0xff]  ;;  %v8688_v36 = vld [vmem:[#allocation26_spill] sm:$0xff]  ;;  %v3725_v29 = vadd.f32 %v8694_v9, %v8693_v59 }
 0x1ec   : > { %v6758_v19 = vpop.f32.mrf.mxu0  ;;  %v4930_v56 = vadd.f32 %v4841_v60, %v4140_v26  ;;  %v4144_v45 = vadd.f32 %v8686_v50, %v3721_v41  ;;  %v3724_v61 = vadd.f32 %v8688_v36, %v8687_v34 }
 0x1ed   : > { %5629 = vst [vmem:[%s8458_s15 + $0x58] sm:$0xff] %v5597_v18  ;;  %v5595_v53 = vadd.f32 %v8448_v5, %v5492_v43  ;;  %v5497_v49 = vadd.f32 %v6758_v19, %v4931_v25  ;;  %v6728_v24 = vpop.f32.mrf.mxu1  ;;  %v3727_v19 = vadd.f32 %v8691_v8, %v8690_v11 }
 0x1ee   : > { %v5404_v20 = vpop.f32.mrf.mxu0  ;;  %v4935_v14 = vadd.f32 %v6728_v24, %v4145_v28 }
 0x1ef   : > { %5627 = vst [vmem:[%s8458_s15 + $0x48] sm:$0xff] %v5595_v53  ;;  %v5600_v52 = vadd.f32 %v8448_v5, %v5497_v49  ;;  %v5495_v42 = vadd.f32 %v5404_v20, %v4929_v27  ;;  %v4854_v12 = vpop.f32.mrf.mxu1  ;;  %v8689_v27 = vld [vmem:[#allocation29_spill] sm:$0xff]  ;;  %v8692_v49 = vld [vmem:[#allocation31_spill] sm:$0xff] }
 0x1f0   : > { %v6759_v13 = vpop.f32.mrf.mxu0  ;;  %v4933_v33 = vadd.f32 %v4854_v12, %v4143_v37  ;;  %v4149_v63 = vadd.f32 %v8689_v27, %v3726_v62  ;;  %v4148_v37 = vadd.f32 %v8696_v47, %v3725_v29 }
 0x1f1   : > { %5632 = vst [vmem:[%s8458_s15 + $0x70] sm:$0xff] %v5600_v52  ;;  %v5598_v35 = vadd.f32 %v8448_v5, %v5495_v42  ;;  %v5498_v54 = vadd.f32 %v6759_v13, %v4932_v0  ;;  %v6729_v1 = vpop.f32.mrf.mxu1  ;;  %v4147_v0 = vadd.f32 %v8692_v49, %v3724_v61  ;;  %v8695_v42 = vld [vmem:[#allocation32_spill] sm:$0xff] }
 0x1f2   : > { %v5407_v16 = vpop.f32.mrf.mxu0  ;;  %v4936_v15 = vadd.f32 %v6729_v1, %v4146_v23 }
 0x1f3   : > { %5630 = vst [vmem:[%s8458_s15 + $0x60] sm:$0xff] %v5598_v35  ;;  %v5601_v22 = vadd.f32 %v8448_v5, %v5498_v54  ;;  %v5496_v6 = vadd.f32 %v5407_v16, %v4930_v56  ;;  %v4857_v44 = vpop.f32.mrf.mxu1  ;;  %v4150_v56 = vadd.f32 %v8695_v42, %v3727_v19 }
 0x1f4   : > { %v6762_v48 = vpop.f32.mrf.mxu0  ;;  %v4934_v43 = vadd.f32 %v4857_v44, %v4144_v45 }
 0x1f5   : > { %5633 = vst [vmem:[%s8458_s15 + $0x78] sm:$0xff] %v5601_v22  ;;  %v5599_v25 = vadd.f32 %v8448_v5, %v5496_v6  ;;  %v5501_v57 = vadd.f32 %v6762_v48, %v4935_v14 }
 0x1f6   : > { %v5420_v31 = vpop.f32.mrf.mxu0 }
 0x1f7   : > { %5631 = vst [vmem:[%s8458_s15 + $0x68] sm:$0xff] %v5599_v25  ;;  %v5604_v21 = vadd.f32 %v8448_v5, %v5501_v57  ;;  %v5499_v18 = vadd.f32 %v5420_v31, %v4933_v33 }
 0x1f8   : > { %v6763_v60 = vpop.f32.mrf.mxu0  ;;  %v6732_v53 = vpop.f32.mrf.mxu1 }
 0x1f9   : > { %5636 = vst [vmem:[%s8458_s15 + $0x90] sm:$0xff] %v5604_v21  ;;  %v5602_v38 = vadd.f32 %v8448_v5, %v5499_v18  ;;  %v5502_v26 = vadd.f32 %v6763_v60, %v4936_v15  ;;  %v4939_v24 = vadd.f32 %v6732_v53, %v4149_v63 }
 0x1fa   : > { %v5423_v20 = vpop.f32.mrf.mxu0  ;;  %v4870_v52 = vpop.f32.mrf.mxu1 }
 0x1fb   : > { %5634 = vst [vmem:[%s8458_s15 + $0x80] sm:$0xff] %v5602_v38  ;;  %v5605_v17 = vadd.f32 %v8448_v5, %v5502_v26  ;;  %v5500_v28 = vadd.f32 %v5423_v20, %v4934_v43  ;;  %v4937_v39 = vadd.f32 %v4870_v52, %v4147_v0 }
 0x1fc   : > { %v6766_v10 = vpop.f32.mrf.mxu0  ;;  %v6733_v12 = vpop.f32.mrf.mxu1 }
 0x1fd   : > { %5637 = vst [vmem:[%s8458_s15 + $0x98] sm:$0xff] %v5605_v17  ;;  %v5603_v41 = vadd.f32 %v8448_v5, %v5500_v28  ;;  %v5505_v13 = vadd.f32 %v6766_v10, %v4939_v24  ;;  %v4940_v54 = vadd.f32 %v6733_v12, %v4150_v56 }
 0x1fe   : > { %v5436_v35 = vpop.f32.mrf.mxu0  ;;  %v4873_v1 = vpop.f32.mrf.mxu1 }
 0x1ff   : > { %5635 = vst [vmem:[%s8458_s15 + $0x88] sm:$0xff] %v5603_v41  ;;  %v5608_v14 = vadd.f32 %v8448_v5, %v5505_v13  ;;  %v5503_v16 = vadd.f32 %v5436_v35, %v4937_v39  ;;  %v4938_v23 = vadd.f32 %v4873_v1, %v4148_v37 }
 0x200   : > { %v6767_v46 = vpop.f32.mrf.mxu0 }
 0x201   : > { %5640 = vst [vmem:[%s8458_s15 + $0xb0] sm:$0xff] %v5608_v14  ;;  %v5606_v22 = vadd.f32 %v8448_v5, %v5503_v16  ;;  %v5506_v6 = vadd.f32 %v6767_v46, %v4940_v54 }
 0x202   : > { %v5439_v33 = vpop.f32.mrf.mxu0 }
 0x203   : > { %5638 = vst [vmem:[%s8458_s15 + $0xa0] sm:$0xff] %v5606_v22  ;;  %v5609_v3 = vadd.f32 %v8448_v5, %v5506_v6  ;;  %v5504_v2 = vadd.f32 %v5439_v33, %v4938_v23 }
 0x205   : > { %5641 = vst [vmem:[%s8458_s15 + $0xb8] sm:$0xff] %v5609_v3  ;;  %v5607_v62 = vadd.f32 %v8448_v5, %v5504_v2  ;;  %v6770_v48 = vpop.f32.mrf.mxu0 }
 0x206   : > { %v6736_v44 = vpop.f32.mrf.mxu1 }
 0x207   : > { %5639 = vst [vmem:[%s8458_s15 + $0xa8] sm:$0xff] %v5607_v62  ;;  %v4943_v50 = vadd.f32 %v6736_v44, %v8410_v32  ;;  %v5452_v45 = vpop.f32.mrf.mxu0 }
 0x208   : > { %v4886_v25 = vpop.f32.mrf.mxu1 }
 0x209   : > { %v5509_v57 = vadd.f32 %v6770_v48, %v4943_v50  ;;  %v4941_v15 = vadd.f32 %v4886_v25, %v8413_v7  ;;  %v6771_v36 = vpop.f32.mrf.mxu0 }
 0x20a   : > { %v6737_v34 = vpop.f32.mrf.mxu1 }
 0x20b   : > { %v5612_v61 = vadd.f32 %v8448_v5, %v5509_v57  ;;  %v5507_v31 = vadd.f32 %v5452_v45, %v4941_v15  ;;  %v4944_v21 = vadd.f32 %v6737_v34, %v8416_v40  ;;  %v5455_v63 = vpop.f32.mrf.mxu0 }
 0x20c   : > { %v4889_v18 = vpop.f32.mrf.mxu1 }
 0x20d   : > { %5644 = vst [vmem:[%s8458_s15 + $0xd0] sm:$0xff] %v5612_v61  ;;  %v5610_v43 = vadd.f32 %v8448_v5, %v5507_v31  ;;  %v5510_v32 = vadd.f32 %v6771_v36, %v4944_v21  ;;  %v4942_v27 = vadd.f32 %v4889_v18, %v8421_v30 }
 0x20f   : > { %5642 = vst [vmem:[%s8458_s15 + $0xc0] sm:$0xff] %v5610_v43  ;;  %v5613_v11 = vadd.f32 %v8448_v5, %v5510_v32  ;;  %v5508_v7 = vadd.f32 %v5455_v63, %v4942_v27 }
 0x211   : > { %5645 = vst [vmem:[%s8458_s15 + $0xd8] sm:$0xff] %v5613_v11  ;;  %v5611_v8 = vadd.f32 %v8448_v5, %v5508_v7 }
 0x212   : > { %v6774_v19 = vpop.f32.mrf.mxu0 }
 0x213   : > { %5643 = vst [vmem:[%s8458_s15 + $0xc8] sm:$0xff] %v5611_v8 }
 0x214   : > { %v6740_v60 = vpop.f32.mrf.mxu1  ;;  %v5468_v38 = vpop.f32.mrf.mxu0 }
 0x215   : > { %v4947_v40 = vadd.f32 %v6740_v60, %v8426_v4 }
 0x216   : > { %v4902_v26 = vpop.f32.mrf.mxu1  ;;  %v6775_v0 = vpop.f32.mrf.mxu0 }
 0x217   : > { %v5513_v53 = vadd.f32 %v6774_v19, %v4947_v40  ;;  %v4945_v30 = vadd.f32 %v4902_v26, %v8432_v58 }
 0x218   : > { %v6741_v49 = vpop.f32.mrf.mxu1  ;;  %v5471_v28 = vpop.f32.mrf.mxu0 }
 0x219   : > { %v5616_v59 = vadd.f32 %v8448_v5, %v5513_v53  ;;  %v5511_v9 = vadd.f32 %v5468_v38, %v4945_v30  ;;  %v4948_v29 = vadd.f32 %v6741_v49, %v8437_v51 }
 0x21a   : > { %v4905_v20 = vpop.f32.mrf.mxu1 }
 0x21b   : > { %5648 = vst [vmem:[%s8458_s15 + $0xf0] sm:$0xff] %v5616_v59  ;;  %v5614_v24 = vadd.f32 %v8448_v5, %v5511_v9  ;;  %v5514_v4 = vadd.f32 %v6775_v0, %v4948_v29  ;;  %v4946_v17 = vadd.f32 %v4905_v20, %v8442_v55 }
 0x21d   : > { %5646 = vst [vmem:[%s8458_s15 + $0xe0] sm:$0xff] %v5614_v24  ;;  %v5617_v52 = vadd.f32 %v8448_v5, %v5514_v4  ;;  %v5512_v58 = vadd.f32 %v5471_v28, %v4946_v17 }
 0x21f   : > { %5649 = vst [vmem:[%s8458_s15 + $0xf8] sm:$0xff] %v5617_v52  ;;  %v5615_v42 = vadd.f32 %v8448_v5, %v5512_v58 }
 0x221   : > { %5647 = vst [vmem:[%s8458_s15 + $0xe8] sm:$0xff] %v5615_v42 }
 0x222 PF: > { %s13_s12 = sadd.s32 1, %s6851_s12  }
 0x223   : > { %p10_p4 = scmp.ge.s32.totalorder %s13_s12, 4  }
 0x225   :  { %12 = sbr.rel (!%p10_p4) target bundleno = 1 (0x1), region = 72 }

</bundles_post_ra>
